<compile_context>
chip_gen: v7x
topology: tpu7x:2x2x1
jax: 0.10.0
libtpu: 0.0.40
codegen_flags: <defaults>
</compile_context>

<pallas_src>
import jax
import jax.numpy as jnp
from jax.experimental import pallas as pl
from jax.experimental.pallas import tpu as pltpu


# ----------------------- fused forward kernel -----------------------
def net_kernel(x_ref, adj_ref, wlr_ref, bconv_ref, wa_ref, ba_ref,
               w1_ref, b1_ref, w2_ref, b2_ref, w3_ref, b3_ref, d_ref):
    bf = jnp.bfloat16
    x = x_ref[...].astype(bf)                      # [GB, N, 512] bf16
    adj = adj_ref[...]                             # [GB, N, N] f32, adj[g,i,j]=1 iff edge j->i
    gb, n, f = x.shape

    # ---- SAGEConv(512, 512): mean neighbour aggregation ----
    # Fold 1/deg into the small adjacency before the MXU (exact reciprocal;
    # degree is a small integer; 0 for isolated nodes).
    deg = jnp.sum(adj, axis=-1, keepdims=True)                         # [GB, N, 1]
    inv_deg = jnp.where(deg > 0.0, 1.0 / jnp.maximum(deg, 1.0), 0.0)
    adj_n = (adj * inv_deg).astype(bf)                                 # [GB, N, N] bf16
    neigh = jnp.einsum('gij,gjf->gif', adj_n, x,
                       preferred_element_type=jnp.float32)             # [GB, N, 512] f32

    # ---- fused lin_l / lin_r: one K=1024 MXU pass on stacked (GB*N, .) rows ----
    hx = jnp.concatenate([neigh.astype(bf), x], axis=-1).reshape(gb * n, 2 * f)
    h = jnp.dot(hx, wlr_ref[...], preferred_element_type=jnp.float32) + bconv_ref[...]
    h = jnp.maximum(h, 0.0)                                            # relu

    # ---- dense chain (bf16 MXU operands, f32 accumulation) ----
    def dense_relu(v, w_ref, b_ref):
        z = jnp.dot(v.astype(bf), w_ref[...],
                    preferred_element_type=jnp.float32) + b_ref[...]
        return jnp.maximum(z, 0.0)

    h = dense_relu(h, wa_ref, ba_ref)                                  # [GB*N, 256]
    h = dense_relu(h, w1_ref, b1_ref)                                  # [GB*N, 128]
    h = dense_relu(h, w2_ref, b2_ref)                                  # [GB*N, 64]
    y = (jnp.dot(h.astype(bf), w3_ref[...],
                 preferred_element_type=jnp.float32) + b3_ref[...])    # [GB*N, 3] f32

    # ---- cdist(y, y, p=2) per graph, as ONE batched matmul (kept in f32) ----
    # d2[i,j] = sum_f (y_i^2 + y_j^2 - 2 y_i y_j) = <[y_i^2, 1, -2 y_i], [1, y_j^2, y_j]>
    y = y.reshape(gb, n, 3)
    ysq = y * y
    ones = jnp.ones_like(y)
    a_mat = jnp.concatenate([ysq, ones, -2.0 * y], axis=-1)            # [GB, N, 9]
    b_mat = jnp.concatenate([ones, ysq, y], axis=-1)                   # [GB, N, 9]
    d2 = jnp.einsum('gik,gjk->gij', a_mat, b_mat,
                    preferred_element_type=jnp.float32)                # [GB, N, N]
    d_ref[...] = jnp.sqrt(jnp.maximum(d2, 0.0))


# ------------------------------ wrapper ------------------------------
def net_forward(x, adj, params, *, graphs_per_step=4):
    b, n, f = x.shape
    gb = graphs_per_step
    assert b % gb == 0, "batch must be divisible by graphs_per_step"

    # Per-step streamed blocks (one block of GB graphs per grid step).
    x_spec = pl.BlockSpec((gb, n, f), lambda i: (i, 0, 0))
    adj_spec = pl.BlockSpec((gb, n, n), lambda i: (i, 0, 0))
    out_spec = pl.BlockSpec((gb, n, n), lambda i: (i, 0, 0))

    # Weights/biases: full block, constant index map -> VMEM-resident across steps.
    def resident(arr):
        return pl.BlockSpec(arr.shape, lambda i: (0,) * arr.ndim)

    w_order = ("w_lr", "b_conv", "wa", "ba", "w1", "b1", "w2", "b2", "w3", "b3")
    weights = [params[k] for k in w_order]

    return pl.pallas_call(
        net_kernel,
        out_shape=jax.ShapeDtypeStruct((b, n, n), jnp.float32),
        grid=(b // gb,),
        in_specs=[x_spec, adj_spec] + [resident(w) for w in weights],
        out_specs=out_spec,
        compiler_params=pltpu.CompilerParams(dimension_semantics=("parallel",)),
    )(x, adj, *weights)


def make_params(key):
    ks = jax.random.split(key, 8)
    bf = jnp.bfloat16

    def glorot(k, shape):
        lim = (6.0 / (shape[0] + shape[1])) ** 0.5
        return jax.random.uniform(k, shape, jnp.float32, -lim, lim)

    # SAGEConv(512, 512): lin_l (neighbour aggregate, with bias), lin_r (root, no bias),
    # pre-stacked into one (1024, 512) matrix so the conv is a single K=1024 matmul.
    w_l = glorot(ks[0], (512, 512))
    w_r = glorot(ks[1], (512, 512))
    return {
        "w_lr": jnp.concatenate([w_l, w_r], axis=0).astype(bf),          # (1024, 512)
        "b_conv": jnp.zeros((1, 512), jnp.float32),
        # densea: 512 -> 256
        "wa": glorot(ks[2], (512, 256)).astype(bf), "ba": jnp.zeros((1, 256), jnp.float32),
        # dense1: 256 -> 128
        "w1": glorot(ks[3], (256, 128)).astype(bf), "b1": jnp.zeros((1, 128), jnp.float32),
        # dense2: 128 -> 64
        "w2": glorot(ks[4], (128, 64)).astype(bf),  "b2": jnp.zeros((1, 64), jnp.float32),
        # dense3: 64 -> 3
        "w3": glorot(ks[5], (64, 3)).astype(bf),    "b3": jnp.zeros((1, 3), jnp.float32),
    }


def edge_index_to_dense_adj(edge_index, num_nodes):
    # adj[i, j] = 1 iff there is an edge j -> i.
    # PyG SAGEConv does NOT add self-loops; mean over incoming neighbours only.
    src, dst = edge_index[0], edge_index[1]
    return jnp.zeros((num_nodes, num_nodes), jnp.float32).at[dst, src].set(1.0)


if __name__ == "__main__":
    B, GB, N = 8, 4, 32           # 8 graphs, 4 per grid step, 32 nodes each
    key = jax.random.PRNGKey(0)
    k_x, k_p = jax.random.split(key)

    x = jax.random.normal(k_x, (B, N, 512), jnp.float32)

    # deterministic small graph: bidirectional ring + skip-2 edges (same per graph)
    idx = jnp.arange(N)
    src = jnp.concatenate([idx, (idx + 1) % N, idx])
    dst = jnp.concatenate([(idx + 1) % N, idx, (idx + 2) % N])
    edge_index = jnp.stack([src, dst]).astype(jnp.int32)   # [2, 96]

    adj1 = edge_index_to_dense_adj(edge_index, N)           # [N, N] f32
    adj = jnp.tile(adj1[None], (B, 1, 1))                   # [B, N, N] f32

    params = make_params(k_p)

    out = net_forward(x, adj, params, graphs_per_step=GB)
    jax.block_until_ready(out)
    assert out.shape == (B, N, N) and out.dtype == jnp.float32
    assert bool(jnp.all(jnp.isfinite(out)))
    print("KERNEL_OK")
</pallas_src>

<mosaic_0001>
module attributes {stable_mosaic.version = 11 : i64} {
  func.func @net_kernel(%arg0: i32, %arg1: memref<4x32x512xf32, #tpu.memory_space<vmem>>, %arg2: memref<4x32x32xf32, #tpu.memory_space<vmem>>, %arg3: memref<1024x512xbf16, #tpu.memory_space<vmem>>, %arg4: memref<1x512xf32, #tpu.memory_space<vmem>>, %arg5: memref<512x256xbf16, #tpu.memory_space<vmem>>, %arg6: memref<1x256xf32, #tpu.memory_space<vmem>>, %arg7: memref<256x128xbf16, #tpu.memory_space<vmem>>, %arg8: memref<1x128xf32, #tpu.memory_space<vmem>>, %arg9: memref<128x64xbf16, #tpu.memory_space<vmem>>, %arg10: memref<1x64xf32, #tpu.memory_space<vmem>>, %arg11: memref<64x3xbf16, #tpu.memory_space<vmem>>, %arg12: memref<1x3xf32, #tpu.memory_space<vmem>>, %arg13: memref<4x32x32xf32, #tpu.memory_space<vmem>>) attributes {dimension_semantics = [#tpu.dimension_semantics<parallel>], iteration_bounds = array<i64: 2>, scalar_prefetch = 0 : i64, scratch_operands = 0 : i64, tpu.core_type = #tpu.core_type<tc>, window_params = [{transform_indices = @transform_0, window_bounds = array<i64: 4, 32, 512>}, {transform_indices = @transform_1, window_bounds = array<i64: 4, 32, 32>}, {pipeline_mode = #tpu.pipeline_mode<synchronous>, transform_indices = @transform_2, window_bounds = array<i64: 1024, 512>}, {pipeline_mode = #tpu.pipeline_mode<synchronous>, transform_indices = @transform_3, window_bounds = array<i64: 1, 512>}, {pipeline_mode = #tpu.pipeline_mode<synchronous>, transform_indices = @transform_4, window_bounds = array<i64: 512, 256>}, {pipeline_mode = #tpu.pipeline_mode<synchronous>, transform_indices = @transform_5, window_bounds = array<i64: 1, 256>}, {pipeline_mode = #tpu.pipeline_mode<synchronous>, transform_indices = @transform_6, window_bounds = array<i64: 256, 128>}, {pipeline_mode = #tpu.pipeline_mode<synchronous>, transform_indices = @transform_7, window_bounds = array<i64: 1, 128>}, {pipeline_mode = #tpu.pipeline_mode<synchronous>, transform_indices = @transform_8, window_bounds = array<i64: 128, 64>}, {pipeline_mode = #tpu.pipeline_mode<synchronous>, transform_indices = @transform_9, window_bounds = array<i64: 1, 64>}, {pipeline_mode = #tpu.pipeline_mode<synchronous>, transform_indices = @transform_10, window_bounds = array<i64: 64, 3>}, {pipeline_mode = #tpu.pipeline_mode<synchronous>, transform_indices = @transform_11, window_bounds = array<i64: 1, 3>}, {transform_indices = @transform_12, window_bounds = array<i64: 4, 32, 32>}]} {
    %c0 = arith.constant 0 : index
    %c0_0 = arith.constant 0 : index
    %c0_1 = arith.constant 0 : index
    %0 = vector.load %arg1[%c0, %c0_0, %c0_1] : memref<4x32x512xf32, #tpu.memory_space<vmem>>, vector<4x32x512xf32>
    %1 = arith.truncf %0 : vector<4x32x512xf32> to vector<4x32x512xbf16>
    %c0_2 = arith.constant 0 : index
    %c0_3 = arith.constant 0 : index
    %c0_4 = arith.constant 0 : index
    %2 = vector.load %arg2[%c0_2, %c0_3, %c0_4] : memref<4x32x32xf32, #tpu.memory_space<vmem>>, vector<4x32x32xf32>
    %cst = arith.constant dense<0.000000e+00> : vector<4x32xf32>
    %3 = vector.multi_reduction <add>, %2, %cst [2] : vector<4x32x32xf32> to vector<4x32xf32>
    %4 = vector.shape_cast %3 : vector<4x32xf32> to vector<4x32x1xf32>
    %cst_5 = arith.constant 0.000000e+00 : f32
    %5 = vector.broadcast %cst_5 : f32 to vector<4x32x1xf32>
    %6 = arith.cmpf ogt, %4, %5 : vector<4x32x1xf32>
    %cst_6 = arith.constant 1.000000e+00 : f32
    %7 = vector.broadcast %cst_6 : f32 to vector<4x32x1xf32>
    %8 = arith.maximumf %4, %7 : vector<4x32x1xf32>
    %cst_7 = arith.constant 1.000000e+00 : f32
    %9 = vector.broadcast %cst_7 : f32 to vector<4x32x1xf32>
    %10 = arith.divf %9, %8 : vector<4x32x1xf32>
    %cst_8 = arith.constant 0.000000e+00 : f32
    %11 = vector.broadcast %cst_8 : f32 to vector<4x32x1xf32>
    %12 = arith.select %6, %10, %11 : vector<4x32x1xi1>, vector<4x32x1xf32>
    %13 = vector.broadcast %12 : vector<4x32x1xf32> to vector<4x32x32xf32>
    %14 = arith.mulf %2, %13 : vector<4x32x32xf32>
    %15 = arith.truncf %14 : vector<4x32x32xf32> to vector<4x32x32xbf16>
    "tpu.trace_start"() <{level = 10 : i32, message = "gij,gjf->gif"}> : () -> ()
    %cst_9 = arith.constant dense<0.000000e+00> : vector<4x32x512xf32>
    %16 = tpu.matmul %15, %1, %cst_9 {dimension_numbers = #tpu.dot_dimension_numbers<[2], [1], [1], [2], [0, 0, 0, 1, 1, 2], [0], [0]>} : vector<4x32x32xbf16>, vector<4x32x512xbf16>, vector<4x32x512xf32> -> vector<4x32x512xf32>
    "tpu.trace_stop"() : () -> ()
    %17 = arith.truncf %16 : vector<4x32x512xf32> to vector<4x32x512xbf16>
    %18 = tpu.concatenate %17, %1 in 2 : vector<4x32x512xbf16>, vector<4x32x512xbf16> -> vector<4x32x1024xbf16>
    %19 = vector.shape_cast %18 : vector<4x32x1024xbf16> to vector<128x1024xbf16>
    %c0_10 = arith.constant 0 : index
    %c0_11 = arith.constant 0 : index
    %20 = vector.load %arg3[%c0_10, %c0_11] : memref<1024x512xbf16, #tpu.memory_space<vmem>>, vector<1024x512xbf16>
    %cst_12 = arith.constant dense<0.000000e+00> : vector<128x512xf32>
    %21 = tpu.matmul %19, %20, %cst_12 {dimension_numbers = #tpu.dot_dimension_numbers<[1], [0], [0], [1], [0, 0, 1, 1], [], []>} : vector<128x1024xbf16>, vector<1024x512xbf16>, vector<128x512xf32> -> vector<128x512xf32>
    %c0_13 = arith.constant 0 : index
    %c0_14 = arith.constant 0 : index
    %22 = vector.load %arg4[%c0_13, %c0_14] : memref<1x512xf32, #tpu.memory_space<vmem>>, vector<1x512xf32>
    %23 = vector.broadcast %22 : vector<1x512xf32> to vector<128x512xf32>
    %24 = arith.addf %21, %23 : vector<128x512xf32>
    %cst_15 = arith.constant 0.000000e+00 : f32
    %25 = vector.broadcast %cst_15 : f32 to vector<128x512xf32>
    %26 = arith.maximumf %24, %25 : vector<128x512xf32>
    %27 = arith.truncf %26 : vector<128x512xf32> to vector<128x512xbf16>
    %c0_16 = arith.constant 0 : index
    %c0_17 = arith.constant 0 : index
    %28 = vector.load %arg5[%c0_16, %c0_17] : memref<512x256xbf16, #tpu.memory_space<vmem>>, vector<512x256xbf16>
    %cst_18 = arith.constant dense<0.000000e+00> : vector<128x256xf32>
    %29 = tpu.matmul %27, %28, %cst_18 {dimension_numbers = #tpu.dot_dimension_numbers<[1], [0], [0], [1], [0, 0, 1, 1], [], []>} : vector<128x512xbf16>, vector<512x256xbf16>, vector<128x256xf32> -> vector<128x256xf32>
    %c0_19 = arith.constant 0 : index
    %c0_20 = arith.constant 0 : index
    %30 = vector.load %arg6[%c0_19, %c0_20] : memref<1x256xf32, #tpu.memory_space<vmem>>, vector<1x256xf32>
    %31 = vector.broadcast %30 : vector<1x256xf32> to vector<128x256xf32>
    %32 = arith.addf %29, %31 : vector<128x256xf32>
    %cst_21 = arith.constant 0.000000e+00 : f32
    %33 = vector.broadcast %cst_21 : f32 to vector<128x256xf32>
    %34 = arith.maximumf %32, %33 : vector<128x256xf32>
    %35 = arith.truncf %34 : vector<128x256xf32> to vector<128x256xbf16>
    %c0_22 = arith.constant 0 : index
    %c0_23 = arith.constant 0 : index
    %36 = vector.load %arg7[%c0_22, %c0_23] : memref<256x128xbf16, #tpu.memory_space<vmem>>, vector<256x128xbf16>
    %cst_24 = arith.constant dense<0.000000e+00> : vector<128x128xf32>
    %37 = tpu.matmul %35, %36, %cst_24 {dimension_numbers = #tpu.dot_dimension_numbers<[1], [0], [0], [1], [0, 0, 1, 1], [], []>} : vector<128x256xbf16>, vector<256x128xbf16>, vector<128x128xf32> -> vector<128x128xf32>
    %c0_25 = arith.constant 0 : index
    %c0_26 = arith.constant 0 : index
    %38 = vector.load %arg8[%c0_25, %c0_26] : memref<1x128xf32, #tpu.memory_space<vmem>>, vector<1x128xf32>
    %39 = vector.broadcast %38 : vector<1x128xf32> to vector<128x128xf32>
    %40 = arith.addf %37, %39 : vector<128x128xf32>
    %cst_27 = arith.constant 0.000000e+00 : f32
    %41 = vector.broadcast %cst_27 : f32 to vector<128x128xf32>
    %42 = arith.maximumf %40, %41 : vector<128x128xf32>
    %43 = arith.truncf %42 : vector<128x128xf32> to vector<128x128xbf16>
    %c0_28 = arith.constant 0 : index
    %c0_29 = arith.constant 0 : index
    %44 = vector.load %arg9[%c0_28, %c0_29] : memref<128x64xbf16, #tpu.memory_space<vmem>>, vector<128x64xbf16>
    %cst_30 = arith.constant dense<0.000000e+00> : vector<128x64xf32>
    %45 = tpu.matmul %43, %44, %cst_30 {dimension_numbers = #tpu.dot_dimension_numbers<[1], [0], [0], [1], [0, 0, 1, 1], [], []>} : vector<128x128xbf16>, vector<128x64xbf16>, vector<128x64xf32> -> vector<128x64xf32>
    %c0_31 = arith.constant 0 : index
    %c0_32 = arith.constant 0 : index
    %46 = vector.load %arg10[%c0_31, %c0_32] : memref<1x64xf32, #tpu.memory_space<vmem>>, vector<1x64xf32>
    %47 = vector.broadcast %46 : vector<1x64xf32> to vector<128x64xf32>
    %48 = arith.addf %45, %47 : vector<128x64xf32>
    %cst_33 = arith.constant 0.000000e+00 : f32
    %49 = vector.broadcast %cst_33 : f32 to vector<128x64xf32>
    %50 = arith.maximumf %48, %49 : vector<128x64xf32>
    %51 = arith.truncf %50 : vector<128x64xf32> to vector<128x64xbf16>
    %c0_34 = arith.constant 0 : index
    %c0_35 = arith.constant 0 : index
    %52 = vector.load %arg11[%c0_34, %c0_35] : memref<64x3xbf16, #tpu.memory_space<vmem>>, vector<64x3xbf16>
    %cst_36 = arith.constant dense<0.000000e+00> : vector<128x3xf32>
    %53 = tpu.matmul %51, %52, %cst_36 {dimension_numbers = #tpu.dot_dimension_numbers<[1], [0], [0], [1], [0, 0, 1, 1], [], []>} : vector<128x64xbf16>, vector<64x3xbf16>, vector<128x3xf32> -> vector<128x3xf32>
    %c0_37 = arith.constant 0 : index
    %c0_38 = arith.constant 0 : index
    %54 = vector.load %arg12[%c0_37, %c0_38] : memref<1x3xf32, #tpu.memory_space<vmem>>, vector<1x3xf32>
    %55 = vector.broadcast %54 : vector<1x3xf32> to vector<128x3xf32>
    %56 = arith.addf %53, %55 : vector<128x3xf32>
    %57 = vector.shape_cast %56 : vector<128x3xf32> to vector<4x32x3xf32>
    %58 = arith.mulf %57, %57 : vector<4x32x3xf32>
    %cst_39 = arith.constant 1.000000e+00 : f32
    %59 = vector.broadcast %cst_39 : f32 to vector<4x32x3xf32>
    %cst_40 = arith.constant -2.000000e+00 : f32
    %60 = vector.broadcast %cst_40 : f32 to vector<4x32x3xf32>
    %61 = arith.mulf %60, %57 : vector<4x32x3xf32>
    %62 = tpu.concatenate %58, %59, %61 in 2 : vector<4x32x3xf32>, vector<4x32x3xf32>, vector<4x32x3xf32> -> vector<4x32x9xf32>
    %63 = tpu.concatenate %59, %58, %57 in 2 : vector<4x32x3xf32>, vector<4x32x3xf32>, vector<4x32x3xf32> -> vector<4x32x9xf32>
    "tpu.trace_start"() <{level = 10 : i32, message = "gik,gjk->gij"}> : () -> ()
    %cst_41 = arith.constant dense<0.000000e+00> : vector<4x32x32xf32>
    %64 = tpu.matmul %62, %63, %cst_41 {dimension_numbers = #tpu.dot_dimension_numbers<[2], [2], [1], [1], [0, 0, 0, 1, 1, 1], [0], [0]>} : vector<4x32x9xf32>, vector<4x32x9xf32>, vector<4x32x32xf32> -> vector<4x32x32xf32>
    "tpu.trace_stop"() : () -> ()
    %cst_42 = arith.constant 0.000000e+00 : f32
    %65 = vector.broadcast %cst_42 : f32 to vector<4x32x32xf32>
    %66 = arith.maximumf %64, %65 : vector<4x32x32xf32>
    %67 = math.sqrt %66 : vector<4x32x32xf32>
    %c0_43 = arith.constant 0 : index
    %c0_44 = arith.constant 0 : index
    %c0_45 = arith.constant 0 : index
    %68 = vector.load %arg13[%c0_43, %c0_44, %c0_45] : memref<4x32x32xf32, #tpu.memory_space<vmem>>, vector<4x32x32xf32>
    tpu.vector_store %arg13[%c0_43, %c0_44, %c0_45], %67 {strides = array<i32>} : memref<4x32x32xf32, #tpu.memory_space<vmem>>, vector<4x32x32xf32>,
    return
  }
  func.func @transform_0(%arg0: i32) -> (i32, i32, i32) {
    %c0_i32 = arith.constant 0 : i32
    %c0_i32_0 = arith.constant 0 : i32
    %c0_i32_1 = arith.constant 0 : i32
    return %arg0, %c0_i32, %c0_i32_0 : i32, i32, i32
  }
  func.func @transform_1(%arg0: i32) -> (i32, i32, i32) {
    %c0_i32 = arith.constant 0 : i32
    %c0_i32_0 = arith.constant 0 : i32
    %c0_i32_1 = arith.constant 0 : i32
    return %arg0, %c0_i32, %c0_i32_0 : i32, i32, i32
  }
  func.func @transform_2(%arg0: i32) -> (i32, i32) {
    %c0_i32 = arith.constant 0 : i32
    %c0_i32_0 = arith.constant 0 : i32
    %c0_i32_1 = arith.constant 0 : i32
    return %c0_i32, %c0_i32_0 : i32, i32
  }
  func.func @transform_3(%arg0: i32) -> (i32, i32) {
    %c0_i32 = arith.constant 0 : i32
    %c0_i32_0 = arith.constant 0 : i32
    %c0_i32_1 = arith.constant 0 : i32
    return %c0_i32, %c0_i32_0 : i32, i32
  }
  func.func @transform_4(%arg0: i32) -> (i32, i32) {
    %c0_i32 = arith.constant 0 : i32
    %c0_i32_0 = arith.constant 0 : i32
    %c0_i32_1 = arith.constant 0 : i32
    return %c0_i32, %c0_i32_0 : i32, i32
  }
  func.func @transform_5(%arg0: i32) -> (i32, i32) {
    %c0_i32 = arith.constant 0 : i32
    %c0_i32_0 = arith.constant 0 : i32
    %c0_i32_1 = arith.constant 0 : i32
    return %c0_i32, %c0_i32_0 : i32, i32
  }
  func.func @transform_6(%arg0: i32) -> (i32, i32) {
    %c0_i32 = arith.constant 0 : i32
    %c0_i32_0 = arith.constant 0 : i32
    %c0_i32_1 = arith.constant 0 : i32
    return %c0_i32, %c0_i32_0 : i32, i32
  }
  func.func @transform_7(%arg0: i32) -> (i32, i32) {
    %c0_i32 = arith.constant 0 : i32
    %c0_i32_0 = arith.constant 0 : i32
    %c0_i32_1 = arith.constant 0 : i32
    return %c0_i32, %c0_i32_0 : i32, i32
  }
  func.func @transform_8(%arg0: i32) -> (i32, i32) {
    %c0_i32 = arith.constant 0 : i32
    %c0_i32_0 = arith.constant 0 : i32
    %c0_i32_1 = arith.constant 0 : i32
    return %c0_i32, %c0_i32_0 : i32, i32
  }
  func.func @transform_9(%arg0: i32) -> (i32, i32) {
    %c0_i32 = arith.constant 0 : i32
    %c0_i32_0 = arith.constant 0 : i32
    %c0_i32_1 = arith.constant 0 : i32
    return %c0_i32, %c0_i32_0 : i32, i32
  }
  func.func @transform_10(%arg0: i32) -> (i32, i32) {
    %c0_i32 = arith.constant 0 : i32
    %c0_i32_0 = arith.constant 0 : i32
    %c0_i32_1 = arith.constant 0 : i32
    return %c0_i32, %c0_i32_0 : i32, i32
  }
  func.func @transform_11(%arg0: i32) -> (i32, i32) {
    %c0_i32 = arith.constant 0 : i32
    %c0_i32_0 = arith.constant 0 : i32
    %c0_i32_1 = arith.constant 0 : i32
    return %c0_i32, %c0_i32_0 : i32, i32
  }
  func.func @transform_12(%arg0: i32) -> (i32, i32, i32) {
    %c0_i32 = arith.constant 0 : i32
    %c0_i32_0 = arith.constant 0 : i32
    %c0_i32_1 = arith.constant 0 : i32
    return %arg0, %c0_i32, %c0_i32_0 : i32, i32, i32
  }
}

</mosaic_0001>

<bundles_post_ra>
// kernel: tpu_custom_call.1
= control target key start
LH: loop header
LB: loop body
LE: loop exit
PB: predicated region body
PF: predicated region fallthrough
CT: control target
= control target key end

     0   :  { %s9724_s0 = inlined_call_operand.hbm [shape: f32[8,32,512], index: 0, kind: input, shape index: {}]   ;;  %s9725_s1 = inlined_call_operand.hbm [shape: f32[8,32,32], index: 1, kind: input, shape index: {}]   ;;  %s9726_s2 = inlined_call_operand.hbm [shape: bf16[1024,512], index: 2, kind: input, shape index: {}]   ;;  %s9727_s3 = inlined_call_operand.hbm [shape: f32[1,512], index: 3, kind: input, shape index: {}]   ;;  %s9728_s4 = inlined_call_operand.hbm [shape: bf16[512,256], index: 4, kind: input, shape index: {}]   ;;  %s9729_s5 = inlined_call_operand.hbm [shape: f32[1,256], index: 5, kind: input, shape index: {}]   ;;  %s9730_s6 = inlined_call_operand.vmem [shape: bf16[256,128], index: 6, kind: input, shape index: {}]   ;;  %s9731_s7 = inlined_call_operand.hbm [shape: f32[1,128], index: 7, kind: input, shape index: {}]   ;;  %s9732_s8 = inlined_call_operand.vmem [shape: bf16[128,64], index: 8, kind: input, shape index: {}]   ;;  %s9733_s9 = inlined_call_operand.vmem [shape: f32[1,64], index: 9, kind: input, shape index: {}]   ;;  %s9734_s10 = inlined_call_operand.vmem [shape: bf16[64,3], index: 10, kind: input, shape index: {}]   ;;  %s9735_s11 = inlined_call_operand.vmem [shape: f32[1,3], index: 11, kind: input, shape index: {}]   ;;  %s9736_s12 = inlined_call_operand.hbm [shape: f32[8,32,32], index: 12, kind: output, shape index: {}]  }
   0x1   :  { %9748 = sst [smem:[#allocation23_spill]] %s9724_s0 }
   0x2   :  { %9749 = sst [smem:[#allocation24_spill]] %s9726_s2 }
   0x3   :  { %9750 = sst [smem:[#allocation25_spill]] %s9727_s3 }
   0x4   :  { %9751 = sst [smem:[#allocation26_spill]] %s9728_s4 }
   0x5   :  { %9752 = sst [smem:[#allocation27_spill]] %s9729_s5 }
   0x6   :  { %9753 = sst [smem:[#allocation28_spill]] %s9731_s7 }
   0x7   :  { %9754 = sst [smem:[#allocation29_spill]] %s9733_s9 }
   0x8   :  { %9755 = sst [smem:[#allocation30_spill]] %s9734_s10 }
   0x9   :  { %9756 = sst [smem:[#allocation31_spill]] %s9735_s11 }
   0xa   :  { %9757 = sst [smem:[#allocation32_spill]] %s9736_s12 }
   0xb   :  { %17 = vsyncpa [#allocation3], 0 }
   0xc   :  { %19 = vsyncpa [#allocation3 + $0x1], 0 }
   0xd   :  { %20 = vsyncpa [#allocation6], 0 }
   0xe   :  { %22 = vsyncpa [#allocation6 + $0x1], 0 }
   0xf   :  { %23 = vsyncpa [#allocation9], 0 }
  0x10   :  { %24 = vsyncpa [#allocation12], 0 }
  0x11   :  { %25 = vsyncpa [#allocation4], 0 }
  0x12   :  { %27 = vsyncpa [#allocation4 + $0x1], 0  ;;  %s8349_s21 = smov 0   ;;  %s8351_s22 = smov 0  }
  0x13   :  { %s8353_s23 = smov 0   ;;  %s8355_s24 = smov 0  }
  0x14 LB: > { %s8265_s25 = smov [#allocation7]   ;;  %s8370_s27 = sadd.s32 4294967295, %s8263_s24   ;;  %s8263_s24 = sphi %s8355_s24, %s9798_s24   ;;  %s8259_s23 = sphi %s8353_s23, %s9797_s23   ;;  %s8255_s22 = sphi %s8351_s22, %s9796_s22   ;;  %s8251_s21 = sphi %s8349_s21, %s9795_s21  }
  0x15   : > { %s338_s26 = sshll.u32 %s8265_s25, 4  ;;  %p6156_p0 = scmp.ge.s32.totalorder %s8263_s24, 1  ;;  %s8375_s26 = int_to_ptr.vmem [resolvable:$true] %s338_s26 }
  0x16   : > { %p9739_p1 = scmp.eq.s32.totalorder %s8370_s27, 0  ;;  %p326_p2 = scmp.lt.s32.totalorder %s8263_s24, 3 }
  0x17   : > { %s8266_s29 = smov [#allocation8]   ;;  %s8267_s14 = smov [#allocation11]  }
  0x18   : > { %p8377_p3 = pnand %p6156_p0, %p326_p2  ;;  %s352_s30 = sshll.u32 %s8266_s29, 4  ;;  %s8390_s30 = int_to_ptr.vmem [resolvable:$true] %s352_s30 }
  0x19   : > { %s376_s15 = sshll.u32 %s8267_s14, 4  ;;  %s9760_s2 = sld [smem:[#allocation24_spill]]  ;;  %s8392_s15 = int_to_ptr.vmem [resolvable:$true] %s376_s15 }
  0x1a   : > { %s9758_s28 = scalar_select %p8377_p3, 1, 0 }
  0x1b   : > { %p7229_p5 = pneg %p8377_p3 }
  0x1d   : > { %p8386_p6 = pnand %p7229_p5, %p9739_p1 }
  0x1f   : > { %s7981_s18 = scalar_lea.hbm %s9760_s2, 32768  ;;  %p8402_p8 = pneg %p8386_p6 }
  0x20   : > { %p7982_p7 = scmp.ne.s32.totalorder %s9760_s2, %s7981_s18  ;;  %p7988_p11 = scmp.lt.u32.totalorder %s7981_s18, %s9760_s2 }
  0x22   : > { %p7984_p9 = pnand %p8402_p8, %p7982_p7 }
  0x24   : > { %p7985_p10 = pneg %p7984_p9 }
  0x26   : > { %p7990_p12 = pnand %p7988_p11, %p7985_p10 }
  0x28   : > { %7993 = shalt.err (!%p7990_p12)
}
  0x29   : > { %s7994_s16 = scalar_lea.vmem %s8375_s26, 32768  ;;  %p8002_p5 = scmp.lt.s32.totalorder %s8375_s26, %s8375_s26 }
  0x2a   : > { %p7995_p13 = scmp.ne.s32.totalorder %s8375_s26, %s7994_s16  ;;  %p8003_p4 = scmp.lt.s32.totalorder %s7994_s16, %s7994_s16 }
  0x2c   : > { %p7997_p0 = pnand %p7995_p13, %p8402_p8  ;;  %p8004_p7 = por %p8003_p4, %p8002_p5 }
  0x2e   : > { %p7998_p2 = pneg %p7997_p0 }
  0x30   : > { %p8005_p9 = pnand %p8004_p7, %p7998_p2 }
  0x32   : > { %8008 = shalt.err (!%p8005_p9)
}
  0x33   : > { %s8268_s17 = smov 256   ;;  %s8269_s18 = smov 16  }
  0x34   : > { %7232 = dma.hbm_to_vmem [thread:$0]  (!%p8386_p6), %s9760_s2, 32768, %s8375_s26, [#allocation6], %s8268_s17, %s8268_s17, %s8269_s18  }
  0x35   : > { %s9762_s3 = sld [smem:[#allocation25_spill]] }
  0x3b   : > { %s8009_s12 = scalar_lea.hbm %s9762_s3, 64 }
  0x3c   : > { %p8010_p4 = scmp.ne.s32.totalorder %s9762_s3, %s8009_s12  ;;  %p8016_p12 = scmp.lt.u32.totalorder %s8009_s12, %s9762_s3 }
  0x3e   : > { %p8012_p10 = pnand %p8010_p4, %p8402_p8 }
  0x40   : > { %p8013_p11 = pneg %p8012_p10 }
  0x42   : > { %p8018_p13 = pnand %p8016_p12, %p8013_p11 }
  0x44   : > { %8021 = shalt.err (!%p8018_p13)
}
  0x45   : > { %s8022_s26 = scalar_lea.vmem %s8390_s30, 64  ;;  %p8030_p7 = scmp.lt.s32.totalorder %s8390_s30, %s8390_s30 }
  0x46   : > { %p8023_p0 = scmp.ne.s32.totalorder %s8390_s30, %s8022_s26  ;;  %p8031_p9 = scmp.lt.s32.totalorder %s8022_s26, %s8022_s26 }
  0x48   : > { %p8025_p2 = pnand %p8023_p0, %p8402_p8  ;;  %p8032_p4 = por %p8031_p9, %p8030_p7 }
  0x4a   : > { %p8026_p5 = pneg %p8025_p2 }
  0x4c   : > { %p8033_p10 = pnand %p8032_p4, %p8026_p5 }
  0x4e   : > { %8036 = shalt.err (!%p8033_p10)
}
  0x4f   : > { %7235 = dma.hbm_to_vmem [thread:$0]  (!%p8386_p6), %s9762_s3, 64, %s8390_s30, [#allocation9]  }
  0x50   : > { %s9763_s5 = sld [smem:[#allocation27_spill]] }
  0x56   : > { %s8037_s17 = scalar_lea.hbm %s9763_s5, 32 }
  0x57   : > { %p8038_p11 = scmp.ne.s32.totalorder %s9763_s5, %s8037_s17  ;;  %p8044_p0 = scmp.lt.u32.totalorder %s8037_s17, %s9763_s5 }
  0x59   : > { %p8040_p12 = pnand %p8038_p11, %p8402_p8 }
  0x5b   : > { %p8041_p13 = pneg %p8040_p12 }
  0x5d   : > { %p8046_p2 = pnand %p8044_p0, %p8041_p13 }
  0x5f   : > { %8049 = shalt.err (!%p8046_p2)
}
  0x60   : > { %s8050_s30 = scalar_lea.vmem %s8392_s15, 32  ;;  %p8058_p4 = scmp.lt.s32.totalorder %s8392_s15, %s8392_s15 }
  0x61   : > { %p8051_p5 = scmp.ne.s32.totalorder %s8392_s15, %s8050_s30  ;;  %p8059_p10 = scmp.lt.s32.totalorder %s8050_s30, %s8050_s30 }
  0x63   : > { %p8053_p7 = pnand %p8051_p5, %p8402_p8  ;;  %p8060_p11 = por %p8059_p10, %p8058_p4 }
  0x65   : > { %p8054_p9 = pneg %p8053_p7 }
  0x67   : > { %p8061_p12 = pnand %p8060_p11, %p8054_p9 }
  0x69   : > { %8064 = shalt.err (!%p8061_p12)
}
  0x6a   : > { %7241 = dma.hbm_to_vmem [thread:$0]  (!%p8386_p6), %s9763_s5, 32, %s8392_s15, [#allocation12]  }
  0x6b   : > { %s8270_s26 = smov [#allocation10]   ;;  %s9764_s4 = sld [smem:[#allocation26_spill]] }
  0x6c   : > { %s362_s9 = sshll.u32 %s8270_s26, 4  ;;  %s363_s9 = int_to_ptr.vmem [resolvable:$true] %s362_s9 }
  0x71   : > { %s8065_s12 = scalar_lea.hbm %s9764_s4, 8192 }
  0x72   : > { %p8066_p13 = scmp.ne.s32.totalorder %s9764_s4, %s8065_s12  ;;  %p8072_p5 = scmp.lt.u32.totalorder %s8065_s12, %s9764_s4 }
  0x74   : > { %p8068_p0 = pnand %p8066_p13, %p8402_p8 }
  0x76   : > { %p8069_p2 = pneg %p8068_p0 }
  0x78   : > { %p8074_p7 = pnand %p8072_p5, %p8069_p2 }
  0x7a   : > { %8077 = shalt.err (!%p8074_p7)
}
  0x7b   : > { %s8078_s15 = scalar_lea.vmem %s363_s9, 8192  ;;  %p8086_p11 = scmp.lt.s32.totalorder %s363_s9, %s363_s9 }
  0x7c   : > { %p8079_p9 = scmp.ne.s32.totalorder %s363_s9, %s8078_s15  ;;  %p8087_p12 = scmp.lt.s32.totalorder %s8078_s15, %s8078_s15 }
  0x7e   : > { %p8081_p4 = pnand %p8079_p9, %p8402_p8  ;;  %p8088_p1 = por %p8087_p12, %p8086_p11 }
  0x80   : > { %p8082_p10 = pneg %p8081_p4 }
  0x82   : > { %p8089_p3 = pnand %p8088_p1, %p8082_p10 }
  0x84   : > { %8092 = shalt.err (!%p8089_p3)
}
  0x85   : > { %s9741_s29 = smov 128   ;;  %s9742_s30 = smov 8  }
  0x86   : > { %7238 = dma.hbm_to_vmem [thread:$0]  (!%p8386_p6), %s9764_s4, 8192, %s363_s9, [#allocation9], %s9741_s29, %s9741_s29, %s9742_s30  }
  0x87   : > { %s8273_s26 = smov [#allocation13]   ;;  %s9765_s7 = sld [smem:[#allocation28_spill]] }
  0x88   : > { %s390_s10 = sshll.u32 %s8273_s26, 4  ;;  %s391_s10 = int_to_ptr.vmem [resolvable:$true] %s390_s10 }
  0x8d   : > { %s8093_s17 = scalar_lea.hbm %s9765_s7, 16 }
  0x8e   : > { %p8094_p1 = scmp.ne.s32.totalorder %s9765_s7, %s8093_s17  ;;  %p8100_p0 = scmp.lt.u32.totalorder %s8093_s17, %s9765_s7 }
  0x90   : > { %p8096_p3 = pnand %p8094_p1, %p8402_p8 }
  0x92   : > { %p8097_p13 = pneg %p8096_p3 }
  0x94   : > { %p8102_p2 = pnand %p8100_p0, %p8097_p13 }
  0x96   : > { %8105 = shalt.err (!%p8102_p2)
}
  0x97   : > { %s8106_s9 = scalar_lea.vmem %s391_s10, 16  ;;  %s8113_s14 = scalar_lea.vmem %s391_s10, 32 }
  0x98   : > { %p8107_p5 = scmp.ne.s32.totalorder %s391_s10, %s8106_s9  ;;  %p8114_p4 = scmp.lt.s32.totalorder %s391_s10, %s391_s10 }
  0x99   : > { %p8115_p10 = scmp.lt.s32.totalorder %s8113_s14, %s8106_s9 }
  0x9a   : > { %p8109_p7 = pnand %p8107_p5, %p8402_p8 }
  0x9b   : > { %p8116_p11 = por %p8115_p10, %p8114_p4 }
  0x9c   : > { %p8110_p9 = pneg %p8109_p7 }
  0x9e   : > { %p8117_p12 = pnand %p8116_p11, %p8110_p9 }
  0xa0   : > { %8120 = shalt.err (!%p8117_p12)
}
  0xa1   : > { %7244 = dma.hbm_to_vmem [thread:$0]  (!%p8386_p6), %s9765_s7, 16, %s391_s10, [#allocation12]  }
  0xa2   : > { %s6155_s25 = sadd.s32 4294967294, %s8263_s24   ;;  %s8510_s13 = sadd.s32 1, %s8263_s24  }
  0xa3   : > { %s40_s11 = sadd.s32 1, %s8259_s23  ;;  %s37_s12 = ssub.s32 %s8263_s24, %s8510_s13 }
  0xa4   : > { %p47_p8 = scmp.ne.s32.totalorder %s8259_s23, %s8255_s22  ;;  %p38_p1 = scmp.eq.s32.totalorder %s37_s12, 0 }
  0xa5   : > { %p48_p3 = scmp.eq.s32.totalorder %s8263_s24, 0  ;;  %p53_p13 = scmp.ne.s32.totalorder %s8255_s22, %s8251_s21 }
  0xa6   : > { %p313_p0 = scmp.eq.s32.totalorder %s8370_s27, 1  ;;  %p9766_p5 = scmp.eq.s32.totalorder %s8370_s27, 0 }
  0xa7   : > { %s8522_s17 = scalar_select %p38_p1, %s8259_s23, %s40_s11  }
  0xa8   : > { %p49_p2 = por %p48_p3, %p47_p8  ;;  %p8526_p7 = por %p9766_p5, %p53_p13 }
  0xa9   : > { %p8530_p6 = por %p313_p0, %p47_p8  ;;  %p319_p9 = scmp.eq.s32.totalorder %s6155_s25, 1 }
  0xaa   : > { %p7261_p4 = scmp.lt.s32.totalorder %s8263_s24, 2  ;;  %s8536_s19 = sand.u32 1, %s8259_s23  }
  0xab   : > { %s9768_s10 = scalar_select %p8530_p6, 1, 0 }
  0xac   : > { %p8538_p10 = por %p319_p9, %p53_p13  ;;  %s6163_s15 = sshll.u32 %s8536_s19, 9 }
  0xad   : > { %s6594_s9 = sshll.u32 %s8263_s24, 13  ;;  %s9770_s0 = sld [smem:[#allocation23_spill]] }
  0xae   : > { %s9769_s20 = scalar_select %p8538_p10, 1, 0 }
  0xaf   : > { %s417_s25 = scalar_lea.vmem [#allocation2], %s6163_s15  ;;  %p8549_p11 = pnand %p7261_p4, %p49_p2 }
  0xb0   : > { %s425_s11 = sshll.u32 %s417_s25, 4  ;;  %s8553_s11 = int_to_ptr.vmem [resolvable:$true] %s425_s11 }
  0xb1   : > { %p8123_p8 = pneg %p8549_p11 }
  0xb3   : > { %s8547_s26 = scalar_lea.hbm %s9770_s0, %s6594_s9  ;;  %s8126_s14 = scalar_lea.hbm %s9770_s0, 16384 }
  0xb4   : > { %s8121_s30 = scalar_lea.hbm %s8547_s26, 8192  ;;  %p8127_p13 = scmp.lt.u32.totalorder %s8547_s26, %s9770_s0 }
  0xb5   : > { %p8122_p12 = scmp.ne.s32.totalorder %s8547_s26, %s8121_s30  ;;  %p8128_p0 = scmp.lt.u32.totalorder %s8126_s14, %s8121_s30 }
  0xb6   : > { %p8130_p5 = scmp.lt.u32.totalorder %s8121_s30, %s8547_s26 }
  0xb7   : > { %p8124_p1 = pnand %p8123_p8, %p8122_p12  ;;  %p8129_p2 = por %p8128_p0, %p8127_p13 }
  0xb9   : > { %p8125_p3 = pneg %p8124_p1  ;;  %p8131_p9 = por %p8130_p5, %p8129_p2 }
  0xbb   : > { %p8132_p4 = pnand %p8131_p9, %p8125_p3 }
  0xbd   : > { %8135 = shalt.err (!%p8132_p4)
}
  0xbe   : > { %s8136_s29 = scalar_lea.vmem %s8553_s11, 8192  ;;  %s8274_s9 = smov [#allocation2]  }
  0xbf   : > { %p8137_p12 = scmp.ne.s32.totalorder %s8553_s11, %s8136_s29  ;;  %s8141_s15 = sshll.u32 %s8274_s9, 4  ;;  %s8142_s15 = int_to_ptr.vmem [resolvable:$false] %s8141_s15 }
  0xc0   : > { %s8143_s16 = scalar_lea.vmem %s8142_s15, 16384  ;;  %p8144_p6 = scmp.lt.s32.totalorder %s8553_s11, %s8142_s15 }
  0xc1   : > { %p8139_p1 = pnand %p8137_p12, %p8123_p8  ;;  %p8145_p13 = scmp.lt.s32.totalorder %s8143_s16, %s8136_s29 }
  0xc3   : > { %p8140_p10 = pneg %p8139_p1  ;;  %p8146_p0 = por %p8145_p13, %p8144_p6 }
  0xc5   : > { %p8147_p2 = pnand %p8146_p0, %p8140_p10 }
  0xc7   : > { %8150 = shalt.err (!%p8147_p2)
}
  0xc8   : > { %s8275_s30 = smov 512   ;;  %s8276_s14 = smov 32  }
  0xc9   : > { %s9772_s25 = scalar_lea.sflag [#allocation3], %s8536_s19  ;;  %s435_s9 = sand.u32 1, %s8263_s24  }
  0xca   : > { %7248 = dma.hbm_to_vmem [thread:$0]  (!%p8549_p11), %s8547_s26, 8192, %s8553_s11, %s9772_s25, %s8275_s30, %s8275_s30, %s8276_s14  }
  0xcb   : > { %s6167_s0 = sshll.u32 %s8536_s19, 7  ;;  %s6596_s15 = sshll.u32 %s8263_s24, 11 }
  0xcc   : > { %s439_s29 = scalar_lea.vmem [#allocation5], %s6167_s0  ;;  %s8589_s4 = scalar_lea.hbm %s9725_s1, %s6596_s15 }
  0xcd   : > { %s447_s16 = sshll.u32 %s439_s29, 4  ;;  %s8593_s5 = scalar_lea.sflag [#allocation6], %s435_s9  ;;  %s8591_s16 = int_to_ptr.vmem [resolvable:$true] %s447_s16 }
  0xce   : > { %s8151_s7 = scalar_lea.hbm %s8589_s4, 2048  ;;  %s8156_s2 = scalar_lea.hbm %s9725_s1, 4096 }
  0xcf   : > { %p8152_p6 = scmp.ne.s32.totalorder %s8589_s4, %s8151_s7  ;;  %p8157_p5 = scmp.lt.u32.totalorder %s8589_s4, %s9725_s1 }
  0xd0   : > { %p8158_p9 = scmp.lt.u32.totalorder %s8156_s2, %s8151_s7  ;;  %p8160_p12 = scmp.lt.u32.totalorder %s8151_s7, %s8589_s4 }
  0xd1   : > { %p8154_p10 = pnand %p8152_p6, %p8123_p8 }
  0xd2   : > { %p8159_p4 = por %p8158_p9, %p8157_p5 }
  0xd3   : > { %p8155_p3 = pneg %p8154_p10 }
  0xd4   : > { %p8161_p1 = por %p8160_p12, %p8159_p4 }
  0xd6   : > { %p8162_p13 = pnand %p8161_p1, %p8155_p3 }
  0xd8   : > { %8165 = shalt.err (!%p8162_p13)
}
  0xd9   : > { %s8166_s11 = scalar_lea.vmem %s8591_s16, 2048  ;;  %s8277_s30 = smov [#allocation5]  }
  0xda   : > { %p8167_p0 = scmp.ne.s32.totalorder %s8591_s16, %s8166_s11  ;;  %s8171_s14 = sshll.u32 %s8277_s30, 4  ;;  %s8172_s14 = int_to_ptr.vmem [resolvable:$false] %s8171_s14 }
  0xdb   : > { %s8173_s25 = scalar_lea.vmem %s8172_s14, 4096  ;;  %p8174_p10 = scmp.lt.s32.totalorder %s8591_s16, %s8172_s14 }
  0xdc   : > { %p8169_p2 = pnand %p8167_p0, %p8123_p8  ;;  %p8175_p5 = scmp.lt.s32.totalorder %s8173_s25, %s8166_s11 }
  0xde   : > { %p8170_p6 = pneg %p8169_p2  ;;  %p8176_p9 = por %p8175_p5, %p8174_p10 }
  0xe0   : > { %p8177_p4 = pnand %p8176_p9, %p8170_p6 }
  0xe2   : > { %8180 = shalt.err (!%p8177_p4)
}
  0xe3   : > { %s9773_s7 = smov 8   ;;  %s9774_s9 = smov 128  }
  0xe4   : > { %7251 = dma.hbm_to_vmem [thread:$0]  (!%p8549_p11), %s8589_s4, 2048, %s8591_s16, %s8593_s5, %s9774_s9, %s9774_s9, %s9773_s7  }
  0xe5   : > { %p9775_p8 = scmp.ne.s32.totalorder %s9758_s28, 0 }
  0xe7   : > { %459 = sbr.rel (%p9775_p8) target bundleno = 2457 (0x999), region = 68 }
  0xee   : > { %s8625_s15 = sand.u32 1, %s8255_s22  }
  0xef   : > { %s6172_s29 = sshll.u32 %s8625_s15, 9  ;;  %s462_s0 = scalar_lea.sflag [#allocation3], %s8625_s15 }
  0xf0   : > { %s8629_s19 = scalar_lea.vmem [#allocation2], %s6172_s29 }
  0xf1   : > { %8226 = dma.done.wait (%p8526_p7), %s462_s0, 8192  }
  0xf2   : > { %8228 = vsyncadd (%p8526_p7), %s462_s0, 4294959104  ;;  %s470_s4 = sand.u32 1, %s8370_s27   ;;  %s6173_s5 = sshll.u32 %s8625_s15, 7 }
  0xf3   : > { %s471_s28 = scalar_lea.sflag [#allocation6], %s470_s4  ;;  %s8639_s12 = scalar_lea.vmem [#allocation5], %s6173_s5 }
  0xf4   : > { %8230 = dma.done.wait (%p8526_p7), %s471_s28, 2048  }
  0xf5   : > { %8232 = vsyncadd (%p8526_p7), %s471_s28, 4294965248  ;;  %p9776_p11 = scmp.eq.s32.totalorder %s8370_s27, 0 }
  0xf7   : > { %8234 = dma.done.wait (%p9776_p11), [#allocation6], 32768   ;;  %p9777_p3 = pmov %p9776_p11 }
  0xf9   : > { %8236 = vsyncadd (%p9777_p3), [#allocation6], 4294934528  ;;  %p9778_p12 = pmov %p9777_p3 }
  0xfa   : > { %p9779_p1 = pmov %p9777_p3 }
  0xfb   : > { %8238 = dma.done.wait (%p9778_p12), [#allocation9], 8256  }
  0xfc   : > { %8240 = vsyncadd (%p9779_p1), [#allocation9], 4294959040  ;;  %p9780_p13 = pmov %p9779_p1 }
  0xfd   : > { %p9781_p0 = pmov %p9779_p1 }
  0xfe   : > { %8242 = dma.done.wait (%p9780_p13), [#allocation12], 48  }
  0xff   : > { %8244 = vsyncadd (%p9781_p0), [#allocation12], 4294967248  ;;  %vm656_vm0 = vcmask 261120   ;;  %v642_v0 = vld [vmem:[%s8639_s12 + $0x10] sm:$0xff]  ;;  %v8659_v1 = vld [vmem:[%s8639_s12] sm:$0xff]  ;;  %v8278_v56 = vmov 0  }
 0x100   : > { %v8662_v2 = vld [vmem:[%s8639_s12 + $0x18] sm:$0xff]  ;;  %v663_v3 = vsel %vm656_vm0, %v642_v0, 0.0  ;;  %v657_v4 = vsel %vm656_vm0, %v8659_v1, 0.0  ;;  %v8668_v5 = vld [vmem:[%s8639_s12 + $0x8] sm:$0xff]  ;;  %v644_v9 = vld [vmem:[%s8639_s12 + $0x20] sm:$0xff]  ;;  %847 = vmatprep.mubr.bf16.mxu0 %v8278_v56  ;;  %900 = vmatprep.mubr.bf16.mxu1 %v8278_v56  ;;  %s9787_s25 = sld [smem:[#allocation29_spill]] }
 0x101   : > { %664 = vadd.xlane.f32.xlu1 %v663_v3  ;;  %658 = vadd.xlane.f32.xlu0 %v657_v4  ;;  %v666_v6 = vsel %vm656_vm0, %v8662_v2, 0.0  ;;  %v660_v7 = vsel %vm656_vm0, %v8668_v5, 0.0  ;;  %v645_v8 = vld [vmem:[%s8639_s12 + $0x28] sm:$0xff]  ;;  %v647_v10 = vld [vmem:[%s8639_s12 + $0x38] sm:$0xff]  ;;  %v646_v11 = vld [vmem:[%s8639_s12 + $0x30] sm:$0xff]  ;;  %v669_v13 = vsel %vm656_vm0, %v644_v9, 0.0 }
 0x102   : > { %v672_v12 = vsel %vm656_vm0, %v645_v8, 0.0  ;;  %v649_v14 = vld [vmem:[%s8639_s12 + $0x48] sm:$0xff]  ;;  %v648_v15 = vld [vmem:[%s8639_s12 + $0x40] sm:$0xff]  ;;  %v678_v16 = vsel %vm656_vm0, %v647_v10, 0.0  ;;  %v675_v17 = vsel %vm656_vm0, %v646_v11, 0.0  ;;  %v651_v18 = vld [vmem:[%s8639_s12 + $0x58] sm:$0xff] }
 0x103   : > { %v650_v19 = vld [vmem:[%s8639_s12 + $0x50] sm:$0xff]  ;;  %v684_v20 = vsel %vm656_vm0, %v649_v14, 0.0  ;;  %v681_v21 = vsel %vm656_vm0, %v648_v15, 0.0  ;;  %v653_v22 = vld [vmem:[%s8639_s12 + $0x68] sm:$0xff]  ;;  %v652_v23 = vld [vmem:[%s8639_s12 + $0x60] sm:$0xff]  ;;  %v690_v24 = vsel %vm656_vm0, %v651_v18, 0.0 }
 0x104   : > { %v687_v25 = vsel %vm656_vm0, %v650_v19, 0.0  ;;  %v655_v26 = vld [vmem:[%s8639_s12 + $0x78] sm:$0xff]  ;;  %v654_v27 = vld [vmem:[%s8639_s12 + $0x70] sm:$0xff]  ;;  %v696_v28 = vsel %vm656_vm0, %v653_v22, 0.0  ;;  %v693_v29 = vsel %vm656_vm0, %v652_v23, 0.0  ;;  %v545_v32 = vld [vmem:[%s8629_s19 + $0x8] sm:$0xff] }
 0x105   : > { %667 = vadd.xlane.f32.xlu1 %v666_v6  ;;  %661 = vadd.xlane.f32.xlu0 %v660_v7  ;;  %v702_v30 = vsel %vm656_vm0, %v655_v26, 0.0  ;;  %v699_v31 = vsel %vm656_vm0, %v654_v27, 0.0  ;;  %v549_v33 = vld [vmem:[%s8629_s19 + $0x28] sm:$0xff]  ;;  %v547_v34 = vld [vmem:[%s8629_s19 + $0x18] sm:$0xff]  ;;  %v544_v37 = vld [vmem:[%s8629_s19] sm:$0xff]  ;;  %s9788_s29 = sld [smem:[#allocation31_spill]] }
 0x106   : > { %v8701_v35 = vpack.c.bf16 %v549_v33, %v545_v32  ;;  %v551_v36 = vld [vmem:[%s8629_s19 + $0x38] sm:$0xff]  ;;  %v548_v38 = vld [vmem:[%s8629_s19 + $0x20] sm:$0xff]  ;;  %v546_v41 = vld [vmem:[%s8629_s19 + $0x10] sm:$0xff]  ;;  %s8279_s0 = smov 6   ;;  %s9617_s4 = scalar_lea.vmem [#allocation14], %s6173_s5 }
 0x107   : > { %v8706_v39 = vpack.c.bf16 %v551_v36, %v547_v34  ;;  %v8708_v40 = vpack.c.bf16 %v548_v38, %v544_v37  ;;  %v550_v42 = vld [vmem:[%s8629_s19 + $0x30] sm:$0xff]  ;;  %v553_v44 = vld [vmem:[%s8629_s19 + $0x48] sm:$0xff]  ;;  %v555_v46 = vld [vmem:[%s8629_s19 + $0x58] sm:$0xff]  ;;  %s6598_s5 = sshll.u32 %s8370_s27, 11  ;;  %s6012_s28 = sshll.u32 %s9617_s4, 4  ;;  %s9676_s28 = int_to_ptr.vmem [resolvable:$true] %s6012_s28 }
 0x108   : > { %815 = vmatprep.subr.bf16.mxu0 %v8701_v35  ;;  %v8713_v43 = vpack.c.bf16 %v550_v42, %v546_v41  ;;  %v557_v45 = vld [vmem:[%s8629_s19 + $0x68] sm:$0xff]  ;;  %v559_v48 = vld [vmem:[%s8629_s19 + $0x78] sm:$0xff]  ;;  %v552_v49 = vld [vmem:[%s8629_s19 + $0x40] sm:$0xff]  ;;  %s9791_s2 = sld [smem:[#allocation32_spill]]  ;;  %s5998_s27 = scalar_lea.sflag [#allocation4], %s8625_s15 }
 0x109   : > { %673 = vadd.xlane.f32.xlu1 %v672_v12  ;;  %670 = vadd.xlane.f32.xlu0 %v669_v13  ;;  %v8721_v47 = vpack.c.bf16 %v557_v45, %v553_v44  ;;  %v556_v50 = vld [vmem:[%s8629_s19 + $0x60] sm:$0xff]  ;;  %v8726_v51 = vpack.c.bf16 %v559_v48, %v555_v46  ;;  %v554_v53 = vld [vmem:[%s8629_s19 + $0x50] sm:$0xff]  ;;  %v561_v57 = vld [vmem:[%s8629_s19 + $0x88] sm:$0xff]  ;;  %s8181_s26 = scalar_lea.vmem %s9676_s28, 2048  ;;  %p9792_p2 = scmp.ne.s32.totalorder %s9768_s10, 0 }
 0x10a   : > { %868 = vmatprep.subr.bf16.mxu1 %v8706_v39  ;;  %816 = vmatpush1.bf16.msra.mxu0 %v8708_v40  ;;  %v8728_v52 = vpack.c.bf16 %v556_v50, %v552_v49  ;;  %v558_v54 = vld [vmem:[%s8629_s19 + $0x70] sm:$0xff]  ;;  %v565_v58 = vld [vmem:[%s8629_s19 + $0xa8] sm:$0xff]  ;;  %v563_v59 = vld [vmem:[%s8629_s19 + $0x98] sm:$0xff]  ;;  %p8182_p7 = scmp.ne.s32.totalorder %s9676_s28, %s8181_s26  ;;  %s8281_s11 = smov [#allocation14]  }
 0x10b   : > { %869 = vmatpush1.bf16.msra.mxu1 %v8713_v43  ;;  %817 = vmatprep.subr.bf16.mxu0 %v8721_v47  ;;  %v8733_v55 = vpack.c.bf16 %v558_v54, %v554_v53  ;;  %v8743_v60 = vpack.c.bf16 %v565_v58, %v561_v57  ;;  %v567_v61 = vld [vmem:[%s8629_s19 + $0xb8] sm:$0xff]  ;;  %v560_v15 = vld [vmem:[%s8629_s19 + $0x80] sm:$0xff]  ;;  %v562_v18 = vld [vmem:[%s8629_s19 + $0x90] sm:$0xff]  ;;  %s8185_s30 = sshll.u32 %s8281_s11, 4  ;;  %s8186_s30 = int_to_ptr.vmem [resolvable:$false] %s8185_s30 }
 0x10c   : > { %870 = vmatprep.subr.bf16.mxu1 %v8726_v51  ;;  %v8746_v62 = vpack.c.bf16 %v567_v61, %v563_v59  ;;  %v566_v19 = vld [vmem:[%s8629_s19 + $0xb0] sm:$0xff]  ;;  %v569_v22 = vld [vmem:[%s8629_s19 + $0xc8] sm:$0xff]  ;;  %v575_v27 = vld [vmem:[%s8629_s19 + $0xf8] sm:$0xff]  ;;  %p8183_p6 = pnand %p8182_p7, %p9792_p2  ;;  %s8187_s14 = scalar_lea.vmem %s8186_s30, 4096 }
 0x10d   : > { %679 = vadd.xlane.f32.xlu1 %v678_v16  ;;  %676 = vadd.xlane.f32.xlu0 %v675_v17  ;;  %v564_v16 = vld [vmem:[%s8629_s19 + $0xa0] sm:$0xff]  ;;  %v573_v23 = vld [vmem:[%s8629_s19 + $0xe8] sm:$0xff]  ;;  %v570_v36 = vld [vmem:[%s8629_s19 + $0xd0] sm:$0xff]  ;;  %v8778_v44 = vpack.c.bf16 %v566_v19, %v562_v18  ;;  %p8188_p5 = scmp.lt.s32.totalorder %s9676_s28, %s8186_s30  ;;  %p8189_p9 = scmp.lt.s32.totalorder %s8187_s14, %s8181_s26 }
 0x10e   : > { %818 = vmatpush1.bf16.msra.mxu0 %v8728_v52  ;;  %v8771_v32 = vpack.c.bf16 %v564_v16, %v560_v15  ;;  %v568_v33 = vld [vmem:[%s8629_s19 + $0xc0] sm:$0xff]  ;;  %v574_v37 = vld [vmem:[%s8629_s19 + $0xf0] sm:$0xff]  ;;  %v577_v45 = vld [vmem:[%s8629_s19 + $0x108] sm:$0xff]  ;;  %v8784_v49 = vpack.c.bf16 %v573_v23, %v569_v22  ;;  %s9674_s3 = scalar_lea.hbm %s9791_s2, %s6598_s5  ;;  %p8184_p10 = pneg %p8183_p6 }
 0x10f   : > { %871 = vmatpush1.bf16.msra.mxu1 %v8733_v55  ;;  %927 = vmatprep.subr.bf16.mxu0 %v8743_v60  ;;  %v572_v34 = vld [vmem:[%s8629_s19 + $0xe0] sm:$0xff]  ;;  %v579_v46 = vld [vmem:[%s8629_s19 + $0x118] sm:$0xff]  ;;  %v8799_v59 = vpack.c.bf16 %v574_v37, %v570_v36  ;;  %v582_v15 = vld [vmem:[%s8629_s19 + $0x130] sm:$0xff]  ;;  %p8190_p4 = por %p8189_p9, %p8188_p5 }
 0x110   : > { %980 = vmatprep.subr.bf16.mxu1 %v8746_v62  ;;  %v583_v48 = vld [vmem:[%s8629_s19 + $0x138] sm:$0xff]  ;;  %v8797_v58 = vpack.c.bf16 %v572_v34, %v568_v33  ;;  %v7969_v16 = vld [vmem:[%s8639_s12 + $0x28] sm:$0xff]  ;;  %v7970_v18 = vld [vmem:[%s8639_s12 + $0x20] sm:$0xff] }
 0x111   : > { %685 = vadd.xlane.f32.xlu1 %v684_v20  ;;  %682 = vadd.xlane.f32.xlu0 %v681_v21  ;;  %v585_v22 = vld [vmem:[%s8629_s19 + $0x148] sm:$0xff]  ;;  %v588_v37 = vld [vmem:[%s8629_s19 + $0x160] sm:$0xff]  ;;  %p8191_p8 = pnand %p8190_p4, %p8184_p10 }
 0x112   : > { %v589_v23 = vld [vmem:[%s8629_s19 + $0x168] sm:$0xff] }
 0x115   : > { %691 = vadd.xlane.f32.xlu1 %v690_v24  ;;  %688 = vadd.xlane.f32.xlu0 %v687_v25  ;;  %v571_v24 = vld [vmem:[%s8629_s19 + $0xd8] sm:$0xff] }
 0x116   : > { %v8786_v50 = vpack.c.bf16 %v575_v27, %v571_v24  ;;  %v587_v24 = vld [vmem:[%s8629_s19 + $0x158] sm:$0xff] }
 0x119   : > { %697 = vadd.xlane.f32.xlu1 %v696_v28  ;;  %694 = vadd.xlane.f32.xlu0 %v693_v29 }
 0x11d   : > { %703 = vadd.xlane.f32.xlu1 %v702_v30  ;;  %700 = vadd.xlane.f32.xlu0 %v699_v31 }
 0x18e   : > { %v665_v63 = vpop.xlane.xlu1 %664  ;;  %v659_v0 = vpop.xlane.xlu0 %658 }
 0x18f   : > { %v721_v3 = vmax.f32 %v659_v0, 1.0  ;;  %v723_v9 = vmax.f32 %v665_v63, 1.0  ;;  %vm705_vm1 = vcmp.gt.f32.partialorder %v659_v0, 0.0  ;;  %vm707_vm4 = vcmp.gt.f32.partialorder %v665_v63, 0.0 }
 0x190   : > { %v8809_v0 = vpack.c.bf16 %v583_v48, %v579_v46  ;;  %v593_v46 = vld [vmem:[%s8629_s19 + $0x188] sm:$0xff] }
 0x191   : > { %7904 = vrcp.f32 %v721_v3  ;;  %v597_v48 = vld [vmem:[%s8629_s19 + $0x1a8] sm:$0xff] }
 0x192   : > { %v668_v4 = vpop.xlane.xlu1 %667  ;;  %v662_v6 = vpop.xlane.xlu0 %661 }
 0x193   : > { %v722_v7 = vmax.f32 %v662_v6, 1.0  ;;  %v724_v8 = vmax.f32 %v668_v4, 1.0  ;;  %vm706_vm2 = vcmp.gt.f32.partialorder %v662_v6, 0.0  ;;  %vm708_vm3 = vcmp.gt.f32.partialorder %v668_v4, 0.0  ;;  %v7968_v4 = vld [vmem:[%s8639_s12 + $0x10] sm:$0xff] }
 0x195   : > { %7906 = vrcp.f32 %v722_v7 }
 0x196   : > { %7908 = vrcp.f32 %v724_v8  ;;  %v8750_v10 = vpop.xlane.xlu1 %673  ;;  %v8752_v11 = vpop.xlane.xlu0 %670 }
 0x197   : > { %7910 = vrcp.f32 %v723_v9  ;;  %v726_v12 = vmax.f32 %v8750_v10, 1.0  ;;  %v725_v14 = vmax.f32 %v8752_v11, 1.0  ;;  %vm710_vm5 = vcmp.gt.f32.partialorder %v8750_v10, 0.0 }
 0x198   : > { %vm709_vm6 = vcmp.gt.f32.partialorder %v8752_v11, 0.0 }
 0x199   : > { %7912 = vrcp.f32 %v726_v12  ;;  %v576_v12 = vld [vmem:[%s8629_s19 + $0x100] sm:$0xff] }
 0x19a   : > { %7914 = vrcp.f32 %v725_v14  ;;  %v8760_v21 = vpop.xlane.xlu1 %679  ;;  %v8765_v26 = vpop.xlane.xlu0 %676  ;;  %v578_v14 = vld [vmem:[%s8629_s19 + $0x110] sm:$0xff] }
 0x19b   : > { %v7905_v13 = vpop.eup %7904  ;;  %v728_v31 = vmax.f32 %v8760_v21, 1.0  ;;  %v727_v42 = vmax.f32 %v8765_v26, 1.0  ;;  %vm712_vm7 = vcmp.gt.f32.partialorder %v8760_v21, 0.0  ;;  %vm711_vm8 = vcmp.gt.f32.partialorder %v8765_v26, 0.0  ;;  %v584_v21 = vld [vmem:[%s8629_s19 + $0x140] sm:$0xff] }
 0x19c   : > { %v769_v17 = vsel %vm705_vm1, %v7905_v13, 0.0  ;;  %v580_v13 = vld [vmem:[%s8629_s19 + $0x120] sm:$0xff]  ;;  %v8842_v36 = vpack.c.bf16 %v582_v15, %v578_v14 }
 0x19d   : > { %v785_v29 = vmul.f32 %v769_v17, %v8659_v1  ;;  %v581_v1 = vld [vmem:[%s8629_s19 + $0x128] sm:$0xff]  ;;  %7916 = vrcp.f32 %v728_v31  ;;  %v8840_v34 = vpack.c.bf16 %v580_v13, %v576_v12 }
 0x19e   : > { %7918 = vrcp.f32 %v727_v42  ;;  %v8793_v57 = vpop.xlane.xlu1 %685  ;;  %v8803_v63 = vpop.xlane.xlu0 %682 }
 0x19f   : > { %v7907_v20 = vpop.eup %7906  ;;  %v730_v7 = vmax.f32 %v8793_v57, 1.0  ;;  %v729_v9 = vmax.f32 %v8803_v63, 1.0  ;;  %vm714_vm9 = vcmp.gt.f32.partialorder %v8793_v57, 0.0  ;;  %vm713_vm10 = vcmp.gt.f32.partialorder %v8803_v63, 0.0  ;;  %v7973_v57 = vld [vmem:[%s8639_s12 + $0x48] sm:$0xff] }
 0x1a0   : > { %v770_v25 = vsel %vm706_vm2, %v7907_v20, 0.0  ;;  %v7909_v28 = vpop.eup %7908  ;;  %vm5004_vm2 = vcmask 523264  }
 0x1a1   : > { %v786_v30 = vmul.f32 %v770_v25, %v8668_v5  ;;  %v7911_v38 = vpop.eup %7910  ;;  %v772_v5 = vsel %vm708_vm3, %v7909_v28, 0.0  ;;  %7920 = vrcp.f32 %v730_v7  ;;  %v591_v25 = vld [vmem:[%s8629_s19 + $0x178] sm:$0xff]  ;;  %vm5222_vm3 = vcmask 23552  }
 0x1a2   : > { %v771_v53 = vsel %vm707_vm4, %v7911_v38, 0.0  ;;  %v788_v54 = vmul.f32 %v772_v5, %v8662_v2  ;;  %v8807_v2 = vpack.c.bf16 %v581_v1, %v577_v45  ;;  %7922 = vrcp.f32 %v729_v9  ;;  %v8828_v20 = vpop.xlane.xlu1 %691  ;;  %v8836_v28 = vpop.xlane.xlu0 %688  ;;  %v586_v45 = vld [vmem:[%s8629_s19 + $0x150] sm:$0xff]  ;;  %v595_v5 = vld [vmem:[%s8629_s19 + $0x198] sm:$0xff] }
 0x1a3   : > { %v801_v41 = vpack.c.bf16 %v786_v30, %v785_v29  ;;  %v7913_v61 = vpop.eup %7912  ;;  %v787_v6 = vmul.f32 %v7968_v4, %v771_v53  ;;  %v732_v30 = vmax.f32 %v8828_v20, 1.0  ;;  %v731_v33 = vmax.f32 %v8836_v28, 1.0  ;;  %v590_v1 = vld [vmem:[%s8629_s19 + $0x170] sm:$0xff]  ;;  %v599_v53 = vld [vmem:[%s8629_s19 + $0x1b8] sm:$0xff] }
 0x1a4   : > { %v7915_v3 = vpop.eup %7914  ;;  %v774_v10 = vsel %vm710_vm5, %v7913_v61, 0.0  ;;  %v8848_v42 = vpack.c.bf16 %v591_v25, %v587_v24  ;;  %v7971_v61 = vld [vmem:[%s8639_s12 + $0x38] sm:$0xff]  ;;  %v7972_v4 = vld [vmem:[%s8639_s12 + $0x30] sm:$0xff]  ;;  %v8876_v12 = vpack.c.bf16 %v599_v53, %v595_v5  ;;  %v592_v24 = vld [vmem:[%s8629_s19 + $0x180] sm:$0xff]  ;;  %vm716_vm11 = vcmp.gt.f32.partialorder %v8828_v20, 0.0 }
 0x1a5   : > { %6180 = vmatmul.mubr.msk.bf16.vlgmr.msra.gmra.mrb[0].mxu0 %vm656_vm0, %v801_v41  ;;  %6182 = vmatmul.mubr.msk.bf16.vlgmr.msra.gmra.mrb[0].mxu1 %vm656_vm0, %v801_v41  ;;  %v802_v8 = vpack.c.bf16 %v788_v54, %v787_v6  ;;  %v773_v11 = vsel %vm709_vm6, %v7915_v3, 0.0  ;;  %v790_v17 = vmul.f32 %v7969_v16, %v774_v10  ;;  %v8846_v41 = vpack.c.bf16 %v589_v23, %v585_v22  ;;  %v596_v25 = vld [vmem:[%s8629_s19 + $0x1a0] sm:$0xff] }
 0x1a6   : > { %857 = vmatprep.mubr.bf16.mxu0 %v8278_v56  ;;  %910 = vmatprep.mubr.bf16.mxu1 %v8278_v56  ;;  %v789_v19 = vmul.f32 %v7970_v18, %v773_v11  ;;  %7924 = vrcp.f32 %v732_v30  ;;  %v8860_v54 = vpack.c.bf16 %v588_v37, %v584_v21  ;;  %v8864_v7 = vpop.xlane.xlu1 %697  ;;  %v8870_v10 = vpop.xlane.xlu0 %694  ;;  %v8874_v11 = vpack.c.bf16 %v597_v48, %v593_v46  ;;  %v594_v30 = vld [vmem:[%s8629_s19 + $0x190] sm:$0xff]  ;;  %v605_v37 = vld [vmem:[%s8629_s19 + $0x1e8] sm:$0xff]  ;;  %v600_v53 = vld [vmem:[%s8629_s19 + $0x1c0] sm:$0xff] }
 0x1a7   : > { %928 = vmatpush1.bf16.msra.mxu0 %v8771_v32  ;;  %981 = vmatpush1.bf16.msra.mxu1 %v8778_v44  ;;  %v7917_v27 = vpop.eup %7916  ;;  %7926 = vrcp.f32 %v731_v33  ;;  %v734_v14 = vmax.f32 %v8864_v7, 1.0  ;;  %v733_v16 = vmax.f32 %v8870_v10, 1.0  ;;  %v601_v33 = vld [vmem:[%s8629_s19 + $0x1c8] sm:$0xff]  ;;  %vm715_vm12 = vcmp.gt.f32.partialorder %v8836_v28, 0.0  ;;  %v604_v20 = vld [vmem:[%s8629_s19 + $0x1e0] sm:$0xff] }
 0x1a8   : > { %929 = vmatprep.subr.bf16.mxu0 %v8784_v49  ;;  %982 = vmatprep.subr.bf16.mxu1 %v8786_v50  ;;  %v7919_v29 = vpop.eup %7918  ;;  %v803_v31 = vpack.c.bf16 %v790_v17, %v789_v19  ;;  %v776_v38 = vsel %vm712_vm7, %v7917_v27, 0.0  ;;  %v7974_v19 = vld [vmem:[%s8639_s12 + $0x40] sm:$0xff]  ;;  %v8908_v48 = vpack.c.bf16 %v596_v25, %v592_v24  ;;  %v8914_v28 = vpack.c.bf16 %v605_v37, %v601_v33 }
 0x1a9   : > { %v775_v26 = vsel %vm711_vm8, %v7919_v29, 0.0  ;;  %v792_v3 = vmul.f32 %v7971_v61, %v776_v38  ;;  %7928 = vrcp.f32 %v734_v14  ;;  %v603_v38 = vld [vmem:[%s8629_s19 + $0x1d8] sm:$0xff]  ;;  %vm718_vm13 = vcmp.gt.f32.partialorder %v8864_v7, 0.0  ;;  %v7977_v7 = vld [vmem:[%s8639_s12 + $0x68] sm:$0xff] }
 0x1aa   : > { %v791_v6 = vmul.f32 %v7972_v4, %v775_v26  ;;  %7930 = vrcp.f32 %v733_v16  ;;  %v8892_v23 = vpop.xlane.xlu1 %703  ;;  %v8896_v29 = vpop.xlane.xlu0 %700  ;;  %v607_v26 = vld [vmem:[%s8629_s19 + $0x1f8] sm:$0xff]  ;;  %v7976_v16 = vld [vmem:[%s8639_s12 + $0x50] sm:$0xff]  ;;  %vm717_vm14 = vcmp.gt.f32.partialorder %v8870_v10, 0.0  ;;  %v7978_v10 = vld [vmem:[%s8639_s12 + $0x60] sm:$0xff]  ;;  %vm5239_vm4 = vcmask 48128  }
 0x1ab   : > { %930 = vmatpush1.bf16.msra.mxu0 %v8797_v58  ;;  %983 = vmatpush1.bf16.msra.mxu1 %v8799_v59  ;;  %v7921_v9 = vpop.eup %7920  ;;  %v735_v46 = vmax.f32 %v8896_v29, 1.0  ;;  %v8916_v4 = vpack.c.bf16 %v607_v26, %v603_v38  ;;  %v7975_v14 = vld [vmem:[%s8639_s12 + $0x58] sm:$0xff]  ;;  %vm720_vm15 = vcmp.gt.f32.partialorder %v8892_v23, 0.0  ;;  %vm719_vm1 = vcmp.gt.f32.partialorder %v8896_v29, 0.0  ;;  %v7396_v38 = vld [vmem:[#allocation7] ss:$16 sps:$4 sm:$0xff]  }
 0x1ac   : > { %1039 = vmatprep.subr.bf16.mxu0 %v8807_v2  ;;  %1092 = vmatprep.subr.bf16.mxu1 %v8809_v0  ;;  %v7923_v13 = vpop.eup %7922  ;;  %v804_v15 = vpack.c.bf16 %v792_v3, %v791_v6  ;;  %v778_v17 = vsel %vm714_vm9, %v7921_v9, 0.0  ;;  %v602_v6 = vld [vmem:[%s8629_s19 + $0x1d0] sm:$0xff]  ;;  %v7399_v26 = vld [vmem:[#allocation7 + $0x8] ss:$16 sps:$4 sm:$0xff]   ;;  %vm5416_vm5 = vcmask 72704  }
 0x1ad   : > { %6181 = vmatmul.mubr.msk.bf16.gmra.mrb[4].mxu0 %vm656_vm0, %v802_v8  ;;  %6183 = vmatmul.mubr.msk.bf16.gmra.mrb[4].mxu1 %vm656_vm0, %v802_v8  ;;  %v8868_v8 = vpack.c.bf16 %v590_v1, %v586_v45  ;;  %v777_v18 = vsel %vm713_vm10, %v7923_v13, 0.0  ;;  %v794_v63 = vmul.f32 %v7973_v57, %v778_v17  ;;  %v736_v45 = vmax.f32 %v8892_v23, 1.0  ;;  %9782 = vst [vmem:[#allocation21_spill] sm:$0xff] %v8916_v4  ;;  %v606_v9 = vld [vmem:[%s8629_s19 + $0x1f0] sm:$0xff]  ;;  %vm9495_vm6 = vmpackc.low %vm5416_vm5, %vm5416_vm5 }
 0x1ae   : > { %959 = vmatprep.mubr.bf16.mxu0 %v8278_v56  ;;  %1012 = vmatprep.mubr.bf16.mxu1 %v8278_v56  ;;  %v793_v22 = vmul.f32 %v7974_v19, %v777_v18  ;;  %v8924_v13 = vpack.c.bf16 %v604_v20, %v600_v53  ;;  %v8930_v18 = vpack.c.bf16 %v606_v9, %v602_v6  ;;  %v7401_v19 = vld [vmem:[#allocation7 + $0xc] ss:$16 sps:$4 sm:$0xff]   ;;  %v7980_v23 = vld [vmem:[%s8639_s12 + $0x70] sm:$0xff]  ;;  %v7405_v6 = vld [vmem:[#allocation7 + $0x28] ss:$16 sps:$4 sm:$0xff]  }
 0x1af   : > { %7932 = vrcp.f32 %v736_v45  ;;  %v7407_v53 = vld [vmem:[#allocation7 + $0x2c] ss:$16 sps:$4 sm:$0xff]   ;;  %v7402_v29 = vld [vmem:[#allocation7 + $0x20] ss:$16 sps:$4 sm:$0xff]   ;;  %v7410_v9 = vld [vmem:[#allocation7 + $0x44] ss:$16 sps:$4 sm:$0xff]  }
 0x1b0   : > { %v7925_v27 = vpop.eup %7924  ;;  %v805_v1 = vpack.c.bf16 %v794_v63, %v793_v22  ;;  %7934 = vrcp.f32 %v735_v46  ;;  %9783 = vst [vmem:[#allocation22_spill] sm:$0xff] %v8930_v18  ;;  %v7398_v63 = vld [vmem:[#allocation7 + $0x4] ss:$16 sps:$4 sm:$0xff]   ;;  %v7979_v20 = vld [vmem:[%s8639_s12 + $0x78] sm:$0xff]  ;;  %s9786_s12 = sld [smem:[#allocation30_spill]] }
 0x1b1   : > { %v7927_v21 = vpop.eup %7926  ;;  %v780_v61 = vsel %vm716_vm11, %v7925_v27, 0.0  ;;  %v7404_v46 = vld [vmem:[#allocation7 + $0x24] ss:$16 sps:$4 sm:$0xff]  }
 0x1b2   : > { %v779_v3 = vsel %vm715_vm12, %v7927_v21, 0.0 }
 0x1b3   : > { %v795_v17 = vmul.f32 %v7976_v16, %v779_v3  ;;  %v7929_v57 = vpop.eup %7928  ;;  %v7408_v16 = vld [vmem:[#allocation7 + $0x40] ss:$16 sps:$4 sm:$0xff]  }
 0x1b4   : > { %v7931_v22 = vpop.eup %7930  ;;  %v782_v25 = vsel %vm718_vm13, %v7929_v57, 0.0  ;;  %v7419_v57 = vld [vmem:[#allocation7 + $0x6c] ss:$16 sps:$4 sm:$0xff]  }
 0x1b5   : > { %6184 = vmatmul.mubr.msk.bf16.vlgmr.msra.gmra.mrb[8].mxu0 %vm656_vm0, %v803_v31  ;;  %6186 = vmatmul.mubr.msk.bf16.vlgmr.msra.gmra.mrb[8].mxu1 %vm656_vm0, %v803_v31  ;;  %v598_v31 = vld [vmem:[%s8629_s19 + $0x1b0] sm:$0xff]  ;;  %v781_v27 = vsel %vm717_vm14, %v7931_v22, 0.0  ;;  %s8280_s19 = smov 3  }
 0x1b6   : > { %969 = vmatprep.mubr.bf16.mxu0 %v8278_v56  ;;  %1022 = vmatprep.mubr.bf16.mxu1 %v8278_v56  ;;  %v8910_v5 = vpack.c.bf16 %v598_v31, %v594_v30  ;;  %v798_v30 = vmul.f32 %v7977_v7, %v782_v25  ;;  %v797_v31 = vmul.f32 %v7978_v10, %v781_v27  ;;  %v7422_v22 = vld [vmem:[#allocation7 + $0x84] ss:$16 sps:$4 sm:$0xff]   ;;  %v7420_v25 = vld [vmem:[#allocation7 + $0x80] ss:$16 sps:$4 sm:$0xff]   ;;  %v7423_v27 = vld [vmem:[#allocation7 + $0x88] ss:$16 sps:$4 sm:$0xff]  }
 0x1b7   : > { %1040 = vmatpush1.bf16.msra.mxu0 %v8840_v34  ;;  %1093 = vmatpush1.bf16.msra.mxu1 %v8842_v36  ;;  %v7428_v7 = vld [vmem:[#allocation7 + $0xa4] ss:$16 sps:$4 sm:$0xff]   ;;  %v7426_v10 = vld [vmem:[#allocation7 + $0xa0] ss:$16 sps:$4 sm:$0xff]  }
 0x1b8   : > { %1041 = vmatprep.subr.bf16.mxu0 %v8846_v41  ;;  %1094 = vmatprep.subr.bf16.mxu1 %v8848_v42  ;;  %v807_v37 = vpack.c.bf16 %v798_v30, %v797_v31  ;;  %v7431_v30 = vld [vmem:[#allocation7 + $0xac] ss:$16 sps:$4 sm:$0xff]   ;;  %v7429_v31 = vld [vmem:[#allocation7 + $0xa8] ss:$16 sps:$4 sm:$0xff]  }
 0x1b9   : > { %v7933_v33 = vpop.eup %7932 }
 0x1ba   : > { %v7935_v21 = vpop.eup %7934  ;;  %v784_v45 = vsel %vm720_vm15, %v7933_v33, 0.0  ;;  %v7434_v33 = vld [vmem:[#allocation7 + $0xc4] ss:$16 sps:$4 sm:$0xff]  }
 0x1bb   : > { %1042 = vmatpush1.bf16.msra.mxu0 %v8860_v54  ;;  %1095 = vmatpush1.bf16.msra.mxu1 %v8868_v8 }
 0x1bc   : > { %1151 = vmatprep.subr.bf16.mxu0 %v8874_v11  ;;  %1204 = vmatprep.subr.bf16.mxu1 %v8876_v12 }
 0x1bd   : > { %6185 = vmatmul.mubr.msk.bf16.gmra.mrb[12].mxu0 %vm656_vm0, %v804_v15  ;;  %6187 = vmatmul.mubr.msk.bf16.gmra.mrb[12].mxu1 %vm656_vm0, %v804_v15  ;;  %v796_v15 = vmul.f32 %v7975_v14, %v780_v61  ;;  %v800_v61 = vmul.f32 %v7979_v20, %v784_v45  ;;  %v7413_v14 = vld [vmem:[#allocation7 + $0x4c] ss:$16 sps:$4 sm:$0xff]  }
 0x1be   : > { %1071 = vmatprep.mubr.bf16.mxu0 %v8278_v56  ;;  %1124 = vmatprep.mubr.bf16.mxu1 %v8278_v56  ;;  %v7443_v45 = vld [vmem:[#allocation7 + $0xec] ss:$16 sps:$4 sm:$0xff]  }
 0x1bf   : > { %v806_v24 = vpack.c.bf16 %v796_v15, %v795_v17  ;;  %v7411_v17 = vld [vmem:[#allocation7 + $0x48] ss:$16 sps:$4 sm:$0xff]   ;;  %v7449_v20 = vld [vmem:[#allocation7 + $0x10c] ss:$16 sps:$4 sm:$0xff]  }
 0x1c5   : > { %6188 = vmatmul.mubr.msk.bf16.vlgmr.msra.gmra.mrb[16].mxu0 %vm656_vm0, %v805_v1  ;;  %6190 = vmatmul.mubr.msk.bf16.vlgmr.msra.gmra.mrb[16].mxu1 %vm656_vm0, %v805_v1  ;;  %v783_v1 = vsel %vm719_vm1, %v7935_v21, 0.0  ;;  %v7437_v21 = vld [vmem:[#allocation7 + $0xcc] ss:$16 sps:$4 sm:$0xff]  }
 0x1c6   : > { %1081 = vmatprep.mubr.bf16.mxu0 %v8278_v56  ;;  %1134 = vmatprep.mubr.bf16.mxu1 %v8278_v56  ;;  %v799_v3 = vmul.f32 %v7980_v23, %v783_v1  ;;  %v7438_v1 = vld [vmem:[#allocation7 + $0xe0] ss:$16 sps:$4 sm:$0xff]   ;;  %v7447_v23 = vld [vmem:[#allocation7 + $0x108] ss:$16 sps:$4 sm:$0xff]  }
 0x1c7   : > { %1152 = vmatpush1.bf16.msra.mxu0 %v8908_v48  ;;  %1205 = vmatpush1.bf16.msra.mxu1 %v8910_v5 }
 0x1c8   : > { %1153 = vmatprep.subr.bf16.mxu0 %v8914_v28  ;;  %1206 = vmatprep.subr.bf16.mxu1 %v8916_v4  ;;  %v808_v15 = vpack.c.bf16 %v800_v61, %v799_v3  ;;  %v7444_v61 = vld [vmem:[#allocation7 + $0x100] ss:$16 sps:$4 sm:$0xff]   ;;  %v7452_v3 = vld [vmem:[#allocation7 + $0x124] ss:$16 sps:$4 sm:$0xff]  }
 0x1cb   : > { %1154 = vmatpush1.bf16.msra.mxu0 %v8924_v13  ;;  %1207 = vmatpush1.bf16.msra.mxu1 %v8930_v18 }
 0x1cc   : > { %2847 = vmatprep.subr.bf16.mxu0 %v7398_v63  ;;  %3299 = vmatprep.subr.bf16.mxu1 %v7401_v19  ;;  %v7414_v63 = vld [vmem:[#allocation7 + $0x60] ss:$16 sps:$4 sm:$0xff]   ;;  %v7417_v19 = vld [vmem:[#allocation7 + $0x68] ss:$16 sps:$4 sm:$0xff]  }
 0x1cd   : > { %6189 = vmatmul.mubr.msk.bf16.gmra.mrb[20].mxu0 %vm656_vm0, %v806_v24  ;;  %6191 = vmatmul.mubr.msk.bf16.gmra.mrb[20].mxu1 %vm656_vm0, %v806_v24  ;;  %v7425_v24 = vld [vmem:[#allocation7 + $0x8c] ss:$16 sps:$4 sm:$0xff]  }
 0x1ce   : > { %1183 = vmatprep.mubr.bf16.mxu0 %v8278_v56  ;;  %1236 = vmatprep.mubr.bf16.mxu1 %v8278_v56 }
 0x1d5   : > { %6192 = vmatmul.mubr.msk.bf16.vlgmr.msra.gmra.mrb[24].mxu0 %vm656_vm0, %v807_v37  ;;  %6194 = vmatmul.mubr.msk.bf16.vlgmr.msra.gmra.mrb[24].mxu1 %vm656_vm0, %v807_v37  ;;  %v7432_v37 = vld [vmem:[#allocation7 + $0xc0] ss:$16 sps:$4 sm:$0xff]  }
 0x1d6   : > { %1193 = vmatprep.mubr.bf16.mxu0 %v8278_v56  ;;  %1246 = vmatprep.mubr.bf16.mxu1 %v8278_v56  ;;  %v7416_v56 = vld [vmem:[#allocation7 + $0x64] ss:$16 sps:$4 sm:$0xff]  }
 0x1d7   : > { %2848 = vmatpush1.bf16.msra.mxu0 %v7396_v38  ;;  %3300 = vmatpush1.bf16.msra.mxu1 %v7399_v26  ;;  %v7435_v38 = vld [vmem:[#allocation7 + $0xc8] ss:$16 sps:$4 sm:$0xff]   ;;  %v7440_v26 = vld [vmem:[#allocation7 + $0xe4] ss:$16 sps:$4 sm:$0xff]  }
 0x1d8   : > { %2849 = vmatprep.subr.bf16.mxu0 %v7404_v46  ;;  %3301 = vmatprep.subr.bf16.mxu1 %v7407_v53  ;;  %v7441_v46 = vld [vmem:[#allocation7 + $0xe8] ss:$16 sps:$4 sm:$0xff]   ;;  %v7446_v53 = vld [vmem:[#allocation7 + $0x104] ss:$16 sps:$4 sm:$0xff]  }
 0x1db   : > { %2850 = vmatpush1.bf16.msra.mxu0 %v7402_v29  ;;  %3302 = vmatpush1.bf16.msra.mxu1 %v7405_v6  ;;  %v7455_v29 = vld [vmem:[#allocation7 + $0x12c] ss:$16 sps:$4 sm:$0xff]   ;;  %v7450_v6 = vld [vmem:[#allocation7 + $0x120] ss:$16 sps:$4 sm:$0xff]  }
 0x1dc   : > { %2851 = vmatprep.subr.bf16.mxu0 %v7410_v9  ;;  %3303 = vmatprep.subr.bf16.mxu1 %v7413_v14  ;;  %v7453_v9 = vld [vmem:[#allocation7 + $0x128] ss:$16 sps:$4 sm:$0xff]   ;;  %v7458_v14 = vld [vmem:[#allocation7 + $0x144] ss:$16 sps:$4 sm:$0xff]  }
 0x1dd   : > { %6193 = vmatmul.mubr.msk.bf16.gmra.mrb[28].mxu0 %vm656_vm0, %v808_v15  ;;  %6195 = vmatmul.mubr.msk.bf16.gmra.mrb[28].mxu1 %vm656_vm0, %v808_v15  ;;  %v7461_v15 = vld [vmem:[#allocation7 + $0x14c] ss:$16 sps:$4 sm:$0xff]  }
 0x1df   : > { %2852 = vmatpush1.bf16.msra.mxu0 %v7408_v16  ;;  %3304 = vmatpush1.bf16.msra.mxu1 %v7411_v17  ;;  %v7456_v16 = vld [vmem:[#allocation7 + $0x140] ss:$16 sps:$4 sm:$0xff]   ;;  %v7459_v17 = vld [vmem:[#allocation7 + $0x148] ss:$16 sps:$4 sm:$0xff]  }
 0x1e0   : > { %2853 = vmatprep.subr.bf16.mxu0 %v7416_v56  ;;  %3305 = vmatprep.subr.bf16.mxu1 %v7419_v57  ;;  %v7464_v56 = vld [vmem:[#allocation7 + $0x164] ss:$16 sps:$4 sm:$0xff]   ;;  %v7467_v57 = vld [vmem:[#allocation7 + $0x16c] ss:$16 sps:$4 sm:$0xff]  }
 0x1e3   : > { %2854 = vmatpush1.bf16.msra.mxu0 %v7414_v63  ;;  %3306 = vmatpush1.bf16.msra.mxu1 %v7417_v19  ;;  %v7462_v63 = vld [vmem:[#allocation7 + $0x160] ss:$16 sps:$4 sm:$0xff]   ;;  %v7465_v19 = vld [vmem:[#allocation7 + $0x168] ss:$16 sps:$4 sm:$0xff]  }
 0x1e4   : > { %2855 = vmatprep.subr.bf16.mxu0 %v7422_v22  ;;  %3307 = vmatprep.subr.bf16.mxu1 %v7425_v24  ;;  %v7470_v22 = vld [vmem:[#allocation7 + $0x184] ss:$16 sps:$4 sm:$0xff]   ;;  %v7473_v24 = vld [vmem:[#allocation7 + $0x18c] ss:$16 sps:$4 sm:$0xff]  }
 0x1e7   : > { %2856 = vmatpush1.bf16.msra.mxu0 %v7420_v25  ;;  %3308 = vmatpush1.bf16.msra.mxu1 %v7423_v27  ;;  %v7468_v25 = vld [vmem:[#allocation7 + $0x180] ss:$16 sps:$4 sm:$0xff]   ;;  %v7471_v27 = vld [vmem:[#allocation7 + $0x188] ss:$16 sps:$4 sm:$0xff]  }
 0x1e8   : > { %2857 = vmatprep.subr.bf16.mxu0 %v7428_v7  ;;  %3309 = vmatprep.subr.bf16.mxu1 %v7431_v30  ;;  %v7476_v7 = vld [vmem:[#allocation7 + $0x1a4] ss:$16 sps:$4 sm:$0xff]   ;;  %v7479_v30 = vld [vmem:[#allocation7 + $0x1ac] ss:$16 sps:$4 sm:$0xff]  }
 0x1eb   : > { %2858 = vmatpush1.bf16.msra.mxu0 %v7426_v10  ;;  %3310 = vmatpush1.bf16.msra.mxu1 %v7429_v31  ;;  %v7474_v10 = vld [vmem:[#allocation7 + $0x1a0] ss:$16 sps:$4 sm:$0xff]   ;;  %v7477_v31 = vld [vmem:[#allocation7 + $0x1a8] ss:$16 sps:$4 sm:$0xff]  }
 0x1ec   : > { %2859 = vmatprep.subr.bf16.mxu0 %v7434_v33  ;;  %3311 = vmatprep.subr.bf16.mxu1 %v7437_v21  ;;  %v7482_v33 = vld [vmem:[#allocation7 + $0x1c4] ss:$16 sps:$4 sm:$0xff]   ;;  %v7485_v21 = vld [vmem:[#allocation7 + $0x1cc] ss:$16 sps:$4 sm:$0xff]  }
 0x1ef   : > { %2860 = vmatpush1.bf16.msra.mxu0 %v7432_v37  ;;  %3312 = vmatpush1.bf16.msra.mxu1 %v7435_v38  ;;  %v7480_v37 = vld [vmem:[#allocation7 + $0x1c0] ss:$16 sps:$4 sm:$0xff]   ;;  %v7483_v38 = vld [vmem:[#allocation7 + $0x1c8] ss:$16 sps:$4 sm:$0xff]  }
 0x1f0   : > { %2861 = vmatprep.subr.bf16.mxu0 %v7440_v26  ;;  %3313 = vmatprep.subr.bf16.mxu1 %v7443_v45  ;;  %v7488_v26 = vld [vmem:[#allocation7 + $0x1e4] ss:$16 sps:$4 sm:$0xff]   ;;  %v7491_v45 = vld [vmem:[#allocation7 + $0x1ec] ss:$16 sps:$4 sm:$0xff]  }
 0x1f3   : > { %2862 = vmatpush1.bf16.msra.mxu0 %v7438_v1  ;;  %3314 = vmatpush1.bf16.msra.mxu1 %v7441_v46  ;;  %v7486_v1 = vld [vmem:[#allocation7 + $0x1e0] ss:$16 sps:$4 sm:$0xff]   ;;  %v7489_v46 = vld [vmem:[#allocation7 + $0x1e8] ss:$16 sps:$4 sm:$0xff]  }
 0x1f4   : > { %2863 = vmatprep.subr.bf16.mxu0 %v7446_v53  ;;  %3315 = vmatprep.subr.bf16.mxu1 %v7449_v20  ;;  %v7494_v53 = vld [vmem:[#allocation7 + $0x204] ss:$16 sps:$4 sm:$0xff]   ;;  %v7497_v20 = vld [vmem:[#allocation7 + $0x20c] ss:$16 sps:$4 sm:$0xff]  }
 0x1f7   : > { %2864 = vmatpush1.bf16.msra.mxu0 %v7444_v61  ;;  %3316 = vmatpush1.bf16.msra.mxu1 %v7447_v23 }
 0x1f8   : > { %2865 = vmatprep.subr.bf16.mxu0 %v7452_v3  ;;  %3317 = vmatprep.subr.bf16.mxu1 %v7455_v29 }
 0x1fb   : > { %2866 = vmatpush1.bf16.msra.mxu0 %v7450_v6  ;;  %3318 = vmatpush1.bf16.msra.mxu1 %v7453_v9 }
 0x1fc   : > { %2867 = vmatprep.subr.bf16.mxu0 %v7458_v14  ;;  %3319 = vmatprep.subr.bf16.mxu1 %v7461_v15 }
 0x1ff   : > { %2868 = vmatpush1.bf16.msra.mxu0 %v7456_v16  ;;  %3320 = vmatpush1.bf16.msra.mxu1 %v7459_v17 }
 0x200   : > { %2869 = vmatprep.subr.bf16.mxu0 %v7464_v56  ;;  %3321 = vmatprep.subr.bf16.mxu1 %v7467_v57 }
 0x203   : > { %2870 = vmatpush1.bf16.msra.mxu0 %v7462_v63  ;;  %3322 = vmatpush1.bf16.msra.mxu1 %v7465_v19  ;;  %v7492_v63 = vld [vmem:[#allocation7 + $0x200] ss:$16 sps:$4 sm:$0xff]   ;;  %v7495_v19 = vld [vmem:[#allocation7 + $0x208] ss:$16 sps:$4 sm:$0xff]  }
 0x204   : > { %2871 = vmatprep.subr.bf16.mxu0 %v7470_v22  ;;  %3323 = vmatprep.subr.bf16.mxu1 %v7473_v24  ;;  %v7500_v22 = vld [vmem:[#allocation7 + $0x224] ss:$16 sps:$4 sm:$0xff]   ;;  %v7503_v24 = vld [vmem:[#allocation7 + $0x22c] ss:$16 sps:$4 sm:$0xff]  }
 0x207   : > { %2872 = vmatpush1.bf16.msra.mxu0 %v7468_v25  ;;  %3324 = vmatpush1.bf16.msra.mxu1 %v7471_v27 }
 0x208   : > { %2873 = vmatprep.subr.bf16.mxu0 %v7476_v7  ;;  %3325 = vmatprep.subr.bf16.mxu1 %v7479_v30  ;;  %v7498_v7 = vld [vmem:[#allocation7 + $0x220] ss:$16 sps:$4 sm:$0xff]   ;;  %v7501_v30 = vld [vmem:[#allocation7 + $0x228] ss:$16 sps:$4 sm:$0xff]  }
 0x20b   : > { %2874 = vmatpush1.bf16.msra.mxu0 %v7474_v10  ;;  %3326 = vmatpush1.bf16.msra.mxu1 %v7477_v31 }
 0x20c   : > { %2875 = vmatprep.subr.bf16.mxu0 %v7482_v33  ;;  %3327 = vmatprep.subr.bf16.mxu1 %v7485_v21  ;;  %v7506_v33 = vld [vmem:[#allocation7 + $0x244] ss:$16 sps:$4 sm:$0xff]   ;;  %v7509_v21 = vld [vmem:[#allocation7 + $0x24c] ss:$16 sps:$4 sm:$0xff]  }
 0x20f   : > { %2876 = vmatpush1.bf16.msra.mxu0 %v7480_v37  ;;  %3328 = vmatpush1.bf16.msra.mxu1 %v7483_v38 }
 0x210   : > { %2877 = vmatprep.subr.bf16.mxu0 %v7488_v26  ;;  %3329 = vmatprep.subr.bf16.mxu1 %v7491_v45 }
 0x213   : > { %2878 = vmatpush1.bf16.msra.mxu0 %v7486_v1  ;;  %3330 = vmatpush1.bf16.msra.mxu1 %v7489_v46 }
 0x214   : > { %2960 = vmatprep.subr.bf16.mxu0 %v7494_v53  ;;  %3412 = vmatprep.subr.bf16.mxu1 %v7497_v20 }
 0x278   : > { %v849_v61 = vpop.f32.mrb[0].mxu0  ;;  %v902_v23 = vpop.f32.mrb[0].mxu1 }
 0x279   : > { %v851_v3 = vpop.f32.mrb[1].mxu0  ;;  %v904_v29 = vpop.f32.mrb[1].mxu1 }
 0x27a   : > { %v853_v6 = vpop.f32.mrb[2].mxu0  ;;  %v906_v9 = vpop.f32.mrb[2].mxu1 }
 0x27b   : > { %v1257_v14 = vpack.c.bf16 %v853_v6, %v849_v61  ;;  %v8954_v15 = vpack.c.bf16 %v906_v9, %v902_v23  ;;  %v855_v16 = vpop.f32.mrb[3].mxu0  ;;  %v908_v17 = vpop.f32.mrb[3].mxu1  ;;  %v7504_v61 = vld [vmem:[#allocation7 + $0x240] ss:$16 sps:$4 sm:$0xff]   ;;  %v7507_v23 = vld [vmem:[#allocation7 + $0x248] ss:$16 sps:$4 sm:$0xff]  }
 0x27c   : > { %v1258_v56 = vpack.c.bf16 %v855_v16, %v851_v3  ;;  %v8956_v57 = vpack.c.bf16 %v908_v17, %v904_v29  ;;  %v7512_v3 = vld [vmem:[#allocation7 + $0x264] ss:$16 sps:$4 sm:$0xff]   ;;  %v7515_v29 = vld [vmem:[#allocation7 + $0x26c] ss:$16 sps:$4 sm:$0xff]   ;;  %v7513_v16 = vld [vmem:[#allocation7 + $0x268] ss:$16 sps:$4 sm:$0xff]  }
 0x27e   : > { %2879 = vmatprep.mubr.bf16.mxu0 %v1258_v56  ;;  %3331 = vmatprep.mubr.bf16.mxu1 %v1258_v56 }
 0x27f   : > { %2880 = vmatmul.mubr.bf16.vlgmr.msra.gmra.mrb[32].mxu0 %v1257_v14  ;;  %3332 = vmatmul.mubr.bf16.vlgmr.msra.gmra.mrb[32].mxu1 %v1257_v14  ;;  %v7510_v14 = vld [vmem:[#allocation7 + $0x260] ss:$16 sps:$4 sm:$0xff]  }
 0x280   : > { %v859_v25 = vpop.f32.mrb[4].mxu0  ;;  %v912_v27 = vpop.f32.mrb[4].mxu1  ;;  %2961 = vmatpush1.bf16.msra.mxu0 %v7492_v63  ;;  %3413 = vmatpush1.bf16.msra.mxu1 %v7495_v19  ;;  %v7518_v63 = vld [vmem:[#allocation7 + $0x284] ss:$16 sps:$4 sm:$0xff]   ;;  %v7521_v19 = vld [vmem:[#allocation7 + $0x28c] ss:$16 sps:$4 sm:$0xff]  }
 0x281   : > { %v861_v10 = vpop.f32.mrb[5].mxu0  ;;  %v914_v31 = vpop.f32.mrb[5].mxu1  ;;  %2962 = vmatprep.subr.bf16.mxu0 %v7500_v22  ;;  %3414 = vmatprep.subr.bf16.mxu1 %v7503_v24 }
 0x282   : > { %v863_v37 = vpop.f32.mrb[6].mxu0  ;;  %v916_v38 = vpop.f32.mrb[6].mxu1 }
 0x283   : > { %v1261_v26 = vpack.c.bf16 %v863_v37, %v859_v25  ;;  %v8958_v45 = vpack.c.bf16 %v916_v38, %v912_v27  ;;  %v865_v1 = vpop.f32.mrb[7].mxu0  ;;  %v918_v46 = vpop.f32.mrb[7].mxu1  ;;  %v7524_v37 = vld [vmem:[#allocation7 + $0x2a4] ss:$16 sps:$4 sm:$0xff]   ;;  %v7527_v38 = vld [vmem:[#allocation7 + $0x2ac] ss:$16 sps:$4 sm:$0xff]  }
 0x284   : > { %v1262_v53 = vpack.c.bf16 %v865_v1, %v861_v10  ;;  %v8960_v20 = vpack.c.bf16 %v918_v46, %v914_v31  ;;  %2963 = vmatpush1.bf16.msra.mxu0 %v7498_v7  ;;  %3415 = vmatpush1.bf16.msra.mxu1 %v7501_v30  ;;  %v7522_v46 = vld [vmem:[#allocation7 + $0x2a0] ss:$16 sps:$4 sm:$0xff]  }
 0x285   : > { %2964 = vmatprep.subr.bf16.mxu0 %v7506_v33  ;;  %3416 = vmatprep.subr.bf16.mxu1 %v7509_v21  ;;  %v7516_v33 = vld [vmem:[#allocation7 + $0x280] ss:$16 sps:$4 sm:$0xff]   ;;  %v7519_v21 = vld [vmem:[#allocation7 + $0x288] ss:$16 sps:$4 sm:$0xff]  }
 0x286   : > { %2889 = vmatprep.mubr.bf16.mxu0 %v1262_v53  ;;  %3341 = vmatprep.mubr.bf16.mxu1 %v1262_v53  ;;  %v7525_v53 = vld [vmem:[#allocation7 + $0x2a8] ss:$16 sps:$4 sm:$0xff]  }
 0x287   : > { %2890 = vmatmul.mubr.bf16.gmra.mrb[36].mxu0 %v1261_v26  ;;  %3342 = vmatmul.mubr.bf16.gmra.mrb[36].mxu1 %v1261_v26 }
 0x288   : > { %v961_v6 = vpop.f32.mrb[8].mxu0  ;;  %v1014_v9 = vpop.f32.mrb[8].mxu1  ;;  %2965 = vmatpush1.bf16.msra.mxu0 %v7504_v61  ;;  %3417 = vmatpush1.bf16.msra.mxu1 %v7507_v23 }
 0x289   : > { %v963_v17 = vpop.f32.mrb[9].mxu0  ;;  %v1016_v56 = vpop.f32.mrb[9].mxu1  ;;  %2966 = vmatprep.subr.bf16.mxu0 %v7512_v3  ;;  %3418 = vmatprep.subr.bf16.mxu1 %v7515_v29  ;;  %v7530_v3 = vld [vmem:[#allocation7 + $0x2c4] ss:$16 sps:$4 sm:$0xff]   ;;  %v7533_v29 = vld [vmem:[#allocation7 + $0x2cc] ss:$16 sps:$4 sm:$0xff]  }
 0x28a   : > { %v965_v22 = vpop.f32.mrb[10].mxu0  ;;  %v1018_v24 = vpop.f32.mrb[10].mxu1 }
 0x28b   : > { %v1265_v25 = vpack.c.bf16 %v965_v22, %v961_v6  ;;  %v8962_v27 = vpack.c.bf16 %v1018_v24, %v1014_v9  ;;  %v967_v7 = vpop.f32.mrb[11].mxu0  ;;  %v1020_v30 = vpop.f32.mrb[11].mxu1  ;;  %v7528_v22 = vld [vmem:[#allocation7 + $0x2c0] ss:$16 sps:$4 sm:$0xff]   ;;  %v7531_v24 = vld [vmem:[#allocation7 + $0x2c8] ss:$16 sps:$4 sm:$0xff]  }
 0x28c   : > { %v1266_v10 = vpack.c.bf16 %v967_v7, %v963_v17  ;;  %v8964_v31 = vpack.c.bf16 %v1020_v30, %v1016_v56  ;;  %2967 = vmatpush1.bf16.msra.mxu0 %v7510_v14  ;;  %3419 = vmatpush1.bf16.msra.mxu1 %v7513_v16  ;;  %v7539_v7 = vld [vmem:[#allocation7 + $0x2ec] ss:$16 sps:$4 sm:$0xff]  }
 0x28d   : > { %2968 = vmatprep.subr.bf16.mxu0 %v7518_v63  ;;  %3420 = vmatprep.subr.bf16.mxu1 %v7521_v19 }
 0x28e   : > { %2899 = vmatprep.mubr.bf16.mxu0 %v1266_v10  ;;  %3351 = vmatprep.mubr.bf16.mxu1 %v1266_v10 }
 0x28f   : > { %2900 = vmatmul.mubr.bf16.gmra.mrb[40].mxu0 %v1265_v25  ;;  %3352 = vmatmul.mubr.bf16.gmra.mrb[40].mxu1 %v1265_v25  ;;  %v7536_v25 = vld [vmem:[#allocation7 + $0x2e4] ss:$16 sps:$4 sm:$0xff]  }
 0x290   : > { %v971_v26 = vpop.f32.mrb[12].mxu0  ;;  %v1024_v1 = vpop.f32.mrb[12].mxu1  ;;  %2969 = vmatpush1.bf16.msra.mxu0 %v7516_v33  ;;  %3421 = vmatpush1.bf16.msra.mxu1 %v7519_v21  ;;  %v7534_v33 = vld [vmem:[#allocation7 + $0x2e0] ss:$16 sps:$4 sm:$0xff]   ;;  %v7537_v21 = vld [vmem:[#allocation7 + $0x2e8] ss:$16 sps:$4 sm:$0xff]  }
 0x291   : > { %v973_v61 = vpop.f32.mrb[13].mxu0  ;;  %v1026_v23 = vpop.f32.mrb[13].mxu1  ;;  %2970 = vmatprep.subr.bf16.mxu0 %v7524_v37  ;;  %3422 = vmatprep.subr.bf16.mxu1 %v7527_v38 }
 0x292   : > { %v975_v6 = vpop.f32.mrb[14].mxu0  ;;  %v1028_v9 = vpop.f32.mrb[14].mxu1 }
 0x293   : > { %v1269_v14 = vpack.c.bf16 %v975_v6, %v971_v26  ;;  %v8966_v16 = vpack.c.bf16 %v1028_v9, %v1024_v1  ;;  %v977_v17 = vpop.f32.mrb[15].mxu0  ;;  %v1030_v56 = vpop.f32.mrb[15].mxu1  ;;  %v7542_v26 = vld [vmem:[#allocation7 + $0x304] ss:$16 sps:$4 sm:$0xff]   ;;  %v7545_v1 = vld [vmem:[#allocation7 + $0x30c] ss:$16 sps:$4 sm:$0xff]  }
 0x294   : > { %v1270_v63 = vpack.c.bf16 %v977_v17, %v973_v61  ;;  %v8968_v19 = vpack.c.bf16 %v1030_v56, %v1026_v23  ;;  %2971 = vmatpush1.bf16.msra.mxu0 %v7522_v46  ;;  %3423 = vmatpush1.bf16.msra.mxu1 %v7525_v53  ;;  %v7543_v17 = vld [vmem:[#allocation7 + $0x308] ss:$16 sps:$4 sm:$0xff]   ;;  %v7548_v56 = vld [vmem:[#allocation7 + $0x324] ss:$16 sps:$4 sm:$0xff]  }
 0x295   : > { %2972 = vmatprep.subr.bf16.mxu0 %v7530_v3  ;;  %3424 = vmatprep.subr.bf16.mxu1 %v7533_v29 }
 0x296   : > { %2909 = vmatprep.mubr.bf16.mxu0 %v1270_v63  ;;  %3361 = vmatprep.mubr.bf16.mxu1 %v1270_v63  ;;  %v7551_v63 = vld [vmem:[#allocation7 + $0x32c] ss:$16 sps:$4 sm:$0xff]  }
 0x297   : > { %2910 = vmatmul.mubr.bf16.gmra.mrb[44].mxu0 %v1269_v14  ;;  %3362 = vmatmul.mubr.bf16.gmra.mrb[44].mxu1 %v1269_v14  ;;  %v7540_v14 = vld [vmem:[#allocation7 + $0x300] ss:$16 sps:$4 sm:$0xff]  }
 0x298   : > { %v1073_v30 = vpop.f32.mrb[16].mxu0  ;;  %v1126_v10 = vpop.f32.mrb[16].mxu1  ;;  %2973 = vmatpush1.bf16.msra.mxu0 %v7528_v22  ;;  %3425 = vmatpush1.bf16.msra.mxu1 %v7531_v24 }
 0x299   : > { %v1075_v37 = vpop.f32.mrb[17].mxu0  ;;  %v1128_v38 = vpop.f32.mrb[17].mxu1  ;;  %2974 = vmatprep.subr.bf16.mxu0 %v7536_v25  ;;  %3426 = vmatprep.subr.bf16.mxu1 %v7539_v7  ;;  %v7546_v25 = vld [vmem:[#allocation7 + $0x320] ss:$16 sps:$4 sm:$0xff]   ;;  %v7549_v7 = vld [vmem:[#allocation7 + $0x328] ss:$16 sps:$4 sm:$0xff]  }
 0x29a   : > { %v1077_v46 = vpop.f32.mrb[18].mxu0  ;;  %v1130_v53 = vpop.f32.mrb[18].mxu1 }
 0x29b   : > { %v1273_v61 = vpack.c.bf16 %v1077_v46, %v1073_v30  ;;  %v8970_v23 = vpack.c.bf16 %v1130_v53, %v1126_v10  ;;  %v1079_v3 = vpop.f32.mrb[19].mxu0  ;;  %v1132_v29 = vpop.f32.mrb[19].mxu1 }
 0x29c   : > { %v1274_v6 = vpack.c.bf16 %v1079_v3, %v1075_v37  ;;  %v8972_v9 = vpack.c.bf16 %v1132_v29, %v1128_v38  ;;  %2975 = vmatpush1.bf16.msra.mxu0 %v7534_v33  ;;  %3427 = vmatpush1.bf16.msra.mxu1 %v7537_v21  ;;  %v7554_v33 = vld [vmem:[#allocation7 + $0x344] ss:$16 sps:$4 sm:$0xff]   ;;  %v7557_v21 = vld [vmem:[#allocation7 + $0x34c] ss:$16 sps:$4 sm:$0xff]   ;;  %v7552_v29 = vld [vmem:[#allocation7 + $0x340] ss:$16 sps:$4 sm:$0xff]  }
 0x29d   : > { %2976 = vmatprep.subr.bf16.mxu0 %v7542_v26  ;;  %3428 = vmatprep.subr.bf16.mxu1 %v7545_v1 }
 0x29e   : > { %2919 = vmatprep.mubr.bf16.mxu0 %v1274_v6  ;;  %3371 = vmatprep.mubr.bf16.mxu1 %v1274_v6  ;;  %v7555_v6 = vld [vmem:[#allocation7 + $0x348] ss:$16 sps:$4 sm:$0xff]  }
 0x29f   : > { %2920 = vmatmul.mubr.bf16.gmra.mrb[48].mxu0 %v1273_v61  ;;  %3372 = vmatmul.mubr.bf16.gmra.mrb[48].mxu1 %v1273_v61 }
 0x2a0   : > { %v1083_v22 = vpop.f32.mrb[20].mxu0  ;;  %v1136_v24 = vpop.f32.mrb[20].mxu1  ;;  %2977 = vmatpush1.bf16.msra.mxu0 %v7540_v14  ;;  %3429 = vmatpush1.bf16.msra.mxu1 %v7543_v17  ;;  %v7560_v14 = vld [vmem:[#allocation7 + $0x364] ss:$16 sps:$4 sm:$0xff]   ;;  %v7563_v17 = vld [vmem:[#allocation7 + $0x36c] ss:$16 sps:$4 sm:$0xff]  }
 0x2a1   : > { %v1085_v30 = vpop.f32.mrb[21].mxu0  ;;  %v1138_v10 = vpop.f32.mrb[21].mxu1  ;;  %2978 = vmatprep.subr.bf16.mxu0 %v7548_v56  ;;  %3430 = vmatprep.subr.bf16.mxu1 %v7551_v63 }
 0x2a2   : > { %v1087_v37 = vpop.f32.mrb[22].mxu0  ;;  %v1140_v38 = vpop.f32.mrb[22].mxu1 }
 0x2a3   : > { %v1277_v26 = vpack.c.bf16 %v1087_v37, %v1083_v22  ;;  %v8974_v1 = vpack.c.bf16 %v1140_v38, %v1136_v24  ;;  %v1089_v46 = vpop.f32.mrb[23].mxu0  ;;  %v1142_v53 = vpop.f32.mrb[23].mxu1  ;;  %v7558_v22 = vld [vmem:[#allocation7 + $0x360] ss:$16 sps:$4 sm:$0xff]   ;;  %v7561_v24 = vld [vmem:[#allocation7 + $0x368] ss:$16 sps:$4 sm:$0xff]  }
 0x2a4   : > { %v1278_v61 = vpack.c.bf16 %v1089_v46, %v1085_v30  ;;  %v8976_v3 = vpack.c.bf16 %v1142_v53, %v1138_v10  ;;  %2979 = vmatpush1.bf16.msra.mxu0 %v7546_v25  ;;  %3431 = vmatpush1.bf16.msra.mxu1 %v7549_v7  ;;  %v7566_v25 = vld [vmem:[#allocation7 + $0x384] ss:$16 sps:$4 sm:$0xff]   ;;  %v7569_v7 = vld [vmem:[#allocation7 + $0x38c] ss:$16 sps:$4 sm:$0xff]  }
 0x2a5   : > { %2980 = vmatprep.subr.bf16.mxu0 %v7554_v33  ;;  %3432 = vmatprep.subr.bf16.mxu1 %v7557_v21 }
 0x2a6   : > { %2929 = vmatprep.mubr.bf16.mxu0 %v1278_v61  ;;  %3381 = vmatprep.mubr.bf16.mxu1 %v1278_v61 }
 0x2a7   : > { %2930 = vmatmul.mubr.bf16.gmra.mrb[52].mxu0 %v1277_v26  ;;  %3382 = vmatmul.mubr.bf16.gmra.mrb[52].mxu1 %v1277_v26 }
 0x2a8   : > { %v1185_v56 = vpop.f32.mrb[24].mxu0  ;;  %v1238_v63 = vpop.f32.mrb[24].mxu1  ;;  %2981 = vmatpush1.bf16.msra.mxu0 %v7552_v29  ;;  %3433 = vmatpush1.bf16.msra.mxu1 %v7555_v6  ;;  %v7564_v29 = vld [vmem:[#allocation7 + $0x380] ss:$16 sps:$4 sm:$0xff]   ;;  %v7567_v6 = vld [vmem:[#allocation7 + $0x388] ss:$16 sps:$4 sm:$0xff]  }
 0x2a9   : > { %v1187_v30 = vpop.f32.mrb[25].mxu0  ;;  %v1240_v10 = vpop.f32.mrb[25].mxu1  ;;  %2982 = vmatprep.subr.bf16.mxu0 %v7560_v14  ;;  %3434 = vmatprep.subr.bf16.mxu1 %v7563_v17  ;;  %v7572_v14 = vld [vmem:[#allocation7 + $0x3a4] ss:$16 sps:$4 sm:$0xff]   ;;  %v7575_v17 = vld [vmem:[#allocation7 + $0x3ac] ss:$16 sps:$4 sm:$0xff]  }
 0x2aa   : > { %v1189_v33 = vpop.f32.mrb[26].mxu0  ;;  %v1242_v21 = vpop.f32.mrb[26].mxu1 }
 0x2ab   : > { %v1281_v37 = vpack.c.bf16 %v1189_v33, %v1185_v56  ;;  %v8978_v38 = vpack.c.bf16 %v1242_v21, %v1238_v63  ;;  %v1191_v46 = vpop.f32.mrb[27].mxu0  ;;  %v1244_v53 = vpop.f32.mrb[27].mxu1  ;;  %v7570_v33 = vld [vmem:[#allocation7 + $0x3a0] ss:$16 sps:$4 sm:$0xff]  }
 0x2ac   : > { %v1282_v26 = vpack.c.bf16 %v1191_v46, %v1187_v30  ;;  %v8980_v61 = vpack.c.bf16 %v1244_v53, %v1240_v10  ;;  %2983 = vmatpush1.bf16.msra.mxu0 %v7558_v22  ;;  %3435 = vmatpush1.bf16.msra.mxu1 %v7561_v24  ;;  %v7573_v30 = vld [vmem:[#allocation7 + $0x3a8] ss:$16 sps:$4 sm:$0xff]   ;;  %v7578_v22 = vld [vmem:[#allocation7 + $0x3c4] ss:$16 sps:$4 sm:$0xff]   ;;  %v7581_v24 = vld [vmem:[#allocation7 + $0x3cc] ss:$16 sps:$4 sm:$0xff]  }
 0x2ad   : > { %2984 = vmatprep.subr.bf16.mxu0 %v7566_v25  ;;  %3436 = vmatprep.subr.bf16.mxu1 %v7569_v7 }
 0x2ae   : > { %2939 = vmatprep.mubr.bf16.mxu0 %v1282_v26  ;;  %3391 = vmatprep.mubr.bf16.mxu1 %v1282_v26 }
 0x2af   : > { %2940 = vmatmul.mubr.bf16.gmra.mrb[56].mxu0 %v1281_v37  ;;  %3392 = vmatmul.mubr.bf16.gmra.mrb[56].mxu1 %v1281_v37 }
 0x2b0   : > { %v1195_v56 = vpop.f32.mrb[28].mxu0  ;;  %v1248_v63 = vpop.f32.mrb[28].mxu1  ;;  %2985 = vmatpush1.bf16.msra.mxu0 %v7564_v29  ;;  %3437 = vmatpush1.bf16.msra.mxu1 %v7567_v6  ;;  %v7576_v29 = vld [vmem:[#allocation7 + $0x3c0] ss:$16 sps:$4 sm:$0xff]   ;;  %v7579_v6 = vld [vmem:[#allocation7 + $0x3c8] ss:$16 sps:$4 sm:$0xff]  }
 0x2b1   : > { %v1197_v10 = vpop.f32.mrb[29].mxu0  ;;  %v1250_v21 = vpop.f32.mrb[29].mxu1  ;;  %2986 = vmatprep.subr.bf16.mxu0 %v7572_v14  ;;  %3438 = vmatprep.subr.bf16.mxu1 %v7575_v17  ;;  %v7584_v14 = vld [vmem:[#allocation7 + $0x3e4] ss:$16 sps:$4 sm:$0xff]   ;;  %v7587_v17 = vld [vmem:[#allocation7 + $0x3ec] ss:$16 sps:$4 sm:$0xff]  }
 0x2b2   : > { %v1199_v25 = vpop.f32.mrb[30].mxu0  ;;  %v1252_v7 = vpop.f32.mrb[30].mxu1 }
 0x2b3   : > { %v1285_v46 = vpack.c.bf16 %v1199_v25, %v1195_v56  ;;  %v8982_v53 = vpack.c.bf16 %v1252_v7, %v1248_v63  ;;  %v1201_v26 = vpop.f32.mrb[31].mxu0  ;;  %v1254_v18 = vpop.f32.mrb[31].mxu1  ;;  %v7582_v56 = vld [vmem:[#allocation7 + $0x3e0] ss:$16 sps:$4 sm:$0xff]   ;;  %v7590_v63 = vld [vmem:[#allocation7 + $0x404] ss:$16 sps:$4 sm:$0xff]  }
 0x2b4   : > { %v1286_v37 = vpack.c.bf16 %v1201_v26, %v1197_v10  ;;  %v8984_v4 = vpack.c.bf16 %v1254_v18, %v1250_v21  ;;  %2987 = vmatpush1.bf16.msra.mxu0 %v7570_v33  ;;  %3439 = vmatpush1.bf16.msra.mxu1 %v7573_v30  ;;  %v7585_v18 = vld [vmem:[#allocation7 + $0x3e8] ss:$16 sps:$4 sm:$0xff]   ;;  %v7593_v33 = vld [vmem:[#allocation7 + $0x40c] ss:$16 sps:$4 sm:$0xff]   ;;  %v7588_v30 = vld [vmem:[#allocation7 + $0x400] ss:$16 sps:$4 sm:$0xff]  }
 0x2b5   : > { %2988 = vmatprep.subr.bf16.mxu0 %v7578_v22  ;;  %3440 = vmatprep.subr.bf16.mxu1 %v7581_v24  ;;  %v7591_v10 = vld [vmem:[#allocation7 + $0x408] ss:$16 sps:$4 sm:$0xff]   ;;  %v7596_v21 = vld [vmem:[#allocation7 + $0x424] ss:$16 sps:$4 sm:$0xff]   ;;  %v7599_v22 = vld [vmem:[#allocation7 + $0x42c] ss:$16 sps:$4 sm:$0xff]  }
 0x2b6   : > { %2949 = vmatprep.mubr.bf16.mxu0 %v1286_v37  ;;  %3401 = vmatprep.mubr.bf16.mxu1 %v1286_v37  ;;  %v7597_v24 = vld [vmem:[#allocation7 + $0x428] ss:$16 sps:$4 sm:$0xff]   ;;  %v7602_v25 = vld [vmem:[#allocation7 + $0x444] ss:$16 sps:$4 sm:$0xff]   ;;  %v7605_v7 = vld [vmem:[#allocation7 + $0x44c] ss:$16 sps:$4 sm:$0xff]  }
 0x2b7   : > { %2950 = vmatmul.mubr.bf16.gmra.mrb[60].mxu0 %v1285_v46  ;;  %3402 = vmatmul.mubr.bf16.gmra.mrb[60].mxu1 %v1285_v46  ;;  %v7600_v46 = vld [vmem:[#allocation7 + $0x440] ss:$16 sps:$4 sm:$0xff]   ;;  %v7603_v26 = vld [vmem:[#allocation7 + $0x448] ss:$16 sps:$4 sm:$0xff]   ;;  %v7608_v37 = vld [vmem:[#allocation7 + $0x464] ss:$16 sps:$4 sm:$0xff]  }
 0x2b8   : > { %2989 = vmatpush1.bf16.msra.mxu0 %v7576_v29  ;;  %2992 = vmatprep.mubr.bf16.mxu0 %v8956_v57  ;;  %v7609_v29 = vld [vmem:[#allocation7 + $0x468] ss:$16 sps:$4 sm:$0xff]  }
 0x2b9   : > { %3441 = vmatpush1.bf16.msra.mxu1 %v7579_v6  ;;  %3444 = vmatprep.mubr.bf16.mxu1 %v8956_v57  ;;  %v7594_v57 = vld [vmem:[#allocation7 + $0x420] ss:$16 sps:$4 sm:$0xff]   ;;  %v7614_v6 = vld [vmem:[#allocation7 + $0x484] ss:$16 sps:$4 sm:$0xff]  }
 0x2ba   : > { %2990 = vmatprep.subr.bf16.mxu0 %v7584_v14  ;;  %3442 = vmatprep.subr.bf16.mxu1 %v7587_v17  ;;  %v7617_v14 = vld [vmem:[#allocation7 + $0x48c] ss:$16 sps:$4 sm:$0xff]   ;;  %v7612_v17 = vld [vmem:[#allocation7 + $0x480] ss:$16 sps:$4 sm:$0xff]  }
 0x2bc   : > { %2991 = vmatpush1.bf16.msra.mxu0 %v7582_v56  ;;  %v7615_v56 = vld [vmem:[#allocation7 + $0x488] ss:$16 sps:$4 sm:$0xff]  }
 0x2bd   : > { %3443 = vmatpush1.bf16.msra.mxu1 %v7585_v18  ;;  %3073 = vmatprep.subr.bf16.mxu0 %v7590_v63  ;;  %v7620_v18 = vld [vmem:[#allocation7 + $0x4a4] ss:$16 sps:$4 sm:$0xff]   ;;  %v7621_v63 = vld [vmem:[#allocation7 + $0x4a8] ss:$16 sps:$4 sm:$0xff]  }
 0x2be   : > { %3525 = vmatprep.subr.bf16.mxu1 %v7593_v33  ;;  %v7626_v33 = vld [vmem:[#allocation7 + $0x4c4] ss:$16 sps:$4 sm:$0xff]  }
 0x2bf   : > { %2993 = vmatmul.mubr.bf16.vlgmr.msra.gmra.mrb[32].mxu0 %v8954_v15 }
 0x2c0   : > { %3445 = vmatmul.mubr.bf16.vlgmr.msra.gmra.mrb[32].mxu1 %v8954_v15  ;;  %3002 = vmatprep.mubr.bf16.mxu0 %v8960_v20  ;;  %v7611_v15 = vld [vmem:[#allocation7 + $0x46c] ss:$16 sps:$4 sm:$0xff]  }
 0x2c1   : > { %3074 = vmatpush1.bf16.msra.mxu0 %v7588_v30  ;;  %3454 = vmatprep.mubr.bf16.mxu1 %v8960_v20  ;;  %v7606_v20 = vld [vmem:[#allocation7 + $0x460] ss:$16 sps:$4 sm:$0xff]   ;;  %v7629_v30 = vld [vmem:[#allocation7 + $0x4cc] ss:$16 sps:$4 sm:$0xff]  }
 0x2c2   : > { %3526 = vmatpush1.bf16.msra.mxu1 %v7591_v10  ;;  %3075 = vmatprep.subr.bf16.mxu0 %v7596_v21  ;;  %v7624_v10 = vld [vmem:[#allocation7 + $0x4c0] ss:$16 sps:$4 sm:$0xff]   ;;  %v7627_v21 = vld [vmem:[#allocation7 + $0x4c8] ss:$16 sps:$4 sm:$0xff]  }
 0x2c3   : > { %3527 = vmatprep.subr.bf16.mxu1 %v7599_v22  ;;  %v7632_v22 = vld [vmem:[#allocation7 + $0x4e4] ss:$16 sps:$4 sm:$0xff]  }
 0x2c5   : > { %3076 = vmatpush1.bf16.msra.mxu0 %v7594_v57  ;;  %v7633_v57 = vld [vmem:[#allocation7 + $0x4e8] ss:$16 sps:$4 sm:$0xff]  }
 0x2c6   : > { %3528 = vmatpush1.bf16.msra.mxu1 %v7597_v24  ;;  %3077 = vmatprep.subr.bf16.mxu0 %v7602_v25  ;;  %v7638_v24 = vld [vmem:[#allocation7 + $0x504] ss:$16 sps:$4 sm:$0xff]   ;;  %v7641_v25 = vld [vmem:[#allocation7 + $0x50c] ss:$16 sps:$4 sm:$0xff]  }
 0x2c7   : > { %3003 = vmatmul.mubr.bf16.gmra.mrb[36].mxu0 %v8958_v45  ;;  %3529 = vmatprep.subr.bf16.mxu1 %v7605_v7  ;;  %v7636_v7 = vld [vmem:[#allocation7 + $0x500] ss:$16 sps:$4 sm:$0xff]  }
 0x2c8   : > { %3455 = vmatmul.mubr.bf16.gmra.mrb[36].mxu1 %v8958_v45  ;;  %3012 = vmatprep.mubr.bf16.mxu0 %v8964_v31  ;;  %v7623_v45 = vld [vmem:[#allocation7 + $0x4ac] ss:$16 sps:$4 sm:$0xff]  }
 0x2c9   : > { %3078 = vmatpush1.bf16.msra.mxu0 %v7600_v46  ;;  %3464 = vmatprep.mubr.bf16.mxu1 %v8964_v31  ;;  %v7618_v31 = vld [vmem:[#allocation7 + $0x4a0] ss:$16 sps:$4 sm:$0xff]   ;;  %v7639_v46 = vld [vmem:[#allocation7 + $0x508] ss:$16 sps:$4 sm:$0xff]  }
 0x2ca   : > { %3530 = vmatpush1.bf16.msra.mxu1 %v7603_v26  ;;  %3079 = vmatprep.subr.bf16.mxu0 %v7608_v37  ;;  %v7644_v26 = vld [vmem:[#allocation7 + $0x524] ss:$16 sps:$4 sm:$0xff]   ;;  %v7645_v37 = vld [vmem:[#allocation7 + $0x528] ss:$16 sps:$4 sm:$0xff]  }
 0x2cb   : > { %3531 = vmatprep.subr.bf16.mxu1 %v7611_v15  ;;  %v7650_v15 = vld [vmem:[#allocation7 + $0x544] ss:$16 sps:$4 sm:$0xff]  }
 0x2cd   : > { %3080 = vmatpush1.bf16.msra.mxu0 %v7606_v20  ;;  %v7653_v20 = vld [vmem:[#allocation7 + $0x54c] ss:$16 sps:$4 sm:$0xff]  }
 0x2ce   : > { %3532 = vmatpush1.bf16.msra.mxu1 %v7609_v29  ;;  %3081 = vmatprep.subr.bf16.mxu0 %v7614_v6  ;;  %v7648_v29 = vld [vmem:[#allocation7 + $0x540] ss:$16 sps:$4 sm:$0xff]   ;;  %v7651_v6 = vld [vmem:[#allocation7 + $0x548] ss:$16 sps:$4 sm:$0xff]  }
 0x2cf   : > { %3013 = vmatmul.mubr.bf16.gmra.mrb[40].mxu0 %v8962_v27  ;;  %3533 = vmatprep.subr.bf16.mxu1 %v7617_v14  ;;  %v7656_v14 = vld [vmem:[#allocation7 + $0x564] ss:$16 sps:$4 sm:$0xff]  }
 0x2d0   : > { %3465 = vmatmul.mubr.bf16.gmra.mrb[40].mxu1 %v8962_v27  ;;  %3022 = vmatprep.mubr.bf16.mxu0 %v8968_v19  ;;  %v7635_v27 = vld [vmem:[#allocation7 + $0x4ec] ss:$16 sps:$4 sm:$0xff]  }
 0x2d1   : > { %3082 = vmatpush1.bf16.msra.mxu0 %v7612_v17  ;;  %3474 = vmatprep.mubr.bf16.mxu1 %v8968_v19  ;;  %v7630_v19 = vld [vmem:[#allocation7 + $0x4e0] ss:$16 sps:$4 sm:$0xff]   ;;  %v7657_v17 = vld [vmem:[#allocation7 + $0x568] ss:$16 sps:$4 sm:$0xff]  }
 0x2d2   : > { %3534 = vmatpush1.bf16.msra.mxu1 %v7615_v56  ;;  %3083 = vmatprep.subr.bf16.mxu0 %v7620_v18  ;;  %v7662_v56 = vld [vmem:[#allocation7 + $0x584] ss:$16 sps:$4 sm:$0xff]   ;;  %v7665_v18 = vld [vmem:[#allocation7 + $0x58c] ss:$16 sps:$4 sm:$0xff]  }
 0x2d3   : > { %3535 = vmatprep.subr.bf16.mxu1 %v7623_v45  ;;  %v7660_v45 = vld [vmem:[#allocation7 + $0x580] ss:$16 sps:$4 sm:$0xff]  }
 0x2d5   : > { %3084 = vmatpush1.bf16.msra.mxu0 %v7618_v31  ;;  %v7663_v31 = vld [vmem:[#allocation7 + $0x588] ss:$16 sps:$4 sm:$0xff]  }
 0x2d6   : > { %3536 = vmatpush1.bf16.msra.mxu1 %v7621_v63  ;;  %3085 = vmatprep.subr.bf16.mxu0 %v7626_v33  ;;  %v7668_v63 = vld [vmem:[#allocation7 + $0x5a4] ss:$16 sps:$4 sm:$0xff]   ;;  %v7669_v33 = vld [vmem:[#allocation7 + $0x5a8] ss:$16 sps:$4 sm:$0xff]  }
 0x2d7   : > { %3023 = vmatmul.mubr.bf16.gmra.mrb[44].mxu0 %v8966_v16  ;;  %3537 = vmatprep.subr.bf16.mxu1 %v7629_v30  ;;  %v7674_v30 = vld [vmem:[#allocation7 + $0x5c4] ss:$16 sps:$4 sm:$0xff]  }
 0x2d8   : > { %3475 = vmatmul.mubr.bf16.gmra.mrb[44].mxu1 %v8966_v16  ;;  %3032 = vmatprep.mubr.bf16.mxu0 %v8972_v9  ;;  %v7647_v16 = vld [vmem:[#allocation7 + $0x52c] ss:$16 sps:$4 sm:$0xff]  }
 0x2d9   : > { %3086 = vmatpush1.bf16.msra.mxu0 %v7624_v10  ;;  %3484 = vmatprep.mubr.bf16.mxu1 %v8972_v9  ;;  %v7642_v9 = vld [vmem:[#allocation7 + $0x520] ss:$16 sps:$4 sm:$0xff]   ;;  %v7677_v10 = vld [vmem:[#allocation7 + $0x5cc] ss:$16 sps:$4 sm:$0xff]  }
 0x2da   : > { %3538 = vmatpush1.bf16.msra.mxu1 %v7627_v21  ;;  %3087 = vmatprep.subr.bf16.mxu0 %v7632_v22  ;;  %v7672_v21 = vld [vmem:[#allocation7 + $0x5c0] ss:$16 sps:$4 sm:$0xff]   ;;  %v7675_v22 = vld [vmem:[#allocation7 + $0x5c8] ss:$16 sps:$4 sm:$0xff]  }
 0x2db   : > { %3539 = vmatprep.subr.bf16.mxu1 %v7635_v27  ;;  %v7680_v27 = vld [vmem:[#allocation7 + $0x5e4] ss:$16 sps:$4 sm:$0xff]  }
 0x2dd   : > { %3088 = vmatpush1.bf16.msra.mxu0 %v7630_v19  ;;  %v7681_v19 = vld [vmem:[#allocation7 + $0x5e8] ss:$16 sps:$4 sm:$0xff]  }
 0x2de   : > { %3540 = vmatpush1.bf16.msra.mxu1 %v7633_v57  ;;  %3089 = vmatprep.subr.bf16.mxu0 %v7638_v24  ;;  %v7686_v57 = vld [vmem:[#allocation7 + $0x604] ss:$16 sps:$4 sm:$0xff]   ;;  %v7689_v24 = vld [vmem:[#allocation7 + $0x60c] ss:$16 sps:$4 sm:$0xff]  }
 0x2df   : > { %3033 = vmatmul.mubr.bf16.gmra.mrb[48].mxu0 %v8970_v23  ;;  %3541 = vmatprep.subr.bf16.mxu1 %v7641_v25  ;;  %v7684_v25 = vld [vmem:[#allocation7 + $0x600] ss:$16 sps:$4 sm:$0xff]  }
 0x2e0   : > { %3485 = vmatmul.mubr.bf16.gmra.mrb[48].mxu1 %v8970_v23  ;;  %3042 = vmatprep.mubr.bf16.mxu0 %v8976_v3  ;;  %v7659_v23 = vld [vmem:[#allocation7 + $0x56c] ss:$16 sps:$4 sm:$0xff]  }
 0x2e1   : > { %3090 = vmatpush1.bf16.msra.mxu0 %v7636_v7  ;;  %3494 = vmatprep.mubr.bf16.mxu1 %v8976_v3  ;;  %v7654_v3 = vld [vmem:[#allocation7 + $0x560] ss:$16 sps:$4 sm:$0xff]   ;;  %v7687_v7 = vld [vmem:[#allocation7 + $0x608] ss:$16 sps:$4 sm:$0xff]  }
 0x2e2   : > { %3542 = vmatpush1.bf16.msra.mxu1 %v7639_v46  ;;  %3091 = vmatprep.subr.bf16.mxu0 %v7644_v26  ;;  %v7692_v46 = vld [vmem:[#allocation7 + $0x624] ss:$16 sps:$4 sm:$0xff]   ;;  %v7693_v26 = vld [vmem:[#allocation7 + $0x628] ss:$16 sps:$4 sm:$0xff]  }
 0x2e3   : > { %3543 = vmatprep.subr.bf16.mxu1 %v7647_v16  ;;  %v7698_v16 = vld [vmem:[#allocation7 + $0x644] ss:$16 sps:$4 sm:$0xff]  }
 0x2e5   : > { %3092 = vmatpush1.bf16.msra.mxu0 %v7642_v9  ;;  %v7701_v9 = vld [vmem:[#allocation7 + $0x64c] ss:$16 sps:$4 sm:$0xff]  }
 0x2e6   : > { %3544 = vmatpush1.bf16.msra.mxu1 %v7645_v37  ;;  %3093 = vmatprep.subr.bf16.mxu0 %v7650_v15  ;;  %v7696_v37 = vld [vmem:[#allocation7 + $0x640] ss:$16 sps:$4 sm:$0xff]   ;;  %v7699_v15 = vld [vmem:[#allocation7 + $0x648] ss:$16 sps:$4 sm:$0xff]  }
 0x2e7   : > { %3043 = vmatmul.mubr.bf16.gmra.mrb[52].mxu0 %v8974_v1  ;;  %3545 = vmatprep.subr.bf16.mxu1 %v7653_v20  ;;  %v7704_v20 = vld [vmem:[#allocation7 + $0x664] ss:$16 sps:$4 sm:$0xff]  }
 0x2e8   : > { %3495 = vmatmul.mubr.bf16.gmra.mrb[52].mxu1 %v8974_v1  ;;  %3052 = vmatprep.mubr.bf16.mxu0 %v8980_v61  ;;  %v7671_v1 = vld [vmem:[#allocation7 + $0x5ac] ss:$16 sps:$4 sm:$0xff]  }
 0x2e9   : > { %3094 = vmatpush1.bf16.msra.mxu0 %v7648_v29  ;;  %3504 = vmatprep.mubr.bf16.mxu1 %v8980_v61  ;;  %v7666_v61 = vld [vmem:[#allocation7 + $0x5a0] ss:$16 sps:$4 sm:$0xff]  }
 0x2ea   : > { %3546 = vmatpush1.bf16.msra.mxu1 %v7651_v6  ;;  %3095 = vmatprep.subr.bf16.mxu0 %v7656_v14  ;;  %v7702_v29 = vld [vmem:[#allocation7 + $0x660] ss:$16 sps:$4 sm:$0xff]   ;;  %v7705_v6 = vld [vmem:[#allocation7 + $0x668] ss:$16 sps:$4 sm:$0xff]   ;;  %v7710_v14 = vld [vmem:[#allocation7 + $0x684] ss:$16 sps:$4 sm:$0xff]  }
 0x2eb   : > { %3547 = vmatprep.subr.bf16.mxu1 %v7659_v23  ;;  %v7708_v23 = vld [vmem:[#allocation7 + $0x680] ss:$16 sps:$4 sm:$0xff]  }
 0x2ed   : > { %3096 = vmatpush1.bf16.msra.mxu0 %v7654_v3  ;;  %v7711_v3 = vld [vmem:[#allocation7 + $0x688] ss:$16 sps:$4 sm:$0xff]  }
 0x2ee   : > { %3548 = vmatpush1.bf16.msra.mxu1 %v7657_v17  ;;  %3097 = vmatprep.subr.bf16.mxu0 %v7662_v56  ;;  %v7716_v17 = vld [vmem:[#allocation7 + $0x6a4] ss:$16 sps:$4 sm:$0xff]   ;;  %v7714_v56 = vld [vmem:[#allocation7 + $0x6a0] ss:$16 sps:$4 sm:$0xff]  }
 0x2ef   : > { %3053 = vmatmul.mubr.bf16.gmra.mrb[56].mxu0 %v8978_v38  ;;  %3549 = vmatprep.subr.bf16.mxu1 %v7665_v18  ;;  %v7717_v18 = vld [vmem:[#allocation7 + $0x6a8] ss:$16 sps:$4 sm:$0xff]  }
 0x2f0   : > { %3505 = vmatmul.mubr.bf16.gmra.mrb[56].mxu1 %v8978_v38  ;;  %3062 = vmatprep.mubr.bf16.mxu0 %v8984_v4  ;;  %v7683_v38 = vld [vmem:[#allocation7 + $0x5ec] ss:$16 sps:$4 sm:$0xff]  }
 0x2f1   : > { %3098 = vmatpush1.bf16.msra.mxu0 %v7660_v45  ;;  %3514 = vmatprep.mubr.bf16.mxu1 %v8984_v4  ;;  %v7678_v4 = vld [vmem:[#allocation7 + $0x5e0] ss:$16 sps:$4 sm:$0xff]   ;;  %v7722_v45 = vld [vmem:[#allocation7 + $0x6c4] ss:$16 sps:$4 sm:$0xff]  }
 0x2f2   : > { %3550 = vmatpush1.bf16.msra.mxu1 %v7663_v31  ;;  %3099 = vmatprep.subr.bf16.mxu0 %v7668_v63  ;;  %v7720_v31 = vld [vmem:[#allocation7 + $0x6c0] ss:$16 sps:$4 sm:$0xff]   ;;  %v7723_v63 = vld [vmem:[#allocation7 + $0x6c8] ss:$16 sps:$4 sm:$0xff]  }
 0x2f3   : > { %3551 = vmatprep.subr.bf16.mxu1 %v7671_v1  ;;  %v7728_v1 = vld [vmem:[#allocation7 + $0x6e4] ss:$16 sps:$4 sm:$0xff]  }
 0x2f5   : > { %3100 = vmatpush1.bf16.msra.mxu0 %v7666_v61  ;;  %v7726_v61 = vld [vmem:[#allocation7 + $0x6e0] ss:$16 sps:$4 sm:$0xff]  }
 0x2f6   : > { %3552 = vmatpush1.bf16.msra.mxu1 %v7669_v33  ;;  %3101 = vmatprep.subr.bf16.mxu0 %v7674_v30  ;;  %v7729_v33 = vld [vmem:[#allocation7 + $0x6e8] ss:$16 sps:$4 sm:$0xff]   ;;  %v7734_v30 = vld [vmem:[#allocation7 + $0x704] ss:$16 sps:$4 sm:$0xff]  }
 0x2f7   : > { %3063 = vmatmul.mubr.bf16.gmra.mrb[60].mxu0 %v8982_v53  ;;  %3553 = vmatprep.subr.bf16.mxu1 %v7677_v10  ;;  %v7732_v10 = vld [vmem:[#allocation7 + $0x700] ss:$16 sps:$4 sm:$0xff]  }
 0x2f8   : > { %3515 = vmatmul.mubr.bf16.gmra.mrb[60].mxu1 %v8982_v53  ;;  %3105 = vmatprep.mubr.bf16.mxu0 %v8701_v35  ;;  %v7695_v53 = vld [vmem:[#allocation7 + $0x62c] ss:$16 sps:$4 sm:$0xff]  }
 0x2f9   : > { %3102 = vmatpush1.bf16.msra.mxu0 %v7672_v21  ;;  %3557 = vmatprep.mubr.bf16.mxu1 %v8701_v35  ;;  %v7690_v35 = vld [vmem:[#allocation7 + $0x620] ss:$16 sps:$4 sm:$0xff]   ;;  %v7735_v21 = vld [vmem:[#allocation7 + $0x708] ss:$16 sps:$4 sm:$0xff]  }
 0x2fa   : > { %3554 = vmatpush1.bf16.msra.mxu1 %v7675_v22  ;;  %3103 = vmatprep.subr.bf16.mxu0 %v7680_v27  ;;  %v7740_v22 = vld [vmem:[#allocation7 + $0x724] ss:$16 sps:$4 sm:$0xff]   ;;  %v7738_v27 = vld [vmem:[#allocation7 + $0x720] ss:$16 sps:$4 sm:$0xff]  }
 0x2fb   : > { %3555 = vmatprep.subr.bf16.mxu1 %v7683_v38  ;;  %v7741_v38 = vld [vmem:[#allocation7 + $0x728] ss:$16 sps:$4 sm:$0xff]  }
 0x2fd   : > { %3104 = vmatpush1.bf16.msra.mxu0 %v7678_v4  ;;  %v7746_v4 = vld [vmem:[#allocation7 + $0x744] ss:$16 sps:$4 sm:$0xff]  }
 0x2fe   : > { %3556 = vmatpush1.bf16.msra.mxu1 %v7681_v19  ;;  %3186 = vmatprep.subr.bf16.mxu0 %v7686_v57  ;;  %v7744_v19 = vld [vmem:[#allocation7 + $0x740] ss:$16 sps:$4 sm:$0xff]   ;;  %v7747_v57 = vld [vmem:[#allocation7 + $0x748] ss:$16 sps:$4 sm:$0xff]  }
 0x2ff   : > { %3638 = vmatprep.subr.bf16.mxu1 %v7689_v24  ;;  %v7752_v24 = vld [vmem:[#allocation7 + $0x764] ss:$16 sps:$4 sm:$0xff]  }
 0x300   : > { %3106 = vmatmul.mubr.bf16.vlgmr.msra.gmra.mrb[32].mxu0 %v8708_v40 }
 0x301   : > { %3558 = vmatmul.mubr.bf16.vlgmr.msra.gmra.mrb[32].mxu1 %v8708_v40  ;;  %3187 = vmatpush1.bf16.msra.mxu0 %v7684_v25  ;;  %v7707_v40 = vld [vmem:[#allocation7 + $0x66c] ss:$16 sps:$4 sm:$0xff]   ;;  %v7750_v25 = vld [vmem:[#allocation7 + $0x760] ss:$16 sps:$4 sm:$0xff]  }
 0x302   : > { %3639 = vmatpush1.bf16.msra.mxu1 %v7687_v7  ;;  %3188 = vmatprep.subr.bf16.mxu0 %v7692_v46  ;;  %v7753_v7 = vld [vmem:[#allocation7 + $0x768] ss:$16 sps:$4 sm:$0xff]   ;;  %v7758_v46 = vld [vmem:[#allocation7 + $0x784] ss:$16 sps:$4 sm:$0xff]  }
 0x303   : > { %3640 = vmatprep.subr.bf16.mxu1 %v7695_v53  ;;  %3115 = vmatprep.mubr.bf16.mxu0 %v8721_v47  ;;  %v7756_v53 = vld [vmem:[#allocation7 + $0x780] ss:$16 sps:$4 sm:$0xff]  }
 0x304   : > { %3567 = vmatprep.mubr.bf16.mxu1 %v8721_v47  ;;  %v7713_v47 = vld [vmem:[#allocation7 + $0x68c] ss:$16 sps:$4 sm:$0xff]  }
 0x305   : > { %3189 = vmatpush1.bf16.msra.mxu0 %v7690_v35  ;;  %v7759_v35 = vld [vmem:[#allocation7 + $0x788] ss:$16 sps:$4 sm:$0xff]  }
 0x306   : > { %3641 = vmatpush1.bf16.msra.mxu1 %v7693_v26  ;;  %3190 = vmatprep.subr.bf16.mxu0 %v7698_v16  ;;  %v7764_v26 = vld [vmem:[#allocation7 + $0x7a4] ss:$16 sps:$4 sm:$0xff]   ;;  %v7762_v16 = vld [vmem:[#allocation7 + $0x7a0] ss:$16 sps:$4 sm:$0xff]  }
 0x307   : > { %3642 = vmatprep.subr.bf16.mxu1 %v7701_v9  ;;  %v7765_v9 = vld [vmem:[#allocation7 + $0x7a8] ss:$16 sps:$4 sm:$0xff]  }
 0x308   : > { %3116 = vmatmul.mubr.bf16.gmra.mrb[36].mxu0 %v8728_v52 }
 0x309   : > { %3568 = vmatmul.mubr.bf16.gmra.mrb[36].mxu1 %v8728_v52  ;;  %3191 = vmatpush1.bf16.msra.mxu0 %v7696_v37  ;;  %v7719_v52 = vld [vmem:[#allocation7 + $0x6ac] ss:$16 sps:$4 sm:$0xff]   ;;  %v7770_v37 = vld [vmem:[#allocation7 + $0x7c4] ss:$16 sps:$4 sm:$0xff]  }
 0x30a   : > { %3643 = vmatpush1.bf16.msra.mxu1 %v7699_v15  ;;  %3192 = vmatprep.subr.bf16.mxu0 %v7704_v20  ;;  %v7768_v15 = vld [vmem:[#allocation7 + $0x7c0] ss:$16 sps:$4 sm:$0xff]   ;;  %v7771_v20 = vld [vmem:[#allocation7 + $0x7c8] ss:$16 sps:$4 sm:$0xff]  }
 0x30b   : > { %3644 = vmatprep.subr.bf16.mxu1 %v7707_v40  ;;  %3125 = vmatprep.mubr.bf16.mxu0 %v8743_v60  ;;  %v7776_v40 = vld [vmem:[#allocation7 + $0x7e4] ss:$16 sps:$4 sm:$0xff]  }
 0x30c   : > { %3577 = vmatprep.mubr.bf16.mxu1 %v8743_v60  ;;  %v7725_v60 = vld [vmem:[#allocation7 + $0x6cc] ss:$16 sps:$4 sm:$0xff]  }
 0x30d   : > { %3193 = vmatpush1.bf16.msra.mxu0 %v7702_v29  ;;  %v7774_v29 = vld [vmem:[#allocation7 + $0x7e0] ss:$16 sps:$4 sm:$0xff]  }
 0x30e   : > { %3645 = vmatpush1.bf16.msra.mxu1 %v7705_v6  ;;  %3194 = vmatprep.subr.bf16.mxu0 %v7710_v14  ;;  %v7777_v6 = vld [vmem:[#allocation7 + $0x7e8] ss:$16 sps:$4 sm:$0xff]  }
 0x30f   : > { %3646 = vmatprep.subr.bf16.mxu1 %v7713_v47  ;;  %v7782_v14 = vld [vmem:[#allocation10 + $0x4] ss:$8 sps:$4 sm:$0xff]   ;;  %v7785_v47 = vld [vmem:[#allocation10 + $0x14] ss:$8 sps:$4 sm:$0xff]  }
 0x310   : > { %3126 = vmatmul.mubr.bf16.gmra.mrb[40].mxu0 %v8771_v32 }
 0x311   : > { %3578 = vmatmul.mubr.bf16.gmra.mrb[40].mxu1 %v8771_v32  ;;  %3195 = vmatpush1.bf16.msra.mxu0 %v7708_v23  ;;  %v7731_v32 = vld [vmem:[#allocation7 + $0x6ec] ss:$16 sps:$4 sm:$0xff]   ;;  %v7788_v23 = vld [vmem:[#allocation10 + $0x24] ss:$8 sps:$4 sm:$0xff]  }
 0x312   : > { %3647 = vmatpush1.bf16.msra.mxu1 %v7711_v3  ;;  %3196 = vmatprep.subr.bf16.mxu0 %v7716_v17  ;;  %v7786_v3 = vld [vmem:[#allocation10 + $0x20] ss:$8 sps:$4 sm:$0xff]  }
 0x313   : > { %3648 = vmatprep.subr.bf16.mxu1 %v7719_v52  ;;  %3135 = vmatprep.mubr.bf16.mxu0 %v8784_v49  ;;  %v7792_v17 = vld [vmem:[#allocation10 + $0x40] ss:$8 sps:$4 sm:$0xff]   ;;  %v7797_v52 = vld [vmem:[#allocation10 + $0x54] ss:$8 sps:$4 sm:$0xff]  }
 0x314   : > { %3587 = vmatprep.mubr.bf16.mxu1 %v8784_v49  ;;  %v7737_v49 = vld [vmem:[#allocation7 + $0x70c] ss:$16 sps:$4 sm:$0xff]  }
 0x315   : > { %3197 = vmatpush1.bf16.msra.mxu0 %v7714_v56  ;;  %v7798_v56 = vld [vmem:[#allocation10 + $0x60] ss:$8 sps:$4 sm:$0xff]  }
 0x316   : > { %3649 = vmatpush1.bf16.msra.mxu1 %v7717_v18  ;;  %3198 = vmatprep.subr.bf16.mxu0 %v7722_v45  ;;  %v7803_v18 = vld [vmem:[#allocation10 + $0x74] ss:$8 sps:$4 sm:$0xff]   ;;  %v7804_v45 = vld [vmem:[#allocation10 + $0x80] ss:$8 sps:$4 sm:$0xff]  }
 0x317   : > { %3650 = vmatprep.subr.bf16.mxu1 %v7725_v60  ;;  %v7809_v60 = vld [vmem:[#allocation10 + $0x94] ss:$8 sps:$4 sm:$0xff]  }
 0x318   : > { %3136 = vmatmul.mubr.bf16.gmra.mrb[44].mxu0 %v8797_v58 }
 0x319   : > { %3588 = vmatmul.mubr.bf16.gmra.mrb[44].mxu1 %v8797_v58  ;;  %3199 = vmatpush1.bf16.msra.mxu0 %v7720_v31  ;;  %v7743_v58 = vld [vmem:[#allocation7 + $0x72c] ss:$16 sps:$4 sm:$0xff]  }
 0x31a   : > { %3651 = vmatpush1.bf16.msra.mxu1 %v7723_v63  ;;  %3200 = vmatprep.subr.bf16.mxu0 %v7728_v1  ;;  %v7810_v31 = vld [vmem:[#allocation10 + $0xa0] ss:$8 sps:$4 sm:$0xff]   ;;  %v7815_v63 = vld [vmem:[#allocation10 + $0xb4] ss:$8 sps:$4 sm:$0xff]  }
 0x31b   : > { %3652 = vmatprep.subr.bf16.mxu1 %v7731_v32  ;;  %3145 = vmatprep.mubr.bf16.mxu0 %v8807_v2  ;;  %v7816_v1 = vld [vmem:[#allocation10 + $0xc0] ss:$8 sps:$4 sm:$0xff]   ;;  %v7821_v32 = vld [vmem:[#allocation10 + $0xd4] ss:$8 sps:$4 sm:$0xff]  }
 0x31c   : > { %3597 = vmatprep.mubr.bf16.mxu1 %v8807_v2  ;;  %v7749_v2 = vld [vmem:[#allocation7 + $0x74c] ss:$16 sps:$4 sm:$0xff]  }
 0x31d   : > { %3201 = vmatpush1.bf16.msra.mxu0 %v7726_v61  ;;  %v9784_v61 = vld [vmem:[#allocation21_spill] sm:$0xff] }
 0x31e   : > { %3653 = vmatpush1.bf16.msra.mxu1 %v7729_v33  ;;  %3202 = vmatprep.subr.bf16.mxu0 %v7734_v30  ;;  %v7824_v33 = vld [vmem:[#allocation10 + $0xe4] ss:$8 sps:$4 sm:$0xff]   ;;  %v7822_v30 = vld [vmem:[#allocation10 + $0xe0] ss:$8 sps:$4 sm:$0xff]  }
 0x31f   : > { %3654 = vmatprep.subr.bf16.mxu1 %v7737_v49  ;;  %v7827_v49 = vld [vmem:[#allocation10 + $0xf4] ss:$8 sps:$4 sm:$0xff]  }
 0x320   : > { %3146 = vmatmul.mubr.bf16.gmra.mrb[48].mxu0 %v8840_v34 }
 0x321   : > { %3598 = vmatmul.mubr.bf16.gmra.mrb[48].mxu1 %v8840_v34  ;;  %3203 = vmatpush1.bf16.msra.mxu0 %v7732_v10  ;;  %v7755_v34 = vld [vmem:[#allocation7 + $0x76c] ss:$16 sps:$4 sm:$0xff]  }
 0x322   : > { %3655 = vmatpush1.bf16.msra.mxu1 %v7735_v21  ;;  %3204 = vmatprep.subr.bf16.mxu0 %v7740_v22  ;;  %v7825_v10 = vld [vmem:[#allocation10 + $0xf0] ss:$8 sps:$4 sm:$0xff]   ;;  %v1547_v21 = vlaneseq }
 0x323   : > { %3656 = vmatprep.subr.bf16.mxu1 %v7743_v58  ;;  %3155 = vmatprep.mubr.bf16.mxu0 %v8846_v41 }
 0x324   : > { %3607 = vmatprep.mubr.bf16.mxu1 %v8846_v41  ;;  %v7761_v41 = vld [vmem:[#allocation7 + $0x78c] ss:$16 sps:$4 sm:$0xff]   ;;  %v9082_v22 = vshrl.u32 %v1547_v21, 7 }
 0x325   : > { %3205 = vmatpush1.bf16.msra.mxu0 %v7738_v27  ;;  %v1545_v27 = vld [vmem:[#allocation8] sm:$0xf] }
 0x326   : > { %3657 = vmatpush1.bf16.msra.mxu1 %v7741_v38  ;;  %3206 = vmatprep.subr.bf16.mxu0 %v7746_v4  ;;  %v1549_v58 = vsub.s32 0, %v9082_v22  ;;  %v1557_v38 = vsub.s32 2, %v9082_v22  ;;  %v1553_v4 = vsub.s32 1, %v9082_v22 }
 0x327   : > { %3658 = vmatprep.subr.bf16.mxu1 %v7749_v2  ;;  %v1561_v2 = vsub.s32 3, %v9082_v22 }
 0x328   : > { %3156 = vmatmul.mubr.bf16.gmra.mrb[52].mxu0 %v8860_v54 }
 0x329   : > { %3608 = vmatmul.mubr.bf16.gmra.mrb[52].mxu1 %v8860_v54  ;;  %3207 = vmatpush1.bf16.msra.mxu0 %v7744_v19  ;;  %v7767_v54 = vld [vmem:[#allocation7 + $0x7ac] ss:$16 sps:$4 sm:$0xff]   ;;  %v9090_v19 = vrot.slane %v1545_v27, %v1549_v58 }
 0x32a   : > { %3659 = vmatpush1.bf16.msra.mxu1 %v7747_v57  ;;  %3208 = vmatprep.subr.bf16.mxu0 %v7752_v24  ;;  %v9092_v57 = vrot.slane %v1545_v27, %v1557_v38  ;;  %v9096_v24 = vrot.slane %v1545_v27, %v1553_v4 }
 0x32b   : > { %3660 = vmatprep.subr.bf16.mxu1 %v7755_v34  ;;  %3165 = vmatprep.mubr.bf16.mxu0 %v8874_v11  ;;  %v9098_v34 = vrot.slane %v1545_v27, %v1561_v2  ;;  %v7836_v2 = vld [vmem:[#allocation10 + $0x124] ss:$8 sps:$4 sm:$0xff]  }
 0x32c   : > { %3617 = vmatprep.mubr.bf16.mxu1 %v8874_v11  ;;  %v7773_v11 = vld [vmem:[#allocation7 + $0x7cc] ss:$16 sps:$4 sm:$0xff]  }
 0x32d   : > { %3209 = vmatpush1.bf16.msra.mxu0 %v7750_v25 }
 0x32e   : > { %3661 = vmatpush1.bf16.msra.mxu1 %v7753_v7  ;;  %3210 = vmatprep.subr.bf16.mxu0 %v7758_v46 }
 0x32f   : > { %3662 = vmatprep.subr.bf16.mxu1 %v7761_v41 }
 0x330   : > { %3166 = vmatmul.mubr.bf16.gmra.mrb[56].mxu0 %v8908_v48 }
 0x331   : > { %3618 = vmatmul.mubr.bf16.gmra.mrb[56].mxu1 %v8908_v48  ;;  %3211 = vmatpush1.bf16.msra.mxu0 %v7756_v53  ;;  %v7779_v48 = vld [vmem:[#allocation7 + $0x7ec] ss:$16 sps:$4 sm:$0xff]  }
 0x332   : > { %3663 = vmatpush1.bf16.msra.mxu1 %v7759_v35  ;;  %3212 = vmatprep.subr.bf16.mxu0 %v7764_v26 }
 0x333   : > { %3664 = vmatprep.subr.bf16.mxu1 %v7767_v54  ;;  %3175 = vmatprep.mubr.bf16.mxu0 %v8914_v28 }
 0x334   : > { %3627 = vmatprep.mubr.bf16.mxu1 %v8914_v28  ;;  %v7780_v28 = vld [vmem:[#allocation10] ss:$8 sps:$4 sm:$0xff]  }
 0x335   : > { %3213 = vmatpush1.bf16.msra.mxu0 %v7762_v16 }
 0x336   : > { %3665 = vmatpush1.bf16.msra.mxu1 %v7765_v9  ;;  %3214 = vmatprep.subr.bf16.mxu0 %v7770_v37 }
 0x337   : > { %3666 = vmatprep.subr.bf16.mxu1 %v7773_v11 }
 0x338   : > { %3176 = vmatmul.mubr.bf16.gmra.mrb[60].mxu0 %v8924_v13 }
 0x339   : > { %3628 = vmatmul.mubr.bf16.gmra.mrb[60].mxu1 %v8924_v13  ;;  %3215 = vmatpush1.bf16.msra.mxu0 %v7768_v15  ;;  %v7783_v13 = vld [vmem:[#allocation10 + $0x10] ss:$8 sps:$4 sm:$0xff]   ;;  %v7876_v15 = vld [vmem:[%s9730_s6 + $0x40] sm:$0xff]  }
 0x33a   : > { %3667 = vmatpush1.bf16.msra.mxu1 %v7771_v20  ;;  %3216 = vmatprep.subr.bf16.mxu0 %v7776_v40  ;;  %v7877_v20 = vld [vmem:[%s9730_s6] sm:$0xff]   ;;  %v7878_v40 = vld [vmem:[%s9730_s6 + $0x48] sm:$0xff]  }
 0x33b   : > { %3668 = vmatprep.subr.bf16.mxu1 %v7779_v48  ;;  %3218 = vmatprep.mubr.bf16.mxu0 %v8706_v39 }
 0x33c   : > { %3670 = vmatprep.mubr.bf16.mxu1 %v8706_v39  ;;  %v7791_v39 = vld [vmem:[#allocation10 + $0x34] ss:$8 sps:$4 sm:$0xff]  }
 0x33d   : > { %3217 = vmatpush1.bf16.msra.mxu0 %v7774_v29 }
 0x33e   : > { %3669 = vmatpush1.bf16.msra.mxu1 %v7777_v6  ;;  %4243 = vmatprep.subr.bf16.mxu0 %v7782_v14 }
 0x33f   : > { %6599 = vmatprep.subr.bf16.mxu1 %v7876_v15  ;;  %v7834_v15 = vld [vmem:[#allocation10 + $0x120] ss:$8 sps:$4 sm:$0xff]  }
 0x340   : > { %3219 = vmatmul.mubr.bf16.vlgmr.msra.gmra.mrb[32].mxu0 %v8713_v43 }
 0x341   : > { %3671 = vmatmul.mubr.bf16.vlgmr.msra.gmra.mrb[32].mxu1 %v8713_v43  ;;  %3228 = vmatprep.mubr.bf16.mxu0 %v8726_v51  ;;  %v7789_v43 = vld [vmem:[#allocation10 + $0x30] ss:$8 sps:$4 sm:$0xff]  }
 0x342   : > { %3680 = vmatprep.mubr.bf16.mxu1 %v8726_v51  ;;  %4244 = vmatpush1.bf16.msra.mxu0 %v7780_v28  ;;  %v7794_v51 = vld [vmem:[#allocation10 + $0x44] ss:$8 sps:$4 sm:$0xff]  }
 0x343   : > { %4245 = vmatprep.subr.bf16.mxu0 %v7785_v47  ;;  %6600 = vmatpush3.bf16.msra.mxu1 %v7877_v20 }
 0x344   : > { %6601 = vmatprep.subr.bf16.mxu1 %v7878_v40 }
 0x346   : > { %4246 = vmatpush1.bf16.msra.mxu0 %v7783_v13 }
 0x347   : > { %4247 = vmatprep.subr.bf16.mxu0 %v7788_v23 }
 0x348   : > { %3229 = vmatmul.mubr.bf16.gmra.mrb[36].mxu0 %v8733_v55 }
 0x349   : > { %3681 = vmatmul.mubr.bf16.gmra.mrb[36].mxu1 %v8733_v55  ;;  %3238 = vmatprep.mubr.bf16.mxu0 %v8746_v62  ;;  %v7795_v55 = vld [vmem:[#allocation10 + $0x50] ss:$8 sps:$4 sm:$0xff]  }
 0x34a   : > { %3690 = vmatprep.mubr.bf16.mxu1 %v8746_v62  ;;  %4248 = vmatpush1.bf16.msra.mxu0 %v7786_v3  ;;  %v7800_v62 = vld [vmem:[#allocation10 + $0x64] ss:$8 sps:$4 sm:$0xff]  }
 0x34b   : > { %4249 = vmatprep.subr.bf16.mxu0 %v7791_v39 }
 0x34e   : > { %4250 = vmatpush1.bf16.msra.mxu0 %v7789_v43  ;;  %v7879_v43 = vld [vmem:[%s9730_s6 + $0x8] sm:$0xff]  }
 0x34f   : > { %4251 = vmatprep.subr.bf16.mxu0 %v7794_v51  ;;  %6602 = vmatpush3.bf16.msra.mxu1 %v7879_v43 }
 0x350   : > { %3239 = vmatmul.mubr.bf16.gmra.mrb[40].mxu0 %v8778_v44 }
 0x351   : > { %3691 = vmatmul.mubr.bf16.gmra.mrb[40].mxu1 %v8778_v44  ;;  %3248 = vmatprep.mubr.bf16.mxu0 %v8786_v50  ;;  %v7801_v44 = vld [vmem:[#allocation10 + $0x70] ss:$8 sps:$4 sm:$0xff]  }
 0x352   : > { %3700 = vmatprep.mubr.bf16.mxu1 %v8786_v50  ;;  %4252 = vmatpush1.bf16.msra.mxu0 %v7792_v17  ;;  %v7806_v50 = vld [vmem:[#allocation10 + $0x84] ss:$8 sps:$4 sm:$0xff]  }
 0x353   : > { %4253 = vmatprep.subr.bf16.mxu0 %v7797_v52 }
 0x356   : > { %4254 = vmatpush1.bf16.msra.mxu0 %v7795_v55  ;;  %v7880_v55 = vld [vmem:[%s9730_s6 + $0x50] sm:$0xff]  }
 0x357   : > { %4255 = vmatprep.subr.bf16.mxu0 %v7800_v62  ;;  %6603 = vmatprep.subr.bf16.mxu1 %v7880_v55 }
 0x358   : > { %3249 = vmatmul.mubr.bf16.gmra.mrb[44].mxu0 %v8799_v59 }
 0x359   : > { %3701 = vmatmul.mubr.bf16.gmra.mrb[44].mxu1 %v8799_v59  ;;  %3258 = vmatprep.mubr.bf16.mxu0 %v8809_v0  ;;  %v7807_v59 = vld [vmem:[#allocation10 + $0x90] ss:$8 sps:$4 sm:$0xff]  }
 0x35a   : > { %3710 = vmatprep.mubr.bf16.mxu1 %v8809_v0  ;;  %4256 = vmatpush1.bf16.msra.mxu0 %v7798_v56  ;;  %v7812_v0 = vld [vmem:[#allocation10 + $0xa4] ss:$8 sps:$4 sm:$0xff]  }
 0x35b   : > { %4257 = vmatprep.subr.bf16.mxu0 %v7803_v18 }
 0x35e   : > { %4258 = vmatpush1.bf16.msra.mxu0 %v7801_v44  ;;  %v7828_v44 = vld [vmem:[#allocation10 + $0x100] ss:$8 sps:$4 sm:$0xff]  }
 0x35f   : > { %4259 = vmatprep.subr.bf16.mxu0 %v7806_v50 }
 0x360   : > { %3259 = vmatmul.mubr.bf16.gmra.mrb[48].mxu0 %v8842_v36 }
 0x361   : > { %3711 = vmatmul.mubr.bf16.gmra.mrb[48].mxu1 %v8842_v36  ;;  %3268 = vmatprep.mubr.bf16.mxu0 %v8848_v42  ;;  %v7813_v36 = vld [vmem:[#allocation10 + $0xb0] ss:$8 sps:$4 sm:$0xff]  }
 0x362   : > { %3720 = vmatprep.mubr.bf16.mxu1 %v8848_v42  ;;  %4260 = vmatpush1.bf16.msra.mxu0 %v7804_v45  ;;  %v7818_v42 = vld [vmem:[#allocation10 + $0xc4] ss:$8 sps:$4 sm:$0xff]  }
 0x363   : > { %4261 = vmatprep.subr.bf16.mxu0 %v7809_v60 }
 0x366   : > { %4262 = vmatpush1.bf16.msra.mxu0 %v7807_v59 }
 0x367   : > { %4263 = vmatprep.subr.bf16.mxu0 %v7812_v0  ;;  %v7833_v0 = vld [vmem:[#allocation10 + $0x114] ss:$8 sps:$4 sm:$0xff]  }
 0x368   : > { %3269 = vmatmul.mubr.bf16.gmra.mrb[52].mxu0 %v8868_v8 }
 0x369   : > { %3721 = vmatmul.mubr.bf16.gmra.mrb[52].mxu1 %v8868_v8  ;;  %3278 = vmatprep.mubr.bf16.mxu0 %v8876_v12  ;;  %v7819_v8 = vld [vmem:[#allocation10 + $0xd0] ss:$8 sps:$4 sm:$0xff]  }
 0x36a   : > { %3730 = vmatprep.mubr.bf16.mxu1 %v8876_v12  ;;  %4264 = vmatpush1.bf16.msra.mxu0 %v7810_v31  ;;  %v9785_v12 = vld [vmem:[#allocation22_spill] sm:$0xff] }
 0x36b   : > { %4265 = vmatprep.subr.bf16.mxu0 %v7815_v63 }
 0x36e   : > { %4266 = vmatpush1.bf16.msra.mxu0 %v7813_v36 }
 0x36f   : > { %4267 = vmatprep.subr.bf16.mxu0 %v7818_v42 }
 0x370   : > { %3279 = vmatmul.mubr.bf16.gmra.mrb[56].mxu0 %v8910_v5 }
 0x371   : > { %3731 = vmatmul.mubr.bf16.gmra.mrb[56].mxu1 %v8910_v5  ;;  %3288 = vmatprep.mubr.bf16.mxu0 %v9784_v61  ;;  %v7830_v5 = vld [vmem:[#allocation10 + $0x104] ss:$8 sps:$4 sm:$0xff]  }
 0x372   : > { %3740 = vmatprep.mubr.bf16.mxu1 %v9784_v61  ;;  %4268 = vmatpush1.bf16.msra.mxu0 %v7816_v1  ;;  %v7881_v1 = vld [vmem:[%s9730_s6 + $0x10] sm:$0xff]  }
 0x373   : > { %4269 = vmatprep.subr.bf16.mxu0 %v7821_v32  ;;  %6604 = vmatpush3.bf16.msra.mxu1 %v7881_v1 }
 0x376   : > { %4270 = vmatpush1.bf16.msra.mxu0 %v7819_v8 }
 0x377   : > { %4271 = vmatprep.subr.bf16.mxu0 %v7824_v33  ;;  %v7882_v33 = vld [vmem:[%s9730_s6 + $0x58] sm:$0xff]  }
 0x378   : > { %3289 = vmatmul.mubr.bf16.gmra.mrb[60].mxu0 %v9785_v12  ;;  %6605 = vmatprep.subr.bf16.mxu1 %v7882_v33  ;;  %v7840_v33 = vld [vmem:[#allocation10 + $0x140] ss:$8 sps:$4 sm:$0xff]  }
 0x379   : > { %3741 = vmatmul.mubr.bf16.gmra.mrb[60].mxu1 %v9785_v12 }
 0x37a   : > { %4272 = vmatpush1.bf16.msra.mxu0 %v7822_v30 }
 0x37b   : > { %4273 = vmatprep.subr.bf16.mxu0 %v7827_v49 }
 0x37e   : > { %4274 = vmatpush1.bf16.msra.mxu0 %v7825_v10 }
 0x37f   : > { %4356 = vmatprep.subr.bf16.mxu0 %v7830_v5  ;;  %v7831_v5 = vld [vmem:[#allocation10 + $0x110] ss:$8 sps:$4 sm:$0xff]  }
 0x413   : > { %v3220_v25 = vpop.f32.mrb[32].mxu0 }
 0x414   : > { %v6883_v7 = vadd.f32 %v3220_v25, %v9090_v19  ;;  %v3672_v46 = vpop.f32.mrb[32].mxu1  ;;  %v3222_v41 = vpop.f32.mrb[33].mxu0 }
 0x415   : > { %v6915_v53 = vadd.f32 %v3672_v46, %v9092_v57  ;;  %v6884_v35 = vadd.f32 %v3222_v41, %v9096_v24  ;;  %v3674_v26 = vpop.f32.mrb[33].mxu1  ;;  %v3224_v54 = vpop.f32.mrb[34].mxu0 }
 0x416   : > { %v6916_v16 = vadd.f32 %v3674_v26, %v9098_v34  ;;  %v6885_v9 = vadd.f32 %v3224_v54, %v9090_v19  ;;  %v3676_v37 = vpop.f32.mrb[34].mxu1  ;;  %v3226_v11 = vpop.f32.mrb[35].mxu0  ;;  %v3751_v14 = vmax.f32 %v6883_v7, 0.0 }
 0x417   : > { %v6917_v48 = vadd.f32 %v3676_v37, %v9092_v57  ;;  %v6886_v29 = vadd.f32 %v3226_v11, %v9096_v24  ;;  %v3678_v6 = vpop.f32.mrb[35].mxu1  ;;  %v3753_v13 = vmax.f32 %v6915_v53, 0.0  ;;  %v3752_v23 = vmax.f32 %v6884_v35, 0.0  ;;  %v7883_v53 = vld [vmem:[%s9730_s6 + $0x18] sm:$0xff]  }
 0x418   : > { %v3755_v28 = vmax.f32 %v6885_v9, 0.0  ;;  %v6918_v47 = vadd.f32 %v3678_v6, %v9098_v34  ;;  %v3754_v51 = vmax.f32 %v6916_v16, 0.0  ;;  %v7884_v16 = vld [vmem:[%s9730_s6 + $0x60] sm:$0xff]   ;;  %6606 = vmatpush3.bf16.msra.mxu1 %v7883_v53 }
 0x419   : > { %v3757_v3 = vmax.f32 %v6917_v48, 0.0  ;;  %v3756_v39 = vmax.f32 %v6886_v29, 0.0  ;;  %v7839_v6 = vld [vmem:[#allocation10 + $0x134] ss:$8 sps:$4 sm:$0xff]   ;;  %6607 = vmatprep.subr.bf16.mxu1 %v7884_v16  ;;  %v7843_v16 = vld [vmem:[#allocation10 + $0x150] ss:$8 sps:$4 sm:$0xff]  }
 0x41a   : > { %v3815_v17 = vpack.c.bf16 %v3755_v28, %v3751_v14  ;;  %v3758_v52 = vmax.f32 %v6918_v47, 0.0 }
 0x41b   : > { %v9123_v62 = vpack.c.bf16 %v3757_v3, %v3753_v13  ;;  %v3816_v56 = vpack.c.bf16 %v3756_v39, %v3752_v23  ;;  %v3230_v18 = vpop.f32.mrb[36].mxu0  ;;  %v7885_v23 = vld [vmem:[%s9730_s6 + $0x20] sm:$0xff]  }
 0x41c   : > { %v9125_v50 = vpack.c.bf16 %v3758_v52, %v3754_v51  ;;  %v6887_v45 = vadd.f32 %v3230_v18, %v9090_v19  ;;  %v3682_v60 = vpop.f32.mrb[36].mxu1  ;;  %v3232_v59 = vpop.f32.mrb[37].mxu0  ;;  %v7837_v18 = vld [vmem:[#allocation10 + $0x130] ss:$8 sps:$4 sm:$0xff]   ;;  %6608 = vmatpush3.bf16.msra.mxu1 %v7885_v23 }
 0x41d   : > { %v6919_v31 = vadd.f32 %v3682_v60, %v9092_v57  ;;  %v6888_v63 = vadd.f32 %v3232_v59, %v9096_v24  ;;  %v3684_v36 = vpop.f32.mrb[37].mxu1  ;;  %v3234_v42 = vpop.f32.mrb[38].mxu0  ;;  %4275 = vmatprep.mubr.bf16.mxu0 %v3816_v56  ;;  %v7842_v59 = vld [vmem:[#allocation10 + $0x144] ss:$8 sps:$4 sm:$0xff]  }
 0x41e   : > { %v6920_v32 = vadd.f32 %v3684_v36, %v9098_v34  ;;  %v6889_v61 = vadd.f32 %v3234_v42, %v9090_v19  ;;  %v3686_v8 = vpop.f32.mrb[38].mxu1  ;;  %v3236_v12 = vpop.f32.mrb[39].mxu0  ;;  %4276 = vmatmul.mubr.bf16.vlgmr.msra.gmra.mrb[64].mxu0 %v3815_v17  ;;  %v3759_v21 = vmax.f32 %v6887_v45, 0.0  ;;  %v7886_v17 = vld [vmem:[%s9730_s6 + $0x68] sm:$0xff]  }
 0x41f   : > { %v6921_v30 = vadd.f32 %v3686_v8, %v9092_v57  ;;  %v6890_v49 = vadd.f32 %v3236_v12, %v9096_v24  ;;  %v3688_v10 = vpop.f32.mrb[39].mxu1  ;;  %4357 = vmatpush1.bf16.msra.mxu0 %v7828_v44  ;;  %v3761_v25 = vmax.f32 %v6919_v31, 0.0  ;;  %v3760_v7 = vmax.f32 %v6888_v63, 0.0  ;;  %6609 = vmatprep.subr.bf16.mxu1 %v7886_v17 }
 0x420   : > { %v3763_v27 = vmax.f32 %v6889_v61, 0.0  ;;  %v6922_v38 = vadd.f32 %v3688_v10, %v9098_v34  ;;  %4358 = vmatprep.subr.bf16.mxu0 %v7833_v0  ;;  %v3762_v35 = vmax.f32 %v6920_v32, 0.0 }
 0x421   : > { %v3765_v46 = vmax.f32 %v6921_v30, 0.0  ;;  %v3764_v41 = vmax.f32 %v6890_v49, 0.0 }
 0x422   : > { %v3819_v26 = vpack.c.bf16 %v3763_v27, %v3759_v21  ;;  %v3766_v54 = vmax.f32 %v6922_v38, 0.0  ;;  %v7845_v21 = vld [vmem:[#allocation10 + $0x154] ss:$8 sps:$4 sm:$0xff]  }
 0x423   : > { %v9147_v9 = vpack.c.bf16 %v3765_v46, %v3761_v25  ;;  %v3820_v37 = vpack.c.bf16 %v3764_v41, %v3760_v7  ;;  %v3240_v11 = vpop.f32.mrb[40].mxu0  ;;  %4359 = vmatpush1.bf16.msra.mxu0 %v7831_v5 }
 0x424   : > { %v9149_v20 = vpack.c.bf16 %v3766_v54, %v3762_v35  ;;  %v6891_v40 = vadd.f32 %v3240_v11, %v9090_v19  ;;  %v3692_v48 = vpop.f32.mrb[40].mxu1  ;;  %v3242_v29 = vpop.f32.mrb[41].mxu0  ;;  %4360 = vmatprep.subr.bf16.mxu0 %v7836_v2 }
 0x425   : > { %v6923_v14 = vadd.f32 %v3692_v48, %v9092_v57  ;;  %v6892_v28 = vadd.f32 %v3242_v29, %v9096_v24  ;;  %v3694_v47 = vpop.f32.mrb[41].mxu1  ;;  %v3244_v13 = vpop.f32.mrb[42].mxu0  ;;  %4285 = vmatprep.mubr.bf16.mxu0 %v3820_v37 }
 0x426   : > { %v6924_v3 = vadd.f32 %v3694_v47, %v9098_v34  ;;  %v6893_v39 = vadd.f32 %v3244_v13, %v9090_v19  ;;  %v3696_v43 = vpop.f32.mrb[42].mxu1  ;;  %v3246_v51 = vpop.f32.mrb[43].mxu0  ;;  %4286 = vmatmul.mubr.bf16.gmra.mrb[68].mxu0 %v3819_v26  ;;  %v3767_v44 = vmax.f32 %v6891_v40, 0.0  ;;  %v7848_v40 = vld [vmem:[#allocation10 + $0x164] ss:$8 sps:$4 sm:$0xff]  }
 0x427   : > { %v6925_v52 = vadd.f32 %v3696_v43, %v9092_v57  ;;  %v6894_v55 = vadd.f32 %v3246_v51, %v9096_v24  ;;  %v3698_v56 = vpop.f32.mrb[43].mxu1  ;;  %4361 = vmatpush1.bf16.msra.mxu0 %v7834_v15  ;;  %v3769_v0 = vmax.f32 %v6923_v14, 0.0  ;;  %v3768_v31 = vmax.f32 %v6892_v28, 0.0  ;;  %v7846_v43 = vld [vmem:[#allocation10 + $0x160] ss:$8 sps:$4 sm:$0xff]  }
 0x428   : > { %v3771_v45 = vmax.f32 %v6893_v39, 0.0  ;;  %v6926_v60 = vadd.f32 %v3698_v56, %v9098_v34  ;;  %4362 = vmatprep.subr.bf16.mxu0 %v7839_v6  ;;  %v3770_v42 = vmax.f32 %v6924_v3, 0.0  ;;  %v7851_v56 = vld [vmem:[#allocation10 + $0x174] ss:$8 sps:$4 sm:$0xff]  }
 0x429   : > { %v3773_v63 = vmax.f32 %v6925_v52, 0.0  ;;  %v3772_v36 = vmax.f32 %v6894_v55, 0.0 }
 0x42a   : > { %v3823_v1 = vpack.c.bf16 %v3771_v45, %v3767_v44  ;;  %v3774_v32 = vmax.f32 %v6926_v60, 0.0 }
 0x42b   : > { %v9165_v61 = vpack.c.bf16 %v3773_v63, %v3769_v0  ;;  %v3824_v8 = vpack.c.bf16 %v3772_v36, %v3768_v31  ;;  %v3250_v12 = vpop.f32.mrb[44].mxu0  ;;  %4363 = vmatpush1.bf16.msra.mxu0 %v7837_v18 }
 0x42c   : > { %v9167_v30 = vpack.c.bf16 %v3774_v32, %v3770_v42  ;;  %v6895_v49 = vadd.f32 %v3250_v12, %v9090_v19  ;;  %v3702_v10 = vpop.f32.mrb[44].mxu1  ;;  %v3252_v5 = vpop.f32.mrb[45].mxu0  ;;  %4364 = vmatprep.subr.bf16.mxu0 %v7842_v59  ;;  %v7849_v32 = vld [vmem:[#allocation10 + $0x170] ss:$8 sps:$4 sm:$0xff]  }
 0x42d   : > { %v6927_v27 = vadd.f32 %v3702_v10, %v9092_v57  ;;  %v6896_v38 = vadd.f32 %v3252_v5, %v9096_v24  ;;  %v3704_v2 = vpop.f32.mrb[45].mxu1  ;;  %v3254_v25 = vpop.f32.mrb[46].mxu0  ;;  %4295 = vmatprep.mubr.bf16.mxu0 %v3824_v8 }
 0x42e   : > { %v6928_v7 = vadd.f32 %v3704_v2, %v9098_v34  ;;  %v6897_v46 = vadd.f32 %v3254_v25, %v9090_v19  ;;  %v3706_v41 = vpop.f32.mrb[46].mxu1  ;;  %v3256_v53 = vpop.f32.mrb[47].mxu0  ;;  %4296 = vmatmul.mubr.bf16.gmra.mrb[72].mxu0 %v3823_v1  ;;  %v3775_v37 = vmax.f32 %v6895_v49, 0.0  ;;  %v7854_v49 = vld [vmem:[#allocation10 + $0x184] ss:$8 sps:$4 sm:$0xff]  }
 0x42f   : > { %v6929_v35 = vadd.f32 %v3706_v41, %v9092_v57  ;;  %v6898_v26 = vadd.f32 %v3256_v53, %v9096_v24  ;;  %v3708_v54 = vpop.f32.mrb[47].mxu1  ;;  %4365 = vmatpush1.bf16.msra.mxu0 %v7840_v33  ;;  %v3777_v48 = vmax.f32 %v6927_v27, 0.0  ;;  %v3776_v29 = vmax.f32 %v6896_v38, 0.0  ;;  %v7852_v53 = vld [vmem:[#allocation10 + $0x180] ss:$8 sps:$4 sm:$0xff]  }
 0x430   : > { %v3779_v11 = vmax.f32 %v6897_v46, 0.0  ;;  %v6930_v15 = vadd.f32 %v3708_v54, %v9098_v34  ;;  %4366 = vmatprep.subr.bf16.mxu0 %v7845_v21  ;;  %v3778_v28 = vmax.f32 %v6928_v7, 0.0 }
 0x431   : > { %v3781_v6 = vmax.f32 %v6929_v35, 0.0  ;;  %v3780_v14 = vmax.f32 %v6898_v26, 0.0 }
 0x432   : > { %v3827_v47 = vpack.c.bf16 %v3779_v11, %v3775_v37  ;;  %v3782_v13 = vmax.f32 %v6930_v15, 0.0  ;;  %v7857_v37 = vld [vmem:[#allocation10 + $0x194] ss:$8 sps:$4 sm:$0xff]  }
 0x433   : > { %v9177_v23 = vpack.c.bf16 %v3781_v6, %v3777_v48  ;;  %v3828_v3 = vpack.c.bf16 %v3780_v14, %v3776_v29  ;;  %v3260_v39 = vpop.f32.mrb[48].mxu0  ;;  %4367 = vmatpush1.bf16.msra.mxu0 %v7843_v16 }
 0x434   : > { %v9179_v51 = vpack.c.bf16 %v3782_v13, %v3778_v28  ;;  %v6899_v17 = vadd.f32 %v3260_v39, %v9090_v19  ;;  %v3712_v52 = vpop.f32.mrb[48].mxu1  ;;  %v3262_v55 = vpop.f32.mrb[49].mxu0  ;;  %4368 = vmatprep.subr.bf16.mxu0 %v7848_v40  ;;  %v7855_v39 = vld [vmem:[#allocation10 + $0x190] ss:$8 sps:$4 sm:$0xff]  }
 0x435   : > { %v6931_v18 = vadd.f32 %v3712_v52, %v9092_v57  ;;  %v6900_v44 = vadd.f32 %v3262_v55, %v9096_v24  ;;  %v3714_v45 = vpop.f32.mrb[49].mxu1  ;;  %v3264_v60 = vpop.f32.mrb[50].mxu0  ;;  %4305 = vmatprep.mubr.bf16.mxu0 %v3828_v3  ;;  %v7860_v55 = vld [vmem:[#allocation10 + $0x1a4] ss:$8 sps:$4 sm:$0xff]  }
 0x436   : > { %v6932_v59 = vadd.f32 %v3714_v45, %v9098_v34  ;;  %v6901_v0 = vadd.f32 %v3264_v60, %v9090_v19  ;;  %v3716_v31 = vpop.f32.mrb[50].mxu1  ;;  %v3266_v63 = vpop.f32.mrb[51].mxu0  ;;  %4306 = vmatmul.mubr.bf16.gmra.mrb[76].mxu0 %v3827_v47  ;;  %v3783_v8 = vmax.f32 %v6899_v17, 0.0 }
 0x437   : > { %v6933_v36 = vadd.f32 %v3716_v31, %v9092_v57  ;;  %v6902_v42 = vadd.f32 %v3266_v63, %v9096_v24  ;;  %v3718_v1 = vpop.f32.mrb[51].mxu1  ;;  %4369 = vmatpush1.bf16.msra.mxu0 %v7846_v43  ;;  %v3785_v10 = vmax.f32 %v6931_v18, 0.0  ;;  %v3784_v5 = vmax.f32 %v6900_v44, 0.0 }
 0x438   : > { %v3787_v12 = vmax.f32 %v6901_v0, 0.0  ;;  %v6934_v33 = vadd.f32 %v3718_v1, %v9098_v34  ;;  %4370 = vmatprep.subr.bf16.mxu0 %v7851_v56  ;;  %v3786_v38 = vmax.f32 %v6932_v59, 0.0 }
 0x439   : > { %v3789_v21 = vmax.f32 %v6933_v36, 0.0  ;;  %v3788_v27 = vmax.f32 %v6902_v42, 0.0  ;;  %v7858_v42 = vld [vmem:[#allocation10 + $0x1a0] ss:$8 sps:$4 sm:$0xff]  }
 0x43a   : > { %v3831_v2 = vpack.c.bf16 %v3787_v12, %v3783_v8  ;;  %v3790_v25 = vmax.f32 %v6934_v33, 0.0  ;;  %v7863_v33 = vld [vmem:[#allocation10 + $0x1b4] ss:$8 sps:$4 sm:$0xff]  }
 0x43b   : > { %v9189_v7 = vpack.c.bf16 %v3789_v21, %v3785_v10  ;;  %v3832_v46 = vpack.c.bf16 %v3788_v27, %v3784_v5  ;;  %v3270_v41 = vpop.f32.mrb[52].mxu0  ;;  %4371 = vmatpush1.bf16.msra.mxu0 %v7849_v32 }
 0x43c   : > { %v9191_v35 = vpack.c.bf16 %v3790_v25, %v3786_v38  ;;  %v6903_v26 = vadd.f32 %v3270_v41, %v9090_v19  ;;  %v3722_v54 = vpop.f32.mrb[52].mxu1  ;;  %v3272_v16 = vpop.f32.mrb[53].mxu0  ;;  %4372 = vmatprep.subr.bf16.mxu0 %v7854_v49 }
 0x43d   : > { %v6935_v11 = vadd.f32 %v3722_v54, %v9092_v57  ;;  %v6904_v15 = vadd.f32 %v3272_v16, %v9096_v24  ;;  %v3724_v40 = vpop.f32.mrb[53].mxu1  ;;  %v3274_v48 = vpop.f32.mrb[54].mxu0  ;;  %4315 = vmatprep.mubr.bf16.mxu0 %v3832_v46 }
 0x43e   : > { %v6936_v29 = vadd.f32 %v3724_v40, %v9098_v34  ;;  %v6905_v6 = vadd.f32 %v3274_v48, %v9090_v19  ;;  %v3726_v14 = vpop.f32.mrb[54].mxu1  ;;  %v3276_v28 = vpop.f32.mrb[55].mxu0  ;;  %4316 = vmatmul.mubr.bf16.gmra.mrb[80].mxu0 %v3831_v2  ;;  %v3791_v43 = vmax.f32 %v6903_v26, 0.0  ;;  %v7861_v26 = vld [vmem:[#allocation10 + $0x1b0] ss:$8 sps:$4 sm:$0xff]  }
 0x43f   : > { %v6937_v47 = vadd.f32 %v3726_v14, %v9092_v57  ;;  %v6906_v13 = vadd.f32 %v3276_v28, %v9096_v24  ;;  %v3728_v3 = vpop.f32.mrb[55].mxu1  ;;  %4373 = vmatpush1.bf16.msra.mxu0 %v7852_v53  ;;  %v3793_v56 = vmax.f32 %v6935_v11, 0.0  ;;  %v3792_v18 = vmax.f32 %v6904_v15, 0.0  ;;  %v7866_v11 = vld [vmem:[#allocation10 + $0x1c4] ss:$8 sps:$4 sm:$0xff]  }
 0x440   : > { %v3795_v17 = vmax.f32 %v6905_v6, 0.0  ;;  %v6938_v52 = vadd.f32 %v3728_v3, %v9098_v34  ;;  %4374 = vmatprep.subr.bf16.mxu0 %v7857_v37  ;;  %v3794_v60 = vmax.f32 %v6936_v29, 0.0 }
 0x441   : > { %v3797_v44 = vmax.f32 %v6937_v47, 0.0  ;;  %v3796_v45 = vmax.f32 %v6906_v13, 0.0 }
 0x442   : > { %v3835_v59 = vpack.c.bf16 %v3795_v17, %v3791_v43  ;;  %v3798_v0 = vmax.f32 %v6938_v52, 0.0 }
 0x443   : > { %v9201_v31 = vpack.c.bf16 %v3797_v44, %v3793_v56  ;;  %v3836_v63 = vpack.c.bf16 %v3796_v45, %v3792_v18  ;;  %v3280_v36 = vpop.f32.mrb[56].mxu0  ;;  %4375 = vmatpush1.bf16.msra.mxu0 %v7855_v39  ;;  %v7864_v39 = vld [vmem:[#allocation10 + $0x1c0] ss:$8 sps:$4 sm:$0xff]   ;;  %v7869_v56 = vld [vmem:[#allocation10 + $0x1d4] ss:$8 sps:$4 sm:$0xff]  }
 0x444   : > { %v9203_v1 = vpack.c.bf16 %v3798_v0, %v3794_v60  ;;  %v6907_v32 = vadd.f32 %v3280_v36, %v9090_v19  ;;  %v3732_v8 = vpop.f32.mrb[56].mxu1  ;;  %v3282_v12 = vpop.f32.mrb[57].mxu0  ;;  %4376 = vmatprep.subr.bf16.mxu0 %v7860_v55 }
 0x445   : > { %v6939_v49 = vadd.f32 %v3732_v8, %v9092_v57  ;;  %v6908_v10 = vadd.f32 %v3282_v12, %v9096_v24  ;;  %v3734_v5 = vpop.f32.mrb[57].mxu1  ;;  %v3284_v21 = vpop.f32.mrb[58].mxu0  ;;  %4325 = vmatprep.mubr.bf16.mxu0 %v3836_v63  ;;  %v7867_v12 = vld [vmem:[#allocation10 + $0x1d0] ss:$8 sps:$4 sm:$0xff]  }
 0x446   : > { %v6940_v27 = vadd.f32 %v3734_v5, %v9098_v34  ;;  %v6909_v38 = vadd.f32 %v3284_v21, %v9090_v19  ;;  %v3736_v2 = vpop.f32.mrb[58].mxu1  ;;  %v3286_v25 = vpop.f32.mrb[59].mxu0  ;;  %4326 = vmatmul.mubr.bf16.gmra.mrb[84].mxu0 %v3835_v59  ;;  %v3799_v54 = vmax.f32 %v6907_v32, 0.0  ;;  %v7872_v5 = vld [vmem:[#allocation10 + $0x1e4] ss:$8 sps:$4 sm:$0xff]  }
 0x447   : > { %v6941_v46 = vadd.f32 %v3736_v2, %v9092_v57  ;;  %v6910_v41 = vadd.f32 %v3286_v25, %v9096_v24  ;;  %v3738_v53 = vpop.f32.mrb[59].mxu1  ;;  %4377 = vmatpush1.bf16.msra.mxu0 %v7858_v42  ;;  %v3801_v15 = vmax.f32 %v6939_v49, 0.0  ;;  %v3800_v40 = vmax.f32 %v6908_v10, 0.0 }
 0x448   : > { %v3803_v16 = vmax.f32 %v6909_v38, 0.0  ;;  %v6942_v37 = vadd.f32 %v3738_v53, %v9098_v34  ;;  %4378 = vmatprep.subr.bf16.mxu0 %v7863_v33  ;;  %v3802_v6 = vmax.f32 %v6940_v27, 0.0 }
 0x449   : > { %v3805_v48 = vmax.f32 %v6941_v46, 0.0  ;;  %v3804_v29 = vmax.f32 %v6910_v41, 0.0 }
 0x44a   : > { %v3839_v14 = vpack.c.bf16 %v3803_v16, %v3799_v54  ;;  %v3806_v28 = vmax.f32 %v6942_v37, 0.0 }
 0x44b   : > { %v9213_v47 = vpack.c.bf16 %v3805_v48, %v3801_v15  ;;  %v3840_v13 = vpack.c.bf16 %v3804_v29, %v3800_v40  ;;  %v3290_v3 = vpop.f32.mrb[60].mxu0  ;;  %4379 = vmatpush1.bf16.msra.mxu0 %v7861_v26  ;;  %v7875_v26 = vld [vmem:[#allocation10 + $0x1f4] ss:$8 sps:$4 sm:$0xff]  }
 0x44c   : > { %v3842_v43 = vpack.c.bf16 %v3806_v28, %v3802_v6  ;;  %v6911_v17 = vadd.f32 %v3290_v3, %v9090_v19  ;;  %v3742_v52 = vpop.f32.mrb[60].mxu1  ;;  %v3292_v55 = vpop.f32.mrb[61].mxu0  ;;  %4380 = vmatprep.subr.bf16.mxu0 %v7866_v11 }
 0x44d   : > { %v6943_v18 = vadd.f32 %v3742_v52, %v9092_v57  ;;  %v6912_v44 = vadd.f32 %v3292_v55, %v9096_v24  ;;  %v3744_v45 = vpop.f32.mrb[61].mxu1  ;;  %v3294_v60 = vpop.f32.mrb[62].mxu0  ;;  %4335 = vmatprep.mubr.bf16.mxu0 %v3840_v13 }
 0x44e   : > { %v6944_v59 = vadd.f32 %v3744_v45, %v9098_v34  ;;  %v6913_v0 = vadd.f32 %v3294_v60, %v9090_v19  ;;  %v3746_v63 = vpop.f32.mrb[62].mxu1  ;;  %v3296_v36 = vpop.f32.mrb[63].mxu0  ;;  %4336 = vmatmul.mubr.bf16.gmra.mrb[88].mxu0 %v3839_v14  ;;  %v3807_v33 = vmax.f32 %v6911_v17, 0.0 }
 0x44f   : > { %v6945_v42 = vadd.f32 %v3746_v63, %v9092_v57  ;;  %v6914_v32 = vadd.f32 %v3296_v36, %v9096_v24  ;;  %v3748_v8 = vpop.f32.mrb[63].mxu1  ;;  %4381 = vmatpush1.bf16.msra.mxu0 %v7864_v39  ;;  %v3809_v21 = vmax.f32 %v6943_v18, 0.0  ;;  %v3808_v27 = vmax.f32 %v6912_v44, 0.0  ;;  %v7870_v24 = vld [vmem:[#allocation10 + $0x1e0] ss:$8 sps:$4 sm:$0xff]  }
 0x450   : > { %v3811_v49 = vmax.f32 %v6913_v0, 0.0  ;;  %v6946_v10 = vadd.f32 %v3748_v8, %v9098_v34  ;;  %4382 = vmatprep.subr.bf16.mxu0 %v7869_v56  ;;  %v3810_v2 = vmax.f32 %v6944_v59, 0.0  ;;  %v7873_v34 = vld [vmem:[#allocation10 + $0x1f0] ss:$8 sps:$4 sm:$0xff]  }
 0x451   : > { %v3813_v38 = vmax.f32 %v6945_v42, 0.0  ;;  %v3812_v19 = vmax.f32 %v6914_v32, 0.0  ;;  %v7894_v56 = vld [vmem:[%s9732_s8 + $0x10] sm:$0xff]  }
 0x452   : > { %v3843_v25 = vpack.c.bf16 %v3811_v49, %v3807_v33  ;;  %v3814_v46 = vmax.f32 %v6946_v10, 0.0 }
 0x453   : > { %v3845_v41 = vpack.c.bf16 %v3813_v38, %v3809_v21  ;;  %v3844_v57 = vpack.c.bf16 %v3812_v19, %v3808_v27  ;;  %4383 = vmatpush1.bf16.msra.mxu0 %v7867_v12 }
 0x454   : > { %v3846_v53 = vpack.c.bf16 %v3814_v46, %v3810_v2  ;;  %4384 = vmatprep.subr.bf16.mxu0 %v7872_v5 }
 0x455   : > { %4345 = vmatprep.mubr.bf16.mxu0 %v3844_v57 }
 0x456   : > { %4346 = vmatmul.mubr.bf16.gmra.mrb[92].mxu0 %v3843_v25 }
 0x457   : > { %4385 = vmatpush1.bf16.msra.mxu0 %v7870_v24  ;;  %4388 = vmatprep.mubr.bf16.mxu0 %v9125_v50  ;;  %v7888_v50 = vld [vmem:[%s9730_s6 + $0x70] sm:$0xff]  }
 0x458   : > { %4386 = vmatprep.subr.bf16.mxu0 %v7875_v26 }
 0x45b   : > { %4387 = vmatpush1.bf16.msra.mxu0 %v7873_v34 }
 0x45e   : > { %4389 = vmatmul.mubr.bf16.vlgmr.msra.gmra.mrb[64].mxu0 %v9123_v62  ;;  %v7887_v62 = vld [vmem:[%s9730_s6 + $0x28] sm:$0xff]  }
 0x45f   : > { %4398 = vmatprep.mubr.bf16.mxu0 %v9149_v20  ;;  %6610 = vmatpush3.bf16.msra.mxu1 %v7887_v62  ;;  %v7890_v20 = vld [vmem:[%s9730_s6 + $0x78] sm:$0xff]  }
 0x460   : > { %6611 = vmatprep.subr.bf16.mxu1 %v7888_v50 }
 0x466   : > { %4399 = vmatmul.mubr.bf16.gmra.mrb[68].mxu0 %v9147_v9  ;;  %v7889_v9 = vld [vmem:[%s9730_s6 + $0x30] sm:$0xff]  }
 0x467   : > { %4408 = vmatprep.mubr.bf16.mxu0 %v9167_v30  ;;  %6612 = vmatpush3.bf16.msra.mxu1 %v7889_v9  ;;  %v7892_v30 = vld [vmem:[%s9732_s8] sm:$0xff]  }
 0x468   : > { %6613 = vmatprep.subr.bf16.mxu1 %v7890_v20 }
 0x46e   : > { %4409 = vmatmul.mubr.bf16.gmra.mrb[72].mxu0 %v9165_v61  ;;  %v7891_v61 = vld [vmem:[%s9730_s6 + $0x38] sm:$0xff]  }
 0x46f   : > { %4418 = vmatprep.mubr.bf16.mxu0 %v9179_v51  ;;  %6614 = vmatpush3.bf16.msra.mxu1 %v7891_v61 }
 0x470   : > { %6723 = vmatprep.subr.bf16.mxu1 %v7892_v30 }
 0x476   : > { %4419 = vmatmul.mubr.bf16.gmra.mrb[76].mxu0 %v9177_v23  ;;  %v3911_v23 = vld [vmem:[#allocation11] sm:$0x3] }
 0x477   : > { %4428 = vmatprep.mubr.bf16.mxu0 %v9191_v35  ;;  %v9256_v51 = vrot.slane %v3911_v23, %v1549_v58 }
 0x47e   : > { %4429 = vmatmul.mubr.bf16.gmra.mrb[80].mxu0 %v9189_v7  ;;  %v9260_v7 = vrot.slane %v3911_v23, %v1553_v4 }
 0x47f   : > { %4438 = vmatprep.mubr.bf16.mxu0 %v9203_v1 }
 0x486   : > { %4439 = vmatmul.mubr.bf16.gmra.mrb[84].mxu0 %v9201_v31 }
 0x487   : > { %4448 = vmatprep.mubr.bf16.mxu0 %v3842_v43 }
 0x48e   : > { %4449 = vmatmul.mubr.bf16.gmra.mrb[88].mxu0 %v9213_v47  ;;  %v7893_v47 = vld [vmem:[%s9732_s8 + $0x8] sm:$0xff]  }
 0x48f   : > { %4458 = vmatprep.mubr.bf16.mxu0 %v3846_v53 }
 0x496   : > { %4459 = vmatmul.mubr.bf16.gmra.mrb[92].mxu0 %v3845_v41 }
 0x531   : > { %v4390_v35 = vpop.f32.mrb[64].mxu0 }
 0x532   : > { %v6947_v31 = vadd.f32 %v4390_v35, %v9256_v51  ;;  %v4392_v1 = vpop.f32.mrb[65].mxu0 }
 0x533   : > { %v6948_v54 = vadd.f32 %v4392_v1, %v9260_v7  ;;  %v4394_v16 = vpop.f32.mrb[66].mxu0 }
 0x534   : > { %v6949_v37 = vadd.f32 %v4394_v16, %v9256_v51  ;;  %v4396_v11 = vpop.f32.mrb[67].mxu0  ;;  %v4469_v40 = vmax.f32 %v6947_v31, 0.0 }
 0x535   : > { %v6950_v15 = vadd.f32 %v4396_v11, %v9260_v7  ;;  %v4470_v58 = vmax.f32 %v6948_v54, 0.0 }
 0x536   : > { %v4471_v48 = vmax.f32 %v6949_v37, 0.0 }
 0x537   : > { %v4472_v29 = vmax.f32 %v6950_v15, 0.0 }
 0x538   : > { %v4501_v6 = vpack.c.bf16 %v4471_v48, %v4469_v40 }
 0x539   : > { %v4502_v22 = vpack.c.bf16 %v4472_v29, %v4470_v58  ;;  %v4400_v4 = vpop.f32.mrb[68].mxu0 }
 0x53a   : > { %v6951_v14 = vadd.f32 %v4400_v4, %v9256_v51  ;;  %v4402_v28 = vpop.f32.mrb[69].mxu0 }
 0x53b   : > { %v6952_v13 = vadd.f32 %v4402_v28, %v9260_v7  ;;  %v4404_v3 = vpop.f32.mrb[70].mxu0  ;;  %4684 = vmatprep.mubr.bf16.mxu1 %v4502_v22 }
 0x53c   : > { %v6953_v39 = vadd.f32 %v4404_v3, %v9256_v51  ;;  %v4406_v43 = vpop.f32.mrb[71].mxu0  ;;  %4685 = vmatmul.mubr.bf16.vlgmr.msra.gmra.mrb[64].mxu1 %v4501_v6  ;;  %v4473_v52 = vmax.f32 %v6951_v14, 0.0 }
 0x53d   : > { %v6954_v17 = vadd.f32 %v4406_v43, %v9260_v7  ;;  %6724 = vmatpush3.bf16.msra.mxu1 %v7892_v30  ;;  %v4474_v18 = vmax.f32 %v6952_v13, 0.0 }
 0x53e   : > { %v4475_v55 = vmax.f32 %v6953_v39, 0.0  ;;  %6725 = vmatprep.subr.bf16.mxu1 %v7893_v47 }
 0x53f   : > { %v4476_v44 = vmax.f32 %v6954_v17, 0.0 }
 0x540   : > { %v4503_v45 = vpack.c.bf16 %v4475_v55, %v4473_v52 }
 0x541   : > { %v4504_v60 = vpack.c.bf16 %v4476_v44, %v4474_v18  ;;  %v4410_v59 = vpop.f32.mrb[72].mxu0  ;;  %6726 = vmatpush3.bf16.msra.mxu1 %v7893_v47 }
 0x542   : > { %v6955_v0 = vadd.f32 %v4410_v59, %v9256_v51  ;;  %v4412_v63 = vpop.f32.mrb[73].mxu0  ;;  %6727 = vmatprep.subr.bf16.mxu1 %v7894_v56 }
 0x543   : > { %v6956_v36 = vadd.f32 %v4412_v63, %v9260_v7  ;;  %v4414_v42 = vpop.f32.mrb[74].mxu0  ;;  %4692 = vmatprep.mubr.bf16.mxu1 %v4504_v60 }
 0x544   : > { %v6957_v32 = vadd.f32 %v4414_v42, %v9256_v51  ;;  %v4416_v8 = vpop.f32.mrb[75].mxu0  ;;  %4693 = vmatmul.mubr.bf16.gmra.mrb[68].mxu1 %v4503_v45  ;;  %v4477_v33 = vmax.f32 %v6955_v0, 0.0 }
 0x545   : > { %v6958_v12 = vadd.f32 %v4416_v8, %v9260_v7  ;;  %6728 = vmatpush3.bf16.msra.mxu1 %v7894_v56  ;;  %v4478_v10 = vmax.f32 %v6956_v36, 0.0 }
 0x546   : > { %v4479_v49 = vmax.f32 %v6957_v32, 0.0 }
 0x547   : > { %v4480_v5 = vmax.f32 %v6958_v12, 0.0 }
 0x548   : > { %v4505_v21 = vpack.c.bf16 %v4479_v49, %v4477_v33 }
 0x549   : > { %v4506_v27 = vpack.c.bf16 %v4480_v5, %v4478_v10  ;;  %v4420_v38 = vpop.f32.mrb[76].mxu0 }
 0x54a   : > { %v6959_v19 = vadd.f32 %v4420_v38, %v9256_v51  ;;  %v4422_v2 = vpop.f32.mrb[77].mxu0 }
 0x54b   : > { %v6960_v25 = vadd.f32 %v4422_v2, %v9260_v7  ;;  %v4424_v46 = vpop.f32.mrb[78].mxu0  ;;  %4700 = vmatprep.mubr.bf16.mxu1 %v4506_v27 }
 0x54c   : > { %v6961_v41 = vadd.f32 %v4424_v46, %v9256_v51  ;;  %v4426_v57 = vpop.f32.mrb[79].mxu0  ;;  %4701 = vmatmul.mubr.bf16.gmra.mrb[72].mxu1 %v4505_v21  ;;  %v4481_v53 = vmax.f32 %v6959_v19, 0.0 }
 0x54d   : > { %v6962_v24 = vadd.f32 %v4426_v57, %v9260_v7  ;;  %v4482_v34 = vmax.f32 %v6960_v25, 0.0 }
 0x54e   : > { %v4483_v26 = vmax.f32 %v6961_v41, 0.0 }
 0x54f   : > { %v4484_v62 = vmax.f32 %v6962_v24, 0.0 }
 0x550   : > { %v4507_v50 = vpack.c.bf16 %v4483_v26, %v4481_v53  ;;  %v7895_v53 = vld [vmem:[%s9732_s8 + $0x18] sm:$0xff]   ;;  %v7898_v26 = vld [vmem:[%s9732_s8 + $0x30] sm:$0xff]  }
 0x551   : > { %v4508_v9 = vpack.c.bf16 %v4484_v62, %v4482_v34  ;;  %v4430_v20 = vpop.f32.mrb[80].mxu0  ;;  %6729 = vmatprep.subr.bf16.mxu1 %v7895_v53  ;;  %v7899_v34 = vld [vmem:[%s9732_s8 + $0x38] sm:$0xff]   ;;  %v7900_v62 = vld [vmem:[%s9786_s12] sm:$0xff]  }
 0x552   : > { %v6963_v61 = vadd.f32 %v4430_v20, %v9256_v51  ;;  %v4432_v30 = vpop.f32.mrb[81].mxu0  ;;  %6730 = vmatpush3.bf16.msra.mxu1 %v7895_v53 }
 0x553   : > { %v6964_v23 = vadd.f32 %v4432_v30, %v9260_v7  ;;  %v4434_v35 = vpop.f32.mrb[82].mxu0  ;;  %4708 = vmatprep.mubr.bf16.mxu1 %v4508_v9  ;;  %v9318_v9 = vld [vmem:[#allocation13] ss:$0 sm:$0xff] }
 0x554   : > { %v6965_v31 = vadd.f32 %v4434_v35, %v9256_v51  ;;  %v4436_v1 = vpop.f32.mrb[83].mxu0  ;;  %4709 = vmatmul.mubr.bf16.gmra.mrb[76].mxu1 %v4507_v50  ;;  %v4485_v16 = vmax.f32 %v6963_v61, 0.0 }
 0x555   : > { %v6966_v54 = vadd.f32 %v4436_v1, %v9260_v7  ;;  %v4486_v11 = vmax.f32 %v6964_v23, 0.0 }
 0x556   : > { %v4487_v37 = vmax.f32 %v6965_v31, 0.0 }
 0x557   : > { %v4488_v15 = vmax.f32 %v6966_v54, 0.0 }
 0x558   : > { %v4509_v40 = vpack.c.bf16 %v4487_v37, %v4485_v16 }
 0x559   : > { %v4510_v48 = vpack.c.bf16 %v4488_v15, %v4486_v11  ;;  %v4440_v58 = vpop.f32.mrb[84].mxu0 }
 0x55a   : > { %v6967_v29 = vadd.f32 %v4440_v58, %v9256_v51  ;;  %v4442_v6 = vpop.f32.mrb[85].mxu0 }
 0x55b   : > { %v6968_v22 = vadd.f32 %v4442_v6, %v9260_v7  ;;  %v4444_v4 = vpop.f32.mrb[86].mxu0  ;;  %4716 = vmatprep.mubr.bf16.mxu1 %v4510_v48 }
 0x55c   : > { %v6969_v14 = vadd.f32 %v4444_v4, %v9256_v51  ;;  %v4446_v28 = vpop.f32.mrb[87].mxu0  ;;  %4717 = vmatmul.mubr.bf16.gmra.mrb[80].mxu1 %v4509_v40  ;;  %v4489_v13 = vmax.f32 %v6967_v29, 0.0 }
 0x55d   : > { %v6970_v47 = vadd.f32 %v4446_v28, %v9260_v7  ;;  %v4490_v39 = vmax.f32 %v6968_v22, 0.0 }
 0x55e   : > { %v4491_v3 = vmax.f32 %v6969_v14, 0.0 }
 0x55f   : > { %v4492_v43 = vmax.f32 %v6970_v47, 0.0 }
 0x560   : > { %v4511_v17 = vpack.c.bf16 %v4491_v3, %v4489_v13 }
 0x561   : > { %v4512_v52 = vpack.c.bf16 %v4492_v43, %v4490_v39  ;;  %v4450_v55 = vpop.f32.mrb[88].mxu0  ;;  %v7901_v43 = vld [vmem:[%s9786_s12 + $0x8] sm:$0xff]  }
 0x562   : > { %v6971_v56 = vadd.f32 %v4450_v55, %v9256_v51  ;;  %v4452_v18 = vpop.f32.mrb[89].mxu0 }
 0x563   : > { %v6972_v44 = vadd.f32 %v4452_v18, %v9260_v7  ;;  %v4454_v45 = vpop.f32.mrb[90].mxu0  ;;  %4724 = vmatprep.mubr.bf16.mxu1 %v4512_v52 }
 0x564   : > { %v6973_v60 = vadd.f32 %v4454_v45, %v9256_v51  ;;  %v4456_v59 = vpop.f32.mrb[91].mxu0  ;;  %4725 = vmatmul.mubr.bf16.gmra.mrb[84].mxu1 %v4511_v17  ;;  %v4493_v63 = vmax.f32 %v6971_v56, 0.0 }
 0x565   : > { %v6974_v0 = vadd.f32 %v4456_v59, %v9260_v7  ;;  %v4494_v42 = vmax.f32 %v6972_v44, 0.0 }
 0x566   : > { %v4495_v36 = vmax.f32 %v6973_v60, 0.0 }
 0x567   : > { %v4496_v32 = vmax.f32 %v6974_v0, 0.0 }
 0x568   : > { %v4513_v8 = vpack.c.bf16 %v4495_v36, %v4493_v63 }
 0x569   : > { %v4514_v12 = vpack.c.bf16 %v4496_v32, %v4494_v42  ;;  %v4460_v33 = vpop.f32.mrb[92].mxu0 }
 0x56a   : > { %v6975_v49 = vadd.f32 %v4460_v33, %v9256_v51  ;;  %v4462_v10 = vpop.f32.mrb[93].mxu0 }
 0x56b   : > { %v6976_v5 = vadd.f32 %v4462_v10, %v9260_v7  ;;  %v4464_v21 = vpop.f32.mrb[94].mxu0  ;;  %4732 = vmatprep.mubr.bf16.mxu1 %v4514_v12 }
 0x56c   : > { %v6977_v27 = vadd.f32 %v4464_v21, %v9256_v51  ;;  %v4466_v38 = vpop.f32.mrb[95].mxu0  ;;  %4733 = vmatmul.mubr.bf16.gmra.mrb[88].mxu1 %v4513_v8  ;;  %v4497_v2 = vmax.f32 %v6975_v49, 0.0  ;;  %v7896_v51 = vld [vmem:[%s9732_s8 + $0x20] sm:$0xff]  }
 0x56d   : > { %v6978_v19 = vadd.f32 %v4466_v38, %v9260_v7  ;;  %v4498_v46 = vmax.f32 %v6976_v5, 0.0  ;;  %6731 = vmatprep.subr.bf16.mxu1 %v7896_v51  ;;  %v7897_v7 = vld [vmem:[%s9732_s8 + $0x28] sm:$0xff]  }
 0x56e   : > { %v4499_v25 = vmax.f32 %v6977_v27, 0.0  ;;  %6732 = vmatpush3.bf16.msra.mxu1 %v7896_v51 }
 0x56f   : > { %v4500_v41 = vmax.f32 %v6978_v19, 0.0  ;;  %6733 = vmatprep.subr.bf16.mxu1 %v7897_v7 }
 0x570   : > { %v4515_v57 = vpack.c.bf16 %v4499_v25, %v4497_v2 }
 0x571   : > { %v4516_v24 = vpack.c.bf16 %v4500_v41, %v4498_v46 }
 0x572   : > { %6734 = vmatpush3.bf16.msra.mxu1 %v7897_v7 }
 0x573   : > { %4740 = vmatprep.mubr.bf16.mxu1 %v4516_v24  ;;  %6735 = vmatprep.subr.bf16.mxu1 %v7898_v26 }
 0x574   : > { %4741 = vmatmul.mubr.bf16.gmra.mrb[92].mxu1 %v4515_v57 }
 0x576   : > { %6736 = vmatpush3.bf16.msra.mxu1 %v7898_v26 }
 0x577   : > { %6737 = vmatprep.subr.bf16.mxu1 %v7899_v34 }
 0x57a   : > { %6738 = vmatpush3.bf16.msra.mxu1 %v7899_v34 }
 0x57b   : > { %6755 = vmatprep.subr.bf16.mxu1 %v7900_v62 }
 0x60f   : > { %v6615_v50 = vpop.f32.mrb[64].mxu1 }
 0x610   : > { %v6616_v20 = vpop.f32.mrb[65].mxu1 }
 0x611   : > { %v6617_v61 = vadd.f32 %v6616_v20, %v6615_v50  ;;  %v6618_v30 = vpop.f32.mrb[66].mxu1 }
 0x612   : > { %v6619_v23 = vpop.f32.mrb[67].mxu1 }
 0x613   : > { %v4687_v35 = vadd.f32 %v6617_v61, %v9318_v9  ;;  %v6620_v31 = vadd.f32 %v6619_v23, %v6618_v30 }
 0x615   : > { %v4690_v1 = vadd.f32 %v6620_v31, %v9318_v9  ;;  %v4749_v54 = vmax.f32 %v4687_v35, 0.0 }
 0x617   : > { %v4750_v16 = vmax.f32 %v4690_v1, 0.0  ;;  %v6621_v37 = vpop.f32.mrb[68].mxu1 }
 0x618   : > { %v6622_v11 = vpop.f32.mrb[69].mxu1 }
 0x619   : > { %v6623_v15 = vadd.f32 %v6622_v11, %v6621_v37  ;;  %v6624_v40 = vpop.f32.mrb[70].mxu1  ;;  %v4765_v48 = vpack.c.bf16 %v4750_v16, %v4749_v54 }
 0x61a   : > { %v6625_v58 = vpop.f32.mrb[71].mxu1 }
 0x61b   : > { %v4695_v29 = vadd.f32 %v6623_v15, %v9318_v9  ;;  %v6626_v6 = vadd.f32 %v6625_v58, %v6624_v40  ;;  %6739 = vmatprep.mubr.bf16.mxu1 %v4765_v48 }
 0x61d   : > { %v4698_v22 = vadd.f32 %v6626_v6, %v9318_v9  ;;  %v4751_v4 = vmax.f32 %v4695_v29, 0.0 }
 0x61f   : > { %v4752_v14 = vmax.f32 %v4698_v22, 0.0  ;;  %v6627_v28 = vpop.f32.mrb[72].mxu1 }
 0x620   : > { %v6628_v47 = vpop.f32.mrb[73].mxu1 }
 0x621   : > { %v4766_v13 = vpack.c.bf16 %v4752_v14, %v4751_v4  ;;  %v6629_v3 = vadd.f32 %v6628_v47, %v6627_v28  ;;  %v6630_v39 = vpop.f32.mrb[74].mxu1 }
 0x622   : > { %v6631_v17 = vpop.f32.mrb[75].mxu1 }
 0x623   : > { %v4703_v52 = vadd.f32 %v6629_v3, %v9318_v9  ;;  %v6632_v55 = vadd.f32 %v6631_v17, %v6630_v39  ;;  %6740 = vmatmul.mubr.bf16.vlgmr.msra.gmra.mrb[96].mxu1 %v4766_v13  ;;  %v7903_v17 = vld [vmem:[%s9786_s12 + $0x18] sm:$0xff]  }
 0x624   : > { %6756 = vmatpush3.bf16.msra.mxu1 %v7900_v62 }
 0x625   : > { %v4706_v56 = vadd.f32 %v6632_v55, %v9318_v9  ;;  %6757 = vmatprep.subr.bf16.mxu1 %v7901_v43  ;;  %v4753_v18 = vmax.f32 %v4703_v52, 0.0 }
 0x627   : > { %v4754_v44 = vmax.f32 %v4706_v56, 0.0  ;;  %v6633_v45 = vpop.f32.mrb[76].mxu1 }
 0x628   : > { %v6634_v60 = vpop.f32.mrb[77].mxu1  ;;  %6758 = vmatpush3.bf16.msra.mxu1 %v7901_v43  ;;  %v7902_v43 = vld [vmem:[%s9786_s12 + $0x10] sm:$0xff]  }
 0x629   : > { %v6635_v59 = vadd.f32 %v6634_v60, %v6633_v45  ;;  %v6636_v0 = vpop.f32.mrb[78].mxu1  ;;  %v4767_v63 = vpack.c.bf16 %v4754_v44, %v4753_v18  ;;  %6759 = vmatprep.subr.bf16.mxu1 %v7902_v43 }
 0x62a   : > { %v6637_v36 = vpop.f32.mrb[79].mxu1 }
 0x62b   : > { %v4711_v42 = vadd.f32 %v6635_v59, %v9318_v9  ;;  %v6638_v32 = vadd.f32 %v6637_v36, %v6636_v0  ;;  %6743 = vmatprep.mubr.bf16.mxu1 %v4767_v63 }
 0x62c   : > { %6760 = vmatpush3.bf16.msra.mxu1 %v7902_v43 }
 0x62d   : > { %v4714_v8 = vadd.f32 %v6638_v32, %v9318_v9  ;;  %v4755_v12 = vmax.f32 %v4711_v42, 0.0  ;;  %6761 = vmatprep.subr.bf16.mxu1 %v7903_v17 }
 0x62f   : > { %v4756_v33 = vmax.f32 %v4714_v8, 0.0  ;;  %v6639_v49 = vpop.f32.mrb[80].mxu1 }
 0x630   : > { %v6640_v10 = vpop.f32.mrb[81].mxu1  ;;  %6762 = vmatpush3.bf16.msra.mxu1 %v7903_v17 }
 0x631   : > { %v6641_v5 = vadd.f32 %v6640_v10, %v6639_v49  ;;  %v6642_v21 = vpop.f32.mrb[82].mxu1  ;;  %v4768_v27 = vpack.c.bf16 %v4756_v33, %v4755_v12 }
 0x632   : > { %v6643_v38 = vpop.f32.mrb[83].mxu1 }
 0x633   : > { %v4719_v19 = vadd.f32 %v6641_v5, %v9318_v9  ;;  %v6644_v2 = vadd.f32 %v6643_v38, %v6642_v21  ;;  %6744 = vmatmul.mubr.bf16.gmra.mrb[100].mxu1 %v4768_v27 }
 0x635   : > { %v4722_v25 = vadd.f32 %v6644_v2, %v9318_v9  ;;  %v4757_v46 = vmax.f32 %v4719_v19, 0.0 }
 0x637   : > { %v4758_v41 = vmax.f32 %v4722_v25, 0.0  ;;  %v6645_v57 = vpop.f32.mrb[84].mxu1 }
 0x638   : > { %v6646_v24 = vpop.f32.mrb[85].mxu1 }
 0x639   : > { %v6647_v53 = vadd.f32 %v6646_v24, %v6645_v57  ;;  %v6648_v51 = vpop.f32.mrb[86].mxu1  ;;  %v4769_v7 = vpack.c.bf16 %v4758_v41, %v4757_v46 }
 0x63a   : > { %v6649_v26 = vpop.f32.mrb[87].mxu1 }
 0x63b   : > { %v4727_v34 = vadd.f32 %v6647_v53, %v9318_v9  ;;  %v6650_v62 = vadd.f32 %v6649_v26, %v6648_v51  ;;  %6747 = vmatprep.mubr.bf16.mxu1 %v4769_v7 }
 0x63d   : > { %v4730_v50 = vadd.f32 %v6650_v62, %v9318_v9  ;;  %v4759_v20 = vmax.f32 %v4727_v34, 0.0 }
 0x63f   : > { %v4760_v61 = vmax.f32 %v4730_v50, 0.0  ;;  %v6651_v30 = vpop.f32.mrb[88].mxu1 }
 0x640   : > { %v6652_v23 = vpop.f32.mrb[89].mxu1 }
 0x641   : > { %v6653_v35 = vadd.f32 %v6652_v23, %v6651_v30  ;;  %v6654_v31 = vpop.f32.mrb[90].mxu1  ;;  %v4770_v1 = vpack.c.bf16 %v4760_v61, %v4759_v20 }
 0x642   : > { %v6655_v54 = vpop.f32.mrb[91].mxu1 }
 0x643   : > { %v4735_v16 = vadd.f32 %v6653_v35, %v9318_v9  ;;  %v6656_v37 = vadd.f32 %v6655_v54, %v6654_v31  ;;  %6748 = vmatmul.mubr.bf16.gmra.mrb[104].mxu1 %v4770_v1 }
 0x645   : > { %v4738_v11 = vadd.f32 %v6656_v37, %v9318_v9  ;;  %v4761_v15 = vmax.f32 %v4735_v16, 0.0 }
 0x647   : > { %v4762_v40 = vmax.f32 %v4738_v11, 0.0  ;;  %v6657_v48 = vpop.f32.mrb[92].mxu1 }
 0x648   : > { %v6658_v58 = vpop.f32.mrb[93].mxu1 }
 0x649   : > { %v6659_v29 = vadd.f32 %v6658_v58, %v6657_v48  ;;  %v6660_v6 = vpop.f32.mrb[94].mxu1  ;;  %v4771_v22 = vpack.c.bf16 %v4762_v40, %v4761_v15 }
 0x64a   : > { %v6661_v4 = vpop.f32.mrb[95].mxu1 }
 0x64b   : > { %v4743_v14 = vadd.f32 %v6659_v29, %v9318_v9  ;;  %v6662_v28 = vadd.f32 %v6661_v4, %v6660_v6  ;;  %6751 = vmatprep.mubr.bf16.mxu1 %v4771_v22 }
 0x64d   : > { %v4746_v47 = vadd.f32 %v6662_v28, %v9318_v9  ;;  %v4763_v13 = vmax.f32 %v4743_v14, 0.0  ;;  %v6533_v9 = vld [vmem:[%s9787_s25] ss:$0 sm:$0xff] }
 0x64e   : > { %v9359_v28 = vld [vmem:[%s9788_s29] ss:$0 sm:$0xff] }
 0x64f   : > { %v4764_v3 = vmax.f32 %v4746_v47, 0.0 }
 0x651   : > { %v4772_v39 = vpack.c.bf16 %v4764_v3, %v4763_v13 }
 0x653   : > { %6752 = vmatmul.mubr.bf16.gmra.mrb[108].mxu1 %v4772_v39 }
 0x6f6   : > { %v6741_v52 = vpop.f32.mrb[96].mxu1 }
 0x6f7   : > { %v4887_v55 = vadd.f32 %v6741_v52, %v6533_v9  ;;  %v4878_v56 = vpop.f32.mrb[97].mxu1 }
 0x6f8   : > { %v4879_v18 = vadd.f32 %v6533_v9, %v4878_v56  ;;  %v6742_v44 = vpop.f32.mrb[98].mxu1 }
 0x6f9   : > { %v4890_v45 = vadd.f32 %v6742_v44, %v6533_v9  ;;  %v4881_v60 = vpop.f32.mrb[99].mxu1  ;;  %v4943_v0 = vmax.f32 %v4887_v55, 0.0 }
 0x6fa   : > { %v4882_v59 = vadd.f32 %v6533_v9, %v4881_v60  ;;  %v4941_v36 = vmax.f32 %v4879_v18, 0.0 }
 0x6fb   : > { %v4944_v63 = vmax.f32 %v4890_v45, 0.0 }
 0x6fc   : > { %v4942_v42 = vmax.f32 %v4882_v59, 0.0 }
 0x6fd   : > { %v4958_v32 = vpack.c.bf16 %v4944_v63, %v4943_v0 }
 0x6fe   : > { %v4957_v8 = vpack.c.bf16 %v4942_v42, %v4941_v36 }
 0x700   : > { %6763 = vmatprep.mubr.msk.bf16.mxu1 %vm5004_vm2, %v4957_v8 }
 0x701   : > { %6764 = vmatmul.mubr.msk.bf16.vlgmr.msra.gmra.mrb[112].mxu1 %vm5004_vm2, %v4958_v32 }
 0x706   : > { %v6745_v12 = vpop.f32.mrb[100].mxu1 }
 0x707   : > { %v4903_v33 = vadd.f32 %v6745_v12, %v6533_v9  ;;  %v4894_v49 = vpop.f32.mrb[101].mxu1 }
 0x708   : > { %v4895_v10 = vadd.f32 %v6533_v9, %v4894_v49  ;;  %v6746_v5 = vpop.f32.mrb[102].mxu1 }
 0x709   : > { %v4906_v21 = vadd.f32 %v6746_v5, %v6533_v9  ;;  %v4897_v27 = vpop.f32.mrb[103].mxu1  ;;  %v4947_v19 = vmax.f32 %v4903_v33, 0.0 }
 0x70a   : > { %v4898_v38 = vadd.f32 %v6533_v9, %v4897_v27  ;;  %v4945_v25 = vmax.f32 %v4895_v10, 0.0 }
 0x70b   : > { %v4948_v2 = vmax.f32 %v4906_v21, 0.0 }
 0x70c   : > { %v4946_v46 = vmax.f32 %v4898_v38, 0.0 }
 0x70d   : > { %v4960_v41 = vpack.c.bf16 %v4948_v2, %v4947_v19 }
 0x70e   : > { %v4959_v57 = vpack.c.bf16 %v4946_v46, %v4945_v25 }
 0x710   : > { %6767 = vmatprep.mubr.msk.bf16.mxu1 %vm5004_vm2, %v4959_v57 }
 0x711   : > { %6768 = vmatmul.mubr.msk.bf16.gmra.mrb[116].mxu1 %vm5004_vm2, %v4960_v41 }
 0x716   : > { %v6749_v24 = vpop.f32.mrb[104].mxu1 }
 0x717   : > { %v4919_v53 = vadd.f32 %v6749_v24, %v6533_v9  ;;  %v4910_v51 = vpop.f32.mrb[105].mxu1 }
 0x718   : > { %v4911_v7 = vadd.f32 %v6533_v9, %v4910_v51  ;;  %v6750_v26 = vpop.f32.mrb[106].mxu1 }
 0x719   : > { %v4922_v34 = vadd.f32 %v6750_v26, %v6533_v9  ;;  %v4913_v62 = vpop.f32.mrb[107].mxu1  ;;  %v4951_v20 = vmax.f32 %v4919_v53, 0.0 }
 0x71a   : > { %v4914_v50 = vadd.f32 %v6533_v9, %v4913_v62  ;;  %v4949_v30 = vmax.f32 %v4911_v7, 0.0 }
 0x71b   : > { %v4952_v61 = vmax.f32 %v4922_v34, 0.0 }
 0x71c   : > { %v4950_v23 = vmax.f32 %v4914_v50, 0.0 }
 0x71d   : > { %v4962_v35 = vpack.c.bf16 %v4952_v61, %v4951_v20 }
 0x71e   : > { %v4961_v31 = vpack.c.bf16 %v4950_v23, %v4949_v30 }
 0x720   : > { %6771 = vmatprep.mubr.msk.bf16.mxu1 %vm5004_vm2, %v4961_v31 }
 0x721   : > { %6772 = vmatmul.mubr.msk.bf16.gmra.mrb[120].mxu1 %vm5004_vm2, %v4962_v35 }
 0x726   : > { %v6753_v1 = vpop.f32.mrb[108].mxu1 }
 0x727   : > { %v4935_v54 = vadd.f32 %v6753_v1, %v6533_v9  ;;  %v4926_v16 = vpop.f32.mrb[109].mxu1 }
 0x728   : > { %v4927_v37 = vadd.f32 %v6533_v9, %v4926_v16  ;;  %v6754_v11 = vpop.f32.mrb[110].mxu1 }
 0x729   : > { %v4938_v15 = vadd.f32 %v6754_v11, %v6533_v9  ;;  %v4929_v40 = vpop.f32.mrb[111].mxu1  ;;  %v4955_v58 = vmax.f32 %v4935_v54, 0.0 }
 0x72a   : > { %v4930_v48 = vadd.f32 %v6533_v9, %v4929_v40  ;;  %v4953_v6 = vmax.f32 %v4927_v37, 0.0 }
 0x72b   : > { %v4956_v29 = vmax.f32 %v4938_v15, 0.0 }
 0x72c   : > { %v4954_v22 = vmax.f32 %v4930_v48, 0.0 }
 0x72d   : > { %v4964_v4 = vpack.c.bf16 %v4956_v29, %v4955_v58 }
 0x72e   : > { %v4963_v14 = vpack.c.bf16 %v4954_v22, %v4953_v6 }
 0x730   : > { %6775 = vmatprep.mubr.msk.bf16.mxu1 %vm5004_vm2, %v4963_v14 }
 0x731   : > { %6776 = vmatmul.mubr.msk.bf16.gmra.mrb[124].mxu1 %vm5004_vm2, %v4964_v4 }
 0x7d4   : > { %v6765_v47 = vpop.f32.mrb[112].mxu1 }
 0x7d5   : > { %v9362_v13 = vadd.f32 %v6765_v47, %v9359_v28  ;;  %v5063_v3 = vpop.f32.mrb[113].mxu1 }
 0x7d6   : > { %v5064_v39 = vadd.f32 %v9359_v28, %v5063_v3  ;;  %v6766_v43 = vpop.f32.mrb[114].mxu1 }
 0x7d7   : > { %v9366_v17 = vadd.f32 %v6766_v43, %v9359_v28  ;;  %v5066_v9 = vpop.f32.mrb[115].mxu1  ;;  %v9371_v55 = vmul.f32 %v9362_v13, %v9362_v13  ;;  %v5144_v47 = vmul.f32 -2.0, %v9362_v13 }
 0x7d8   : > { %v5067_v52 = vadd.f32 %v9359_v28, %v5066_v9  ;;  %v9379_v44 = vmul.f32 %v5064_v39, %v5064_v39  ;;  %v5142_v63 = vmul.f32 -2.0, %v5064_v39 }
 0x7d9   : > { %v9375_v56 = vmul.f32 %v9366_v17, %v9366_v17  ;;  %v7316_v18 = vpack.i.bf16 %v9366_v17, %v9362_v13 }
 0x7da   : > { %v9381_v45 = vmul.f32 %v5067_v52, %v5067_v52  ;;  %v7321_v60 = vpack.i.bf16 %v5067_v52, %v5064_v39  ;;  %v5143_v38 = vmul.f32 -2.0, %v5067_v52  ;;  %v5145_v52 = vmul.f32 -2.0, %v9366_v17 }
 0x7db   : > { %7317 = vrot.lane.b32.xlu0 %v7316_v18, %s8279_s0  ;;  %v7326_v59 = vpack.i.bf16 %v9375_v56, %v9371_v55 }
 0x7dc   : > { %7322 = vrot.lane.b32.xlu1 %v7321_v60, %s8279_s0  ;;  %v7331_v0 = vpack.i.bf16 %v9381_v45, %v9379_v44 }
 0x7df   : > { %5174 = vrot.lane.b32.xlu0 %v5142_v63, %s8279_s0 }
 0x7e3   : > { %7327 = vrot.lane.b32.xlu0 %v7326_v59, %s8280_s19 }
 0x7e4   : > { %v6769_v36 = vpop.f32.mrb[116].mxu1 }
 0x7e5   : > { %v9392_v42 = vadd.f32 %v6769_v36, %v9359_v28  ;;  %v5079_v32 = vpop.f32.mrb[117].mxu1 }
 0x7e6   : > { %v5080_v8 = vadd.f32 %v9359_v28, %v5079_v32  ;;  %v6770_v12 = vpop.f32.mrb[118].mxu1 }
 0x7e7   : > { %v9396_v33 = vadd.f32 %v6770_v12, %v9359_v28  ;;  %v5082_v49 = vpop.f32.mrb[119].mxu1  ;;  %7332 = vrot.lane.b32.xlu0 %v7331_v0, %s8280_s19  ;;  %v9402_v5 = vmul.f32 %v9392_v42, %v9392_v42  ;;  %v5148_v60 = vmul.f32 -2.0, %v9392_v42 }
 0x7e8   : > { %v5083_v10 = vadd.f32 %v9359_v28, %v5082_v49  ;;  %v9410_v19 = vmul.f32 %v5080_v8, %v5080_v8  ;;  %v5146_v57 = vmul.f32 -2.0, %v5080_v8 }
 0x7e9   : > { %v9406_v21 = vmul.f32 %v9396_v33, %v9396_v33  ;;  %v7336_v27 = vpack.i.bf16 %v9396_v33, %v9392_v42  ;;  %v5149_v17 = vmul.f32 -2.0, %v9396_v33  ;;  %v5223_v33 = vsel %vm5222_vm3, %v9379_v44, 1.0 }
 0x7ea   : > { %v9412_v2 = vmul.f32 %v5083_v10, %v5083_v10  ;;  %v7341_v25 = vpack.i.bf16 %v5083_v10, %v5080_v8  ;;  %v5147_v16 = vmul.f32 -2.0, %v5083_v10 }
 0x7eb   : > { %7337 = vrot.lane.b32.xlu1 %v7336_v27, %s8279_s0  ;;  %5176 = vrot.lane.b32.xlu0 %v5143_v38, %s8279_s0  ;;  %v7346_v46 = vpack.i.bf16 %v9406_v21, %v9402_v5 }
 0x7ec   : > { %v7351_v41 = vpack.i.bf16 %v9412_v2, %v9410_v19 }
 0x7ef   : > { %7342 = vrot.lane.b32.xlu1 %v7341_v25, %s8279_s0 }
 0x7f3   : > { %5182 = vrot.lane.b32.xlu1 %v5146_v57, %s8279_s0 }
 0x7f4   : > { %v6773_v24 = vpop.f32.mrb[120].mxu1 }
 0x7f5   : > { %v5104_v53 = vadd.f32 %v6773_v24, %v9359_v28  ;;  %v5095_v51 = vpop.f32.mrb[121].mxu1 }
 0x7f6   : > { %v5096_v7 = vadd.f32 %v9359_v28, %v5095_v51  ;;  %v6774_v26 = vpop.f32.mrb[122].mxu1 }
 0x7f7   : > { %v5107_v34 = vadd.f32 %v6774_v26, %v9359_v28  ;;  %v5098_v62 = vpop.f32.mrb[123].mxu1  ;;  %7347 = vrot.lane.b32.xlu1 %v7346_v46, %s8280_s19  ;;  %v9427_v20 = vmul.f32 %v5104_v53, %v5104_v53  ;;  %v5152_v59 = vmul.f32 -2.0, %v5104_v53 }
 0x7f8   : > { %v5099_v50 = vadd.f32 %v9359_v28, %v5098_v62  ;;  %v9431_v23 = vmul.f32 %v5096_v7, %v5096_v7  ;;  %v5150_v13 = vmul.f32 -2.0, %v5096_v7 }
 0x7f9   : > { %v9429_v61 = vmul.f32 %v5107_v34, %v5107_v34  ;;  %v7356_v30 = vpack.i.bf16 %v5107_v34, %v5104_v53  ;;  %v5153_v0 = vmul.f32 -2.0, %v5107_v34 }
 0x7fa   : > { %v9433_v35 = vmul.f32 %v5099_v50, %v5099_v50  ;;  %v7361_v31 = vpack.i.bf16 %v5099_v50, %v5096_v7  ;;  %v5151_v18 = vmul.f32 -2.0, %v5099_v50 }
 0x7fb   : > { %7352 = vrot.lane.b32.xlu1 %v7351_v41, %s8280_s19  ;;  %7357 = vrot.lane.b32.xlu0 %v7356_v30, %s8279_s0  ;;  %v7366_v1 = vpack.i.bf16 %v9429_v61, %v9427_v20 }
 0x7fc   : > { %v7371_v54 = vpack.i.bf16 %v9433_v35, %v9431_v23 }
 0x7ff   : > { %5184 = vrot.lane.b32.xlu1 %v5147_v16, %s8279_s0  ;;  %7362 = vrot.lane.b32.xlu0 %v7361_v31, %s8279_s0 }
 0x803   : > { %7367 = vrot.lane.b32.xlu0 %v7366_v1, %s8280_s19 }
 0x804   : > { %v6777_v37 = vpop.f32.mrb[124].mxu1 }
 0x805   : > { %v5120_v11 = vadd.f32 %v6777_v37, %v9359_v28  ;;  %v5111_v15 = vpop.f32.mrb[125].mxu1 }
 0x806   : > { %v5112_v40 = vadd.f32 %v9359_v28, %v5111_v15  ;;  %v6778_v48 = vpop.f32.mrb[126].mxu1 }
 0x807   : > { %v5123_v58 = vadd.f32 %v6778_v48, %v9359_v28  ;;  %v5114_v29 = vpop.f32.mrb[127].mxu1  ;;  %7372 = vrot.lane.b32.xlu0 %v7371_v54, %s8280_s19  ;;  %v9449_v22 = vmul.f32 %v5120_v11, %v5120_v11  ;;  %v5156_v36 = vmul.f32 -2.0, %v5120_v11 }
 0x808   : > { %v5115_v6 = vadd.f32 %v9359_v28, %v5114_v29  ;;  %v9454_v3 = vmul.f32 %v5112_v40, %v5112_v40  ;;  %v5154_v63 = vmul.f32 -2.0, %v5112_v40 }
 0x809   : > { %v9451_v4 = vmul.f32 %v5123_v58, %v5123_v58  ;;  %v7376_v14 = vpack.i.bf16 %v5123_v58, %v5120_v11  ;;  %v5157_v42 = vmul.f32 -2.0, %v5123_v58 }
 0x80a   : > { %v9456_v39 = vmul.f32 %v5115_v6, %v5115_v6  ;;  %v7381_v43 = vpack.i.bf16 %v5115_v6, %v5112_v40  ;;  %v5155_v32 = vmul.f32 -2.0, %v5115_v6  ;;  %v5227_v40 = vsel %vm5222_vm3, %v9410_v19, 1.0 }
 0x80b   : > { %7377 = vrot.lane.b32.xlu1 %v7376_v14, %s8279_s0  ;;  %5178 = vrot.lane.b32.xlu0 %v5144_v47, %s8279_s0  ;;  %v7386_v9 = vpack.i.bf16 %v9451_v4, %v9449_v22 }
 0x80c   : > { %v7391_v28 = vpack.i.bf16 %v9456_v39, %v9454_v3 }
 0x80f   : > { %7382 = vrot.lane.b32.xlu1 %v7381_v43, %s8279_s0  ;;  %5180 = vrot.lane.b32.xlu0 %v5145_v52, %s8279_s0 }
 0x813   : > { %7387 = vrot.lane.b32.xlu1 %v7386_v9, %s8280_s19  ;;  %5190 = vrot.lane.b32.xlu0 %v5150_v13, %s8279_s0  ;;  %v5224_v9 = vsel %vm5222_vm3, %v9381_v45, 1.0 }
 0x817   : > { %7392 = vrot.lane.b32.xlu1 %v7391_v28, %s8280_s19  ;;  %5192 = vrot.lane.b32.xlu0 %v5151_v18, %s8279_s0 }
 0x81b   : > { %5186 = vrot.lane.b32.xlu1 %v5148_v60, %s8279_s0  ;;  %5194 = vrot.lane.b32.xlu0 %v5152_v59, %s8279_s0 }
 0x81f   : > { %5188 = vrot.lane.b32.xlu1 %v5149_v17, %s8279_s0  ;;  %5196 = vrot.lane.b32.xlu0 %v5153_v0, %s8279_s0 }
 0x823   : > { %5198 = vrot.lane.b32.xlu1 %v5154_v63, %s8279_s0 }
 0x827   : > { %5202 = vrot.lane.b32.xlu1 %v5156_v36, %s8279_s0 }
 0x82b   : > { %5200 = vrot.lane.b32.xlu1 %v5155_v32, %s8279_s0 }
 0x82f   : > { %5204 = vrot.lane.b32.xlu1 %v5157_v42, %s8279_s0 }
 0x84d   : > { %v7318_v8 = vpop.permute.xlu0 %7317 }
 0x84e   : > { %v7323_v25 = vpop.permute.xlu1 %7322  ;;  %v7320_v51 = vunpack.i.h.bf16 %v7318_v8  ;;  %v7319_v7 = vunpack.i.l.bf16 %v7318_v8 }
 0x84f   : > { %v7325_v26 = vunpack.i.h.bf16 %v7323_v25  ;;  %v7324_v34 = vunpack.i.l.bf16 %v7323_v25 }
 0x851   : > { %v5175_v12 = vpop.permute.xlu0 %5174 }
 0x852   : > { %v5240_v49 = vsel %vm5239_vm4, %v5223_v33, %v5175_v12 }
 0x853   : > { %6787 = vmatprep.mubr.msk.f32.mxu0 %vm5416_vm5, %v5240_v49 }
 0x855   : > { %v7328_v10 = vpop.permute.xlu0 %7327 }
 0x856   : > { %v7330_v27 = vunpack.i.h.bf16 %v7328_v10  ;;  %v7329_v38 = vunpack.i.l.bf16 %v7328_v10 }
 0x858   : > { %v5387_v41 = vsel %vm5222_vm3, 1.0, %v7330_v27  ;;  %v5386_v57 = vsel %vm5222_vm3, 1.0, %v7329_v38 }
 0x859   : > { %v7333_v46 = vpop.permute.xlu0 %7332  ;;  %v5403_v50 = vsel %vm5239_vm4, %v5387_v41, %v7320_v51  ;;  %v5402_v30 = vsel %vm5239_vm4, %v5386_v57, %v7319_v7 }
 0x85a   : > { %v7335_v24 = vunpack.i.h.bf16 %v7333_v46  ;;  %v7334_v53 = vunpack.i.l.bf16 %v7333_v46  ;;  %v6841_v11 = vpack.c.bf16 %v5403_v50, %v5402_v30  ;;  %v5225_v30 = vsel %vm5222_vm3, %v9371_v55, 1.0 }
 0x85c   : > { %v5385_v44 = vsel %vm5222_vm3, 1.0, %v7335_v24  ;;  %v5384_v62 = vsel %vm5222_vm3, 1.0, %v7334_v53 }
 0x85d   : > { %v5401_v31 = vsel %vm5239_vm4, %v5385_v44, %v7325_v26  ;;  %v5400_v1 = vsel %vm5239_vm4, %v5384_v62, %v7324_v34  ;;  %v7338_v54 = vpop.permute.xlu1 %7337  ;;  %v5177_v29 = vpop.permute.xlu0 %5176 }
 0x85e   : > { %v6835_v37 = vpack.c.bf16 %v5401_v31, %v5400_v1  ;;  %v7340_v43 = vunpack.i.h.bf16 %v7338_v54  ;;  %v7339_v59 = vunpack.i.l.bf16 %v7338_v54  ;;  %v5241_v17 = vsel %vm5239_vm4, %v5224_v9, %v5177_v29 }
 0x85f   : > { %v5226_v29 = vsel %vm5222_vm3, %v9375_v56, 1.0  ;;  %v5231_v56 = vsel %vm5222_vm3, %v9431_v23, 1.0 }
 0x860   : > { %6837 = vmatprep.subr.msk.bf16.mxu0 %vm9495_vm6, %v6835_v37 }
 0x861   : > { %v7343_v15 = vpop.permute.xlu1 %7342  ;;  %6840 = vmatpush3.bf16.xpose.msk.msra.mxu0 %vm9495_vm6, %v6835_v37 }
 0x862   : > { %6843 = vmatprep.subr.msk.bf16.mxu0 %vm9495_vm6, %v6841_v11  ;;  %v7345_v0 = vunpack.i.h.bf16 %v7343_v15  ;;  %v7344_v63 = vunpack.i.l.bf16 %v7343_v15 }
 0x865   : > { %v5183_v48 = vpop.permute.xlu1 %5182 }
 0x866   : > { %v5244_v58 = vsel %vm5239_vm4, %v5227_v40, %v5183_v48 }
 0x867   : > { %6801 = vmatprep.mubr.msk.f32.mxu1 %vm5416_vm5, %v5244_v58 }
 0x869   : > { %v7348_v6 = vpop.permute.xlu1 %7347  ;;  %6846 = vmatpush3.bf16.xpose.msk.msra.mxu0 %vm9495_vm6, %v6841_v11 }
 0x86a   : > { %v7350_v14 = vunpack.i.h.bf16 %v7348_v6  ;;  %v7349_v47 = vunpack.i.l.bf16 %v7348_v6 }
 0x86c   : > { %v5391_v19 = vsel %vm5222_vm3, 1.0, %v7350_v14  ;;  %v5390_v13 = vsel %vm5222_vm3, 1.0, %v7349_v47  ;;  %v5228_v14 = vsel %vm5222_vm3, %v9412_v2, 1.0 }
 0x86d   : > { %v7353_v28 = vpop.permute.xlu1 %7352  ;;  %v7358_v52 = vpop.permute.xlu0 %7357  ;;  %v5406_v45 = vsel %vm5239_vm4, %v5390_v13, %v7339_v59  ;;  %v5407_v42 = vsel %vm5239_vm4, %v5391_v19, %v7340_v43 }
 0x86e   : > { %v7355_v18 = vunpack.i.h.bf16 %v7353_v28  ;;  %v7354_v60 = vunpack.i.l.bf16 %v7353_v28  ;;  %v6853_v10 = vpack.c.bf16 %v5407_v42, %v5406_v45  ;;  %v7360_v7 = vunpack.i.h.bf16 %v7358_v52 }
 0x86f   : > { %v7359_v26 = vunpack.i.l.bf16 %v7358_v52 }
 0x870   : > { %v5389_v36 = vsel %vm5222_vm3, 1.0, %v7355_v18  ;;  %v5388_v32 = vsel %vm5222_vm3, 1.0, %v7354_v60  ;;  %6788 = vmatmul.mubr.msk.f32.vlgmr.msra.gmra.mrb[96].mxu0 %vm5416_vm5, %v5241_v17 }
 0x871   : > { %v5404_v8 = vsel %vm5239_vm4, %v5388_v32, %v7344_v63  ;;  %v5405_v12 = vsel %vm5239_vm4, %v5389_v36, %v7345_v0  ;;  %v7363_v33 = vpop.permute.xlu0 %7362  ;;  %v5185_v46 = vpop.permute.xlu1 %5184 }
 0x872   : > { %v6847_v49 = vpack.c.bf16 %v5405_v12, %v5404_v8  ;;  %v7365_v34 = vunpack.i.h.bf16 %v7363_v33  ;;  %v7364_v44 = vunpack.i.l.bf16 %v7363_v33  ;;  %v5245_v43 = vsel %vm5239_vm4, %v5228_v14, %v5185_v46 }
 0x873   : > { %v5229_v8 = vsel %vm5222_vm3, %v9402_v5, 1.0  ;;  %v5232_v46 = vsel %vm5222_vm3, %v9433_v35, 1.0  ;;  %v5233_v5 = vsel %vm5222_vm3, %v9427_v20, 1.0  ;;  %v5230_v35 = vsel %vm5222_vm3, %v9406_v21, 1.0 }
 0x874   : > { %6849 = vmatprep.subr.msk.bf16.mxu1 %vm9495_vm6, %v6847_v49  ;;  %v5234_v20 = vsel %vm5222_vm3, %v9429_v61, 1.0  ;;  %v5235_v21 = vsel %vm5222_vm3, %v9454_v3, 1.0 }
 0x875   : > { %6852 = vmatpush3.bf16.xpose.msk.msra.mxu1 %vm9495_vm6, %v6847_v49  ;;  %v7368_v27 = vpop.permute.xlu0 %7367 }
 0x876   : > { %v7370_v38 = vunpack.i.h.bf16 %v7368_v27  ;;  %v7369_v25 = vunpack.i.l.bf16 %v7368_v27  ;;  %6855 = vmatprep.subr.msk.bf16.mxu1 %vm9495_vm6, %v6853_v10 }
 0x878   : > { %v5395_v57 = vsel %vm5222_vm3, 1.0, %v7370_v38  ;;  %v5394_v24 = vsel %vm5222_vm3, 1.0, %v7369_v25 }
 0x879   : > { %v7373_v41 = vpop.permute.xlu0 %7372  ;;  %v5410_v31 = vsel %vm5239_vm4, %v5394_v24, %v7359_v26  ;;  %v5411_v1 = vsel %vm5239_vm4, %v5395_v57, %v7360_v7 }
 0x87a   : > { %v7375_v53 = vunpack.i.h.bf16 %v7373_v41  ;;  %v7374_v51 = vunpack.i.l.bf16 %v7373_v41  ;;  %v6865_v58 = vpack.c.bf16 %v5411_v1, %v5410_v31  ;;  %v5237_v1 = vsel %vm5222_vm3, %v9449_v22, 1.0 }
 0x87c   : > { %v5393_v62 = vsel %vm5222_vm3, 1.0, %v7375_v53  ;;  %v5392_v50 = vsel %vm5222_vm3, 1.0, %v7374_v51 }
 0x87d   : > { %v5408_v54 = vsel %vm5239_vm4, %v5392_v50, %v7364_v44  ;;  %v5409_v37 = vsel %vm5239_vm4, %v5393_v62, %v7365_v34  ;;  %v7378_v11 = vpop.permute.xlu1 %7377  ;;  %6858 = vmatpush3.bf16.xpose.msk.msra.mxu1 %vm9495_vm6, %v6853_v10  ;;  %v5179_v15 = vpop.permute.xlu0 %5178  ;;  %v5236_v50 = vsel %vm5222_vm3, %v9456_v39, 1.0 }
 0x87e   : > { %v6859_v40 = vpack.c.bf16 %v5409_v37, %v5408_v54  ;;  %v5242_v48 = vsel %vm5239_vm4, %v5225_v30, %v5179_v15  ;;  %v7380_v63 = vunpack.i.h.bf16 %v7378_v11  ;;  %v7379_v23 = vunpack.i.l.bf16 %v7378_v11 }
 0x87f   : > { %6790 = vmatprep.mubr.msk.f32.mxu0 %vm5416_vm5, %v5242_v48  ;;  %v5238_v54 = vsel %vm5222_vm3, %v9451_v4, 1.0 }
 0x880   : > { %6861 = vmatprep.subr.msk.bf16.mxu0 %vm9495_vm6, %v6859_v40 }
 0x881   : > { %v7383_v55 = vpop.permute.xlu1 %7382  ;;  %v5181_v6 = vpop.permute.xlu0 %5180  ;;  %6864 = vmatpush3.bf16.xpose.msk.msra.mxu0 %vm9495_vm6, %v6859_v40 }
 0x882   : > { %v5243_v47 = vsel %vm5239_vm4, %v5226_v29, %v5181_v6  ;;  %6867 = vmatprep.subr.msk.bf16.mxu0 %vm9495_vm6, %v6865_v58  ;;  %v7385_v36 = vunpack.i.h.bf16 %v7383_v55  ;;  %v7384_v32 = vunpack.i.l.bf16 %v7383_v55 }
 0x883   : > { %6791 = vmatmul.mubr.msk.f32.gmra.mrb[98].mxu0 %vm5416_vm5, %v5243_v47 }
 0x884   : > { %6802 = vmatmul.mubr.msk.f32.vlgmr.msra.gmra.mrb[128].mxu1 %vm5416_vm5, %v5245_v43 }
 0x885   : > { %v7388_v9 = vpop.permute.xlu1 %7387  ;;  %v5191_v28 = vpop.permute.xlu0 %5190 }
 0x886   : > { %v7390_v52 = vunpack.i.h.bf16 %v7388_v9  ;;  %v7389_v19 = vunpack.i.l.bf16 %v7388_v9  ;;  %v5248_v2 = vsel %vm5239_vm4, %v5231_v56, %v5191_v28 }
 0x887   : > { %6815 = vmatprep.mubr.msk.f32.mxu0 %vm5416_vm5, %v5248_v2 }
 0x888   : > { %v5399_v60 = vsel %vm5222_vm3, 1.0, %v7390_v52  ;;  %v5398_v59 = vsel %vm5222_vm3, 1.0, %v7389_v19 }
 0x889   : > { %v7393_v13 = vpop.permute.xlu1 %7392  ;;  %v5193_v18 = vpop.permute.xlu0 %5192  ;;  %6870 = vmatpush3.bf16.xpose.msk.msra.mxu0 %vm9495_vm6, %v6865_v58  ;;  %v5414_v12 = vsel %vm5239_vm4, %v5398_v59, %v7379_v23  ;;  %v5415_v33 = vsel %vm5239_vm4, %v5399_v60, %v7380_v63 }
 0x88a   : > { %v7395_v17 = vunpack.i.h.bf16 %v7393_v13  ;;  %v7394_v0 = vunpack.i.l.bf16 %v7393_v13  ;;  %v5249_v57 = vsel %vm5239_vm4, %v5232_v46, %v5193_v18  ;;  %v6877_v24 = vpack.c.bf16 %v5415_v33, %v5414_v12 }
 0x88c   : > { %v5397_v45 = vsel %vm5222_vm3, 1.0, %v7395_v17  ;;  %v5396_v42 = vsel %vm5222_vm3, 1.0, %v7394_v0 }
 0x88d   : > { %v5412_v49 = vsel %vm5239_vm4, %v5396_v42, %v7384_v32  ;;  %v5413_v10 = vsel %vm5239_vm4, %v5397_v45, %v7385_v36  ;;  %v5187_v27 = vpop.permute.xlu1 %5186  ;;  %v5195_v38 = vpop.permute.xlu0 %5194 }
 0x88e   : > { %v6871_v25 = vpack.c.bf16 %v5413_v10, %v5412_v49  ;;  %v5246_v41 = vsel %vm5239_vm4, %v5229_v8, %v5187_v27  ;;  %v5250_v53 = vsel %vm5239_vm4, %v5233_v5, %v5195_v38 }
 0x88f   : > { %6804 = vmatprep.mubr.msk.f32.mxu1 %vm5416_vm5, %v5246_v41 }
 0x890   : > { %6816 = vmatmul.mubr.msk.f32.vlgmr.msra.gmra.mrb[100].mxu0 %vm5416_vm5, %v5249_v57  ;;  %6873 = vmatprep.subr.msk.bf16.mxu1 %vm9495_vm6, %v6871_v25 }
 0x891   : > { %v5189_v51 = vpop.permute.xlu1 %5188  ;;  %6876 = vmatpush3.bf16.xpose.msk.msra.mxu1 %vm9495_vm6, %v6871_v25  ;;  %v5197_v7 = vpop.permute.xlu0 %5196  ;;  %6818 = vmatprep.mubr.msk.f32.mxu0 %vm5416_vm5, %v5250_v53 }
 0x892   : > { %v5247_v26 = vsel %vm5239_vm4, %v5230_v35, %v5189_v51  ;;  %v5251_v34 = vsel %vm5239_vm4, %v5234_v20, %v5197_v7  ;;  %6879 = vmatprep.subr.msk.bf16.mxu1 %vm9495_vm6, %v6877_v24 }
 0x893   : > { %6805 = vmatmul.mubr.msk.f32.gmra.mrb[130].mxu1 %vm5416_vm5, %v5247_v26 }
 0x894   : > { %6819 = vmatmul.mubr.msk.f32.gmra.mrb[102].mxu0 %vm5416_vm5, %v5251_v34 }
 0x895   : > { %v5199_v44 = vpop.permute.xlu1 %5198 }
 0x896   : > { %v5252_v61 = vsel %vm5239_vm4, %v5235_v21, %v5199_v44 }
 0x897   : > { %6829 = vmatprep.mubr.msk.f32.mxu1 %vm5416_vm5, %v5252_v61 }
 0x899   : > { %v5203_v62 = vpop.permute.xlu1 %5202  ;;  %6882 = vmatpush3.bf16.xpose.msk.msra.mxu1 %vm9495_vm6, %v6877_v24 }
 0x89a   : > { %v5254_v3 = vsel %vm5239_vm4, %v5237_v1, %v5203_v62 }
 0x89d   : > { %v5201_v30 = vpop.permute.xlu1 %5200 }
 0x89e   : > { %v5253_v31 = vsel %vm5239_vm4, %v5236_v50, %v5201_v30 }
 0x8a0   : > { %6830 = vmatmul.mubr.msk.f32.vlgmr.msra.gmra.mrb[132].mxu1 %vm5416_vm5, %v5253_v31 }
 0x8a1   : > { %v5205_v37 = vpop.permute.xlu1 %5204  ;;  %6832 = vmatprep.mubr.msk.f32.mxu1 %vm5416_vm5, %v5254_v3 }
 0x8a2   : > { %v5255_v16 = vsel %vm5239_vm4, %v5238_v54, %v5205_v37 }
 0x8a4   : > { %6833 = vmatmul.mubr.msk.f32.gmra.mrb[134].mxu1 %vm5416_vm5, %v5255_v16 }
 0x943   : > { %v6789_v39 = vpop.f32.mrb[96].mxu0 }
 0x944   : > { %v5854_v11 = vmax.f32 %v6789_v39, 0.0  ;;  %v5507_v15 = vpop.f32.mrb[97].mxu0 }
 0x945   : > { %v5853_v40 = vmax.f32 %v5507_v15, 0.0 }
 0x946   : > { %7936 = vrsqrt.f32 %v5854_v11  ;;  %vm5878_vm7 = vcmp.eq.f32.partialorder %v5854_v11, inf  ;;  %v5881_v55 = vand.u32 2147483648, %v5854_v11  ;;  %vm5880_vm8 = vcmp.eq.f32.partialorder %v5854_v11, 0.0 }
 0x947   : > { %7938 = vrsqrt.f32 %v5853_v40  ;;  %vm5871_vm9 = vcmp.eq.f32.partialorder %v5853_v40, inf  ;;  %v5874_v6 = vand.u32 2147483648, %v5853_v40  ;;  %vm5873_vm10 = vcmp.eq.f32.partialorder %v5853_v40, 0.0 }
 0x950   : > { %v7937_v22 = vpop.eup %7936 }
 0x951   : > { %v7939_v48 = vpop.eup %7938  ;;  %v5877_v58 = vmul.f32 %v7937_v22, %v5854_v11 }
 0x952   : > { %v5870_v4 = vmul.f32 %v7939_v48, %v5853_v40 }
 0x953   : > { %v5879_v29 = vsel %vm5878_vm7, %v5854_v11, %v5877_v58 }
 0x954   : > { %v5882_v14 = vsel %vm5880_vm8, %v5881_v55, %v5879_v29  ;;  %v5872_v47 = vsel %vm5871_vm9, %v5853_v40, %v5870_v4 }
 0x955   : > { %5982 = vst.msk [vmem:[%s9617_s4 + $0x8] sm:$0xff] %vm656_vm0, %v5882_v14  ;;  %v5875_v43 = vsel %vm5873_vm10, %v5874_v6, %v5872_v47 }
 0x956   : > { %5981 = vst.msk [vmem:[%s9617_s4] sm:$0xff] %vm656_vm0, %v5875_v43  ;;  %v6792_v9 = vpop.f32.mrb[98].mxu0 }
 0x957   : > { %v5856_v56 = vmax.f32 %v6792_v9, 0.0  ;;  %v5517_v28 = vpop.f32.mrb[99].mxu0  ;;  %v6803_v52 = vpop.f32.mrb[128].mxu1 }
 0x958   : > { %v5855_v19 = vmax.f32 %v5517_v28, 0.0  ;;  %v5858_v2 = vmax.f32 %v6803_v52, 0.0  ;;  %v5616_v13 = vpop.f32.mrb[129].mxu1 }
 0x959   : > { %7940 = vrsqrt.f32 %v5856_v56  ;;  %v5857_v18 = vmax.f32 %v5616_v13, 0.0  ;;  %vm5892_vm11 = vcmp.eq.f32.partialorder %v5856_v56, inf  ;;  %vm5894_vm12 = vcmp.eq.f32.partialorder %v5856_v56, 0.0 }
 0x95a   : > { %7942 = vrsqrt.f32 %v5855_v19  ;;  %v5895_v63 = vand.u32 2147483648, %v5856_v56  ;;  %vm5885_vm13 = vcmp.eq.f32.partialorder %v5855_v19, inf  ;;  %vm5887_vm14 = vcmp.eq.f32.partialorder %v5855_v19, 0.0 }
 0x95b   : > { %7944 = vrsqrt.f32 %v5858_v2  ;;  %v5888_v12 = vand.u32 2147483648, %v5855_v19  ;;  %vm5906_vm15 = vcmp.eq.f32.partialorder %v5858_v2, inf  ;;  %v5909_v38 = vand.u32 2147483648, %v5858_v2 }
 0x95c   : > { %7946 = vrsqrt.f32 %v5857_v18  ;;  %vm5908_vm1 = vcmp.eq.f32.partialorder %v5858_v2, 0.0  ;;  %vm5899_vm2 = vcmp.eq.f32.partialorder %v5857_v18, inf  ;;  %v5902_v51 = vand.u32 2147483648, %v5857_v18 }
 0x95d   : > { %vm5901_vm3 = vcmp.eq.f32.partialorder %v5857_v18, 0.0 }
 0x963   : > { %v7941_v60 = vpop.eup %7940  ;;  %v6817_v59 = vpop.f32.mrb[100].mxu0 }
 0x964   : > { %v7943_v17 = vpop.eup %7942  ;;  %v5891_v0 = vmul.f32 %v7941_v60, %v5856_v56  ;;  %v5862_v23 = vmax.f32 %v6817_v59, 0.0  ;;  %v5725_v36 = vpop.f32.mrb[101].mxu0 }
 0x965   : > { %v7945_v32 = vpop.eup %7944  ;;  %v5884_v45 = vmul.f32 %v7943_v17, %v5855_v19  ;;  %v5861_v42 = vmax.f32 %v5725_v36, 0.0 }
 0x966   : > { %v5893_v8 = vsel %vm5892_vm11, %v5856_v56, %v5891_v0  ;;  %v5905_v33 = vmul.f32 %v7945_v32, %v5858_v2  ;;  %7948 = vrsqrt.f32 %v5862_v23  ;;  %v6806_v49 = vpop.f32.mrb[130].mxu1  ;;  %v7947_v41 = vpop.eup %7946  ;;  %vm5934_vm4 = vcmp.eq.f32.partialorder %v5862_v23, inf }
 0x967   : > { %v5896_v10 = vsel %vm5894_vm12, %v5895_v63, %v5893_v8  ;;  %v5886_v27 = vsel %vm5885_vm13, %v5855_v19, %v5884_v45  ;;  %v5626_v25 = vpop.f32.mrb[131].mxu1  ;;  %v6820_v46 = vpop.f32.mrb[102].mxu0  ;;  %7950 = vrsqrt.f32 %v5861_v42  ;;  %v5898_v35 = vmul.f32 %v7947_v41, %v5857_v18 }
 0x968   : > { %5984 = vst.msk [vmem:[%s9617_s4 + $0x18] sm:$0xff] %vm656_vm0, %v5896_v10  ;;  %v5889_v57 = vsel %vm5887_vm14, %v5888_v12, %v5886_v27  ;;  %v5907_v5 = vsel %vm5906_vm15, %v5858_v2, %v5905_v33  ;;  %v5735_v24 = vpop.f32.mrb[103].mxu0  ;;  %v5860_v20 = vmax.f32 %v6806_v49, 0.0  ;;  %v5859_v7 = vmax.f32 %v5626_v25, 0.0 }
 0x969   : > { %5983 = vst.msk [vmem:[%s9617_s4 + $0x10] sm:$0xff] %vm656_vm0, %v5889_v57  ;;  %v5910_v53 = vsel %vm5908_vm1, %v5909_v38, %v5907_v5  ;;  %v9629_v26 = vmax.f32 %v6820_v46, 0.0  ;;  %v5900_v34 = vsel %vm5899_vm2, %v5857_v18, %v5898_v35  ;;  %v9631_v21 = vmax.f32 %v5735_v24, 0.0 }
 0x96a   : > { %5986 = vst.msk [vmem:[%s9617_s4 + $0x28] sm:$0xff] %vm656_vm0, %v5910_v53  ;;  %v5903_v44 = vsel %vm5901_vm3, %v5902_v51, %v5900_v34  ;;  %7952 = vrsqrt.f32 %v5860_v20  ;;  %v5937_v30 = vand.u32 2147483648, %v5862_v23  ;;  %vm5936_vm5 = vcmp.eq.f32.partialorder %v5862_v23, 0.0 }
 0x96b   : > { %5985 = vst.msk [vmem:[%s9617_s4 + $0x20] sm:$0xff] %vm656_vm0, %v5903_v44  ;;  %7954 = vrsqrt.f32 %v5859_v7  ;;  %vm5927_vm6 = vcmp.eq.f32.partialorder %v5861_v42, inf  ;;  %vm5929_vm7 = vcmp.eq.f32.partialorder %v5861_v42, 0.0  ;;  %v5930_v37 = vand.u32 2147483648, %v5861_v42 }
 0x96c   : > { %7956 = vrsqrt.f32 %v9629_v26  ;;  %vm5920_vm8 = vcmp.eq.f32.partialorder %v5860_v20, inf  ;;  %vm5922_vm9 = vcmp.eq.f32.partialorder %v5860_v20, 0.0  ;;  %v5923_v48 = vand.u32 2147483648, %v5860_v20 }
 0x96d   : > { %7958 = vrsqrt.f32 %v9631_v21  ;;  %vm5913_vm10 = vcmp.eq.f32.partialorder %v5859_v7, inf  ;;  %vm5915_vm11 = vcmp.eq.f32.partialorder %v5859_v7, 0.0  ;;  %v5916_v4 = vand.u32 2147483648, %v5859_v7 }
 0x96e   : > { %vm5948_vm12 = vcmp.eq.f32.partialorder %v9629_v26, inf  ;;  %vm5950_vm13 = vcmp.eq.f32.partialorder %v9629_v26, 0.0  ;;  %v5951_v52 = vand.u32 2147483648, %v9629_v26  ;;  %vm5941_vm14 = vcmp.eq.f32.partialorder %v9631_v21, inf }
 0x96f   : > { %v5944_v17 = vand.u32 2147483648, %v9631_v21  ;;  %vm5943_vm15 = vcmp.eq.f32.partialorder %v9631_v21, 0.0 }
 0x970   : > { %v7949_v61 = vpop.eup %7948 }
 0x971   : > { %v5933_v62 = vmul.f32 %v7949_v61, %v5862_v23  ;;  %v7951_v50 = vpop.eup %7950 }
 0x972   : > { %v5926_v1 = vmul.f32 %v7951_v50, %v5861_v42 }
 0x973   : > { %v5935_v31 = vsel %vm5934_vm4, %v5862_v23, %v5933_v62  ;;  %v6831_v3 = vpop.f32.mrb[132].mxu1 }
 0x974   : > { %v5938_v54 = vsel %vm5936_vm5, %v5937_v30, %v5935_v31  ;;  %v5866_v16 = vmax.f32 %v6831_v3, 0.0  ;;  %v5834_v39 = vpop.f32.mrb[133].mxu1  ;;  %v5928_v11 = vsel %vm5927_vm6, %v5861_v42, %v5926_v1  ;;  %v7953_v40 = vpop.eup %7952 }
 0x975   : > { %5990 = vst.msk [vmem:[%s9617_s4 + $0x48] sm:$0xff] %vm656_vm0, %v5938_v54  ;;  %v5865_v15 = vmax.f32 %v5834_v39, 0.0  ;;  %v5931_v22 = vsel %vm5929_vm7, %v5930_v37, %v5928_v11  ;;  %v7955_v58 = vpop.eup %7954  ;;  %v5919_v55 = vmul.f32 %v7953_v40, %v5860_v20 }
 0x976   : > { %7960 = vrsqrt.f32 %v5866_v16  ;;  %5989 = vst.msk [vmem:[%s9617_s4 + $0x40] sm:$0xff] %vm656_vm0, %v5931_v22  ;;  %v7957_v6 = vpop.eup %7956  ;;  %v5912_v14 = vmul.f32 %v7955_v58, %v5859_v7  ;;  %vm5962_vm1 = vcmp.eq.f32.partialorder %v5866_v16, inf  ;;  %v5965_v42 = vand.u32 2147483648, %v5866_v16 }
 0x977   : > { %7962 = vrsqrt.f32 %v5865_v15  ;;  %v6834_v29 = vpop.f32.mrb[134].mxu1  ;;  %v7959_v9 = vpop.eup %7958  ;;  %v5921_v56 = vsel %vm5920_vm8, %v5860_v20, %v5919_v55  ;;  %v5947_v28 = vmul.f32 %v7957_v6, %v9629_v26  ;;  %vm5964_vm2 = vcmp.eq.f32.partialorder %v5866_v16, 0.0 }
 0x978   : > { %v5868_v47 = vmax.f32 %v6834_v29, 0.0  ;;  %v5844_v43 = vpop.f32.mrb[135].mxu1  ;;  %v5924_v2 = vsel %vm5922_vm9, %v5923_v48, %v5921_v56  ;;  %v5914_v13 = vsel %vm5913_vm10, %v5859_v7, %v5912_v14  ;;  %v5940_v18 = vmul.f32 %v7959_v9, %v9631_v21 }
 0x979   : > { %v5867_v19 = vmax.f32 %v5844_v43, 0.0  ;;  %5988 = vst.msk [vmem:[%s9617_s4 + $0x38] sm:$0xff] %vm656_vm0, %v5924_v2  ;;  %v5917_v60 = vsel %vm5915_vm11, %v5916_v4, %v5914_v13  ;;  %v5949_v59 = vsel %vm5948_vm12, %v9629_v26, %v5947_v28  ;;  %vm5955_vm3 = vcmp.eq.f32.partialorder %v5865_v15, inf }
 0x97a   : > { %7964 = vrsqrt.f32 %v5868_v47  ;;  %5987 = vst.msk [vmem:[%s9617_s4 + $0x30] sm:$0xff] %vm656_vm0, %v5917_v60  ;;  %v5952_v0 = vsel %vm5950_vm13, %v5951_v52, %v5949_v59  ;;  %v5942_v63 = vsel %vm5941_vm14, %v9631_v21, %v5940_v18  ;;  %v5958_v33 = vand.u32 2147483648, %v5865_v15 }
 0x97b   : > { %7966 = vrsqrt.f32 %v5867_v19  ;;  %5992 = vst.msk [vmem:[%s9617_s4 + $0x58] sm:$0xff] %vm656_vm0, %v5952_v0  ;;  %v5945_v23 = vsel %vm5943_vm15, %v5944_v17, %v5942_v63  ;;  %vm5957_vm4 = vcmp.eq.f32.partialorder %v5865_v15, 0.0  ;;  %vm5976_vm5 = vcmp.eq.f32.partialorder %v5868_v47, inf }
 0x97c   : > { %5991 = vst.msk [vmem:[%s9617_s4 + $0x50] sm:$0xff] %vm656_vm0, %v5945_v23  ;;  %v5979_v41 = vand.u32 2147483648, %v5868_v47  ;;  %vm5978_vm6 = vcmp.eq.f32.partialorder %v5868_v47, 0.0  ;;  %vm5969_vm7 = vcmp.eq.f32.partialorder %v5867_v19, inf  ;;  %v5972_v53 = vand.u32 2147483648, %v5867_v19 }
 0x97d   : > { %vm5971_vm8 = vcmp.eq.f32.partialorder %v5867_v19, 0.0 }
 0x980   : > { %v7961_v36 = vpop.eup %7960 }
 0x981   : > { %v7963_v32 = vpop.eup %7962  ;;  %v5961_v45 = vmul.f32 %v7961_v36, %v5866_v16 }
 0x982   : > { %v5954_v8 = vmul.f32 %v7963_v32, %v5865_v15 }
 0x983   : > { %v5963_v12 = vsel %vm5962_vm1, %v5866_v16, %v5961_v45 }
 0x984   : > { %v7965_v49 = vpop.eup %7964  ;;  %v5966_v10 = vsel %vm5964_vm2, %v5965_v42, %v5963_v12  ;;  %v5956_v27 = vsel %vm5955_vm3, %v5865_v15, %v5954_v8 }
 0x985   : > { %5994 = vst.msk [vmem:[%s9617_s4 + $0x68] sm:$0xff] %vm656_vm0, %v5966_v10  ;;  %v5959_v38 = vsel %vm5957_vm4, %v5958_v33, %v5956_v27  ;;  %v5975_v25 = vmul.f32 %v7965_v49, %v5868_v47  ;;  %v7967_v46 = vpop.eup %7966 }
 0x986   : > { %5993 = vst.msk [vmem:[%s9617_s4 + $0x60] sm:$0xff] %vm656_vm0, %v5959_v38  ;;  %v5968_v5 = vmul.f32 %v7967_v46, %v5867_v19 }
 0x987   : > { %v5977_v57 = vsel %vm5976_vm5, %v5868_v47, %v5975_v25 }
 0x988   : > { %v5980_v24 = vsel %vm5978_vm6, %v5979_v41, %v5977_v57  ;;  %v5970_v35 = vsel %vm5969_vm7, %v5867_v19, %v5968_v5 }
 0x989   : > { %5996 = vst.msk [vmem:[%s9617_s4 + $0x78] sm:$0xff] %vm656_vm0, %v5980_v24  ;;  %v5973_v51 = vsel %vm5971_vm8, %v5972_v53, %v5970_v35 }
 0x98a   : > { %5995 = vst.msk [vmem:[%s9617_s4 + $0x70] sm:$0xff] %vm656_vm0, %v5973_v51 }
 0x98b   : > { %8194 = shalt.err (!%p8191_p8)
}
 0x98c   : > { %s8195_s25 = scalar_lea.hbm %s9674_s3, 2048  ;;  %s8199_s29 = scalar_lea.hbm %s9791_s2, 4096 }
 0x98d   : > { %p8196_p11 = scmp.ne.s32.totalorder %s9674_s3, %s8195_s25  ;;  %p8200_p1 = scmp.lt.u32.totalorder %s9674_s3, %s9791_s2 }
 0x98e   : > { %p8201_p13 = scmp.lt.u32.totalorder %s8199_s29, %s8195_s25  ;;  %p8203_p7 = scmp.lt.u32.totalorder %s8195_s25, %s9674_s3 }
 0x98f   : > { %p8197_p3 = pnand %p8196_p11, %p9792_p2 }
 0x990   : > { %p8202_p0 = por %p8201_p13, %p8200_p1 }
 0x991   : > { %p8198_p12 = pneg %p8197_p3 }
 0x992   : > { %p8204_p6 = por %p8203_p7, %p8202_p0 }
 0x994   : > { %p8205_p10 = pnand %p8204_p6, %p8198_p12 }
 0x996   : > { %8208 = shalt.err (!%p8205_p10)
}
 0x997   : > { %s8282_s4 = smov 128   ;;  %s8283_s5 = smov 8  }
 0x998   : > { %7227 = dma.vmem_to_hbm [thread:$0]  (%p9792_p2), %s9676_s28, 2048, %s9674_s3, %s5998_s27, %s8282_s4, %s8282_s4, %s8283_s5  }
 0x999 PF: > { %s6027_s18 = sand.u32 1, %s8251_s21   ;;  %p9793_p5 = scmp.ne.s32.totalorder %s9769_s20, 0 }
 0x99a   : > { %p9794_p9 = scmp.ge.s32.totalorder %s8263_s24, 2  ;;  %s6028_s16 = scalar_lea.sflag [#allocation4], %s6027_s18 }
 0x99c   : > { %p7253_p4 = pnand %p9794_p9, %p9793_p5 }
 0x99e   : > { %8246 = dma.done.wait (!%p7253_p4), %s6028_s16, 2048  }
 0x99f   : > { %8248 = vsyncadd (!%p7253_p4), %s6028_s16, 4294965248  ;;  %p30_p8 = scmp.ge.s32.totalorder %s8510_s13, 4   ;;  %s9795_s21 = smov %s8255_s22 }
 0x9a0   : > { %s9796_s22 = smov %s8259_s23  ;;  %s9797_s23 = smov %s8522_s17 }
 0x9a1   : > { %s9798_s24 = smov %s8510_s13  ;;  %32 = sbr.rel (!%p30_p8) target bundleno = 20 (0x14), region = 146 }
 0x9a8   :  { %6033 = vsyncpa [#allocation3], 1 }
 0x9a9   :  { %6035 = vsyncpa [#allocation3 + $0x1], 1 }
 0x9aa   :  { %6036 = vsyncpa [#allocation6], 1 }
 0x9ab   :  { %6038 = vsyncpa [#allocation6 + $0x1], 1 }
 0x9ac   :  { %6039 = vsyncpa [#allocation9], 1 }
 0x9ad   :  { %6040 = vsyncpa [#allocation12], 1 }
 0x9ae   :  { %6041 = vsyncpa [#allocation4], 1 }
 0x9af   :  { %6043 = vsyncpa [#allocation4 + $0x1], 1 }

</bundles_post_ra>
